<compile_context>
chip_gen: v5e
topology: v5e:2x2
jax: 0.10.0
libtpu: 0.0.40
codegen_flags: <defaults>
</compile_context>

<pallas_src>
import functools
import math

import numpy as np
import jax
import jax.numpy as jnp
from jax import lax
from jax.experimental import pallas as pl
from jax.experimental.pallas import tpu as pltpu


# ---------------------------------------------------------------------------
# Fused kernel: conv1+bn1+lrelu (+fused 1x1 residual), conv3+bn3, add, lrelu,
#               MaxPool2d(2), AdaptiveAvgPool2d((4,2)).  One batch CHUNK per step.
# ---------------------------------------------------------------------------
def _fused_kernel(x_ref, w1_ref, w3_ref, sb_ref, pm_ref, o_ref,
                  xcat_ref, ycat_ref, *, H, W, Cin, C, B):
    f32 = jnp.float32
    Hh = H // 2
    K1 = 3 * Cin           # conv1 packed contraction (384)
    K3 = 3 * C             # conv3 packed contraction (192, no zero padding)

    # Zero ONLY the top/bottom halo rows (rows 0 and H+1).  Interior rows are fully
    # overwritten per image; dx edge columns are zeroed in the register-built blocks.
    xcat_ref[0:1] = jnp.zeros((1, W, K1), xcat_ref.dtype)
    xcat_ref[H + 1:H + 2] = jnp.zeros((1, W, K1), xcat_ref.dtype)
    ycat_ref[0:1] = jnp.zeros((1, W, K3), ycat_ref.dtype)
    ycat_ref[H + 1:H + 2] = jnp.zeros((1, W, K3), ycat_ref.dtype)

    sb = sb_ref[...]                       # (8, 2C) f32: packed scale/bias table
    scale1 = sb[0:1, :]                    # [s1 | sd]
    bias1 = sb[1:2, :]                     # [b1 | bd]
    scale3 = sb[2:3, 0:C]
    bias3 = sb[3:4, 0:C]
    lane = lax.broadcasted_iota(jnp.int32, (H * W, 2 * C), 1)

    for b in range(B):                     # static unroll over the batch chunk
        x = x_ref[b]                       # (H, W, Cin) bf16
        zc = jnp.zeros((H, 1, Cin), x.dtype)

        # conv1 K-packing: channel blocks [dx=0 | dx=1 | dx=2], each Cin wide.
        # W-shift + zero edge column built in registers -> lane-tile aligned stores.
        xcat_ref[1:H + 1, :, 0:Cin] = jnp.concatenate([zc, x[:, :W - 1, :]], axis=1)
        xcat_ref[1:H + 1, :, Cin:2 * Cin] = x
        xcat_ref[1:H + 1, :, 2 * Cin:3 * Cin] = jnp.concatenate([x[:, 1:, :], zc], axis=1)

        # conv1 (cols 0:C) + fused 1x1 downsample (cols C:2C): 3 MXU matmuls (one per
        # dy), bf16 operands, f32 accumulation chain (MRB-friendly on v7x).
        acc = jnp.zeros((H * W, 2 * C), f32)
        for dy in range(3):
            win = xcat_ref[dy:dy + H].reshape(H * W, K1)
            acc = acc + jnp.dot(win, w1_ref[dy], preferred_element_type=f32)

        packed = acc * scale1 + bias1                         # folded BN1 | BN_d
        # LeakyReLU(0.1) on the conv1 columns only; residual columns pass through.
        packed = jnp.where((packed > 0) | (lane >= C), packed, 0.1 * packed)
        res = packed[:, C:2 * C]                              # (H*W, C) f32
        y1 = packed[:, 0:C].astype(ycat_ref.dtype).reshape(H, W, C)

        # conv3 K-packing (tight, K = 3*C = 192): blocks [dx=0 | dx=1 | dx=2].
        zc2 = jnp.zeros((H, 1, C), ycat_ref.dtype)
        blk0 = jnp.concatenate([zc2, y1[:, :W - 1, :]], axis=1)
        blk2 = jnp.concatenate([y1[:, 1:, :], zc2], axis=1)
        ycat_ref[1:H + 1, :, 0:2 * C] = jnp.concatenate([blk0, y1], axis=-1)
        ycat_ref[1:H + 1, :, 2 * C:3 * C] = blk2

        acc2 = jnp.zeros((H * W, C), f32)
        for dy in range(3):
            win = ycat_ref[dy:dy + H].reshape(H * W, K3)
            acc2 = acc2 + jnp.dot(win, w3_ref[dy], preferred_element_type=f32)

        # bn3 + residual add + LeakyReLU (elementwise in f32; v5e VPU has no bf16).
        z = acc2 * scale3 + bias3 + res
        z = jnp.where(z > 0, z, 0.1 * z)
        # TODO(synk): F.dropout(p=0.1) omitted (inference -> identity).

        # MaxPool2d(2): H direction via leading-axis split + max, W via one shifted max.
        z4 = z.reshape(Hh, 2, W, C)
        zh = jnp.maximum(z4[:, 0], z4[:, 1])                  # (Hh, W, C)
        zsh = jnp.concatenate([zh[:, 1:, :], zh[:, W - 1:W, :]], axis=1)
        pair = jnp.maximum(zh, zsh).reshape(Hh * W, C)        # maxpool cell at even w

        # AdaptiveAvgPool2d((4,2)) as one MXU matmul against a precomputed pooling
        # matrix, contracted on the spatial axis -> result already in PyTorch NCHW
        # flatten order (C, OH*OW); no wrapper transpose kernel needed.
        pooled_t = lax.dot_general(pair, pm_ref[...],
                                   dimension_numbers=(((0,), (0,)), ((), ())),
                                   preferred_element_type=f32)  # (C, OH*OW)
        o_ref[b] = pooled_t


def fused_forward(x_nhwc_bf16, w1w, w3c, sb, pm_t, *, OH, OW):
    N, H, W, Cin = x_nhwc_bf16.shape
    C = w3c.shape[-1]
    Hp = H + 2
    # Batch folding: at most two balanced chunks -> both v7x TensorCores busy via
    # "parallel"; v5e/v6e amortize the per-step overhead over B images per step.
    G = 2 if (N % 2 == 0 and N >= 2) else 1
    B = N // G
    kern = functools.partial(_fused_kernel, H=H, W=W, Cin=Cin, C=C, B=B)
    return pl.pallas_call(
        kern,
        out_shape=jax.ShapeDtypeStruct((N, C, OH * OW), jnp.float32),
        grid=(G,),
        in_specs=[
            pl.BlockSpec((B, H, W, Cin), lambda g: (g, 0, 0, 0)),
            pl.BlockSpec((3, 3 * Cin, 2 * C), lambda g: (0, 0, 0)),
            pl.BlockSpec((3, 3 * C, C), lambda g: (0, 0, 0)),
            pl.BlockSpec((8, 2 * C), lambda g: (0, 0)),
            pl.BlockSpec(((H // 2) * W, OH * OW), lambda g: (0, 0)),
        ],
        out_specs=pl.BlockSpec((B, C, OH * OW), lambda g: (g, 0, 0)),
        scratch_shapes=[
            pltpu.VMEM((Hp, W, 3 * Cin), jnp.bfloat16),
            pltpu.VMEM((Hp, W, 3 * C), jnp.bfloat16),
        ],
        compiler_params=pltpu.CompilerParams(dimension_semantics=("parallel",)),
    )(x_nhwc_bf16, w1w, w3c, sb, pm_t)


# ---------------------------------------------------------------------------
# Pooling matrix (transposed): AdaptiveAvgPool2d((OH,OW)) over the 2x2-maxpooled
# grid, acting on the (Hh*W, C) "pair" array (maxpool cell (h,k) at row h*W + 2k).
# ---------------------------------------------------------------------------
def _make_pool_matrix_t(Hh, W, OH, OW):
    bh = Hh // OH
    bw = (W // 2) // OW
    P = np.zeros((Hh * W, OH * OW), np.float32)
    inv = 1.0 / float(bh * bw)
    for i in range(OH):
        for j in range(OW):
            for h in range(i * bh, (i + 1) * bh):
                for k in range(j * bw, (j + 1) * bw):
                    P[h * W + 2 * k, i * OW + j] = inv
    return jnp.asarray(P)


# ---------------------------------------------------------------------------
# Parameters (deterministic, matching the module's __init__ shapes / init)
# ---------------------------------------------------------------------------
def init_params(key, Cin=128, C=64):
    k1, k2, k3 = jax.random.split(key, 3)
    gain = math.sqrt(2.0 / (1.0 + 0.01 ** 2))      # kaiming_normal, leaky_relu

    def kaiming(k, shape, fan_out):
        return (gain / math.sqrt(fan_out)) * jax.random.normal(k, shape, jnp.float32)

    w1 = kaiming(k1, (3, 3, Cin, C), C * 9)        # conv1: 128 -> 64, 3x3 (HWIO)
    w3 = kaiming(k2, (3, 3, C, C), C * 9)          # conv3: 64 -> 64, 3x3 (HWIO)
    wd = kaiming(k3, (Cin, C), C)                  # downsample 1x1: 128 -> 64

    def bn(nch):
        gamma = jnp.ones((1, nch), jnp.float32)
        beta = jnp.zeros((1, nch), jnp.float32)
        mean = jnp.zeros((1, nch), jnp.float32)
        var = jnp.ones((1, nch), jnp.float32)
        scale = gamma / jnp.sqrt(var + 1e-5)
        bias = beta - mean * scale
        return scale, bias

    s1, b1 = bn(C)
    s3, b3 = bn(C)
    sd, bd = bn(C)
    return dict(w1=w1, s1=s1, b1=b1, w3=w3, s3=s3, b3=b3, wd=wd, sd=sd, bd=bd)


# ---------------------------------------------------------------------------
# Forward wrapper (NCHW->NHWC+bf16 cast, weight K-packing, free final reshape)
# ---------------------------------------------------------------------------
def light_model_forward(x_nchw, params):
    x = jnp.transpose(x_nchw, (0, 2, 3, 1)).astype(jnp.bfloat16)   # NCHW -> NHWC bf16
    N, H, W, Cin = x.shape
    C = params['wd'].shape[-1]
    OH, OW = 4, 2
    assert H % 2 == 0 and W % 2 == 0, "MaxPool2d(2) requires even spatial dims"
    assert (H // 2) % OH == 0 and (W // 2) % OW == 0, "adaptive pool assumes even division"
    assert Cin % 128 == 0 and 2 * C == 128, "K-packing / residual fusion assume Cin=128, C=64"

    # conv1 weights (3,3,Cin,C) -> (3, 3*Cin, C), dx blocks [0|1|2]; widen to 2*C output
    # columns and drop the 1x1 downsample weights into the dy=1 / dx=1 block.
    w1cat = params['w1'].reshape(3, 3 * Cin, C)
    w1w = jnp.zeros((3, 3 * Cin, 2 * C), jnp.float32)
    w1w = w1w.at[:, :, 0:C].set(w1cat)
    w1w = w1w.at[1, Cin:2 * Cin, C:2 * C].set(params['wd'])
    w1w = w1w.astype(jnp.bfloat16)

    # conv3 weights (3,3,C,C) -> (3, 3*C, C): tight K = 192, no zero padding.
    w3c = params['w3'].reshape(3, 3 * C, C).astype(jnp.bfloat16)

    # All six folded BN scale/bias vectors in one (8, 2*C) table (single DMA per step).
    sb = jnp.zeros((8, 2 * C), jnp.float32)
    sb = sb.at[0, 0:C].set(params['s1'][0]).at[0, C:2 * C].set(params['sd'][0])
    sb = sb.at[1, 0:C].set(params['b1'][0]).at[1, C:2 * C].set(params['bd'][0])
    sb = sb.at[2, 0:C].set(params['s3'][0])
    sb = sb.at[3, 0:C].set(params['b3'][0])

    pm_t = _make_pool_matrix_t(H // 2, W, OH, OW)

    out = fused_forward(x, w1w, w3c, sb, pm_t, OH=OH, OW=OW)       # (N, C, OH*OW)
    # Already in PyTorch NCHW flatten order -> free reshape, no transpose kernel.
    return out.reshape(N, C * OH * OW)                              # (N, 512)


# ---------------------------------------------------------------------------
# Pure-JAX f32 reference for a structural correctness check
# ---------------------------------------------------------------------------
def reference_forward(x_nchw, params):
    x = jnp.transpose(x_nchw, (0, 2, 3, 1)).astype(jnp.float32)

    def conv(inp, w):
        return lax.conv_general_dilated(inp, w, (1, 1), 'SAME',
                                        dimension_numbers=('NHWC', 'HWIO', 'NHWC'))

    y = conv(x, params['w1']) * params['s1'][0] + params['b1'][0]
    y = jnp.where(y > 0, y, 0.1 * y)
    y = conv(y, params['w3']) * params['s3'][0] + params['b3'][0]
    res = jnp.einsum('nhwc,cd->nhwd', x, params['wd']) * params['sd'][0] + params['bd'][0]
    z = y + res
    z = jnp.where(z > 0, z, 0.1 * z)
    z = lax.reduce_window(z, -jnp.inf, lax.max, (1, 2, 2, 1), (1, 2, 2, 1), 'VALID')
    z = lax.reduce_window(z, 0.0, lax.add, (1, 2, 4, 1), (1, 2, 4, 1), 'VALID') / 8.0
    return jnp.transpose(z, (0, 3, 1, 2)).reshape(z.shape[0], -1)


if __name__ == "__main__":
    key = jax.random.PRNGKey(0)
    pkey, xkey = jax.random.split(key)
    params = init_params(pkey)
    # Shapes consistent with the module: inplanes=128, 16x16 spatial, batch=2 (NCHW).
    x = jax.random.normal(xkey, (2, 128, 16, 16), jnp.float32)

    out = jax.jit(light_model_forward)(x, params)
    out = jax.block_until_ready(out)

    ref = reference_forward(x, params)
    assert out.shape == (2, 512), out.shape
    # bf16 matmul operands in the kernel vs f32 reference -> a few-percent tolerance.
    if not bool(jnp.allclose(out, ref, rtol=5e-2, atol=1e-1)):
        raise AssertionError(
            f"kernel/reference mismatch, max abs diff = {float(jnp.max(jnp.abs(out - ref)))}")
    print("KERNEL_OK")
</pallas_src>

<mosaic_0001>
module attributes {stable_mosaic.version = 11 : i64} {
  func.func @_fused_kernel(%arg0: i32, %arg1: memref<1x16x16x128xbf16, #tpu.memory_space<vmem>>, %arg2: memref<3x384x128xbf16, #tpu.memory_space<vmem>>, %arg3: memref<3x192x64xbf16, #tpu.memory_space<vmem>>, %arg4: memref<8x128xf32, #tpu.memory_space<vmem>>, %arg5: memref<128x8xf32, #tpu.memory_space<vmem>>, %arg6: memref<1x64x8xf32, #tpu.memory_space<vmem>>, %arg7: memref<18x16x384xbf16, #tpu.memory_space<vmem>>, %arg8: memref<18x16x192xbf16, #tpu.memory_space<vmem>>) attributes {dimension_semantics = [#tpu.dimension_semantics<parallel>], iteration_bounds = array<i64: 2>, scalar_prefetch = 0 : i64, scratch_operands = 2 : i64, tpu.core_type = #tpu.core_type<tc>, window_params = [{transform_indices = @transform_0, window_bounds = array<i64: 1, 16, 16, 128>}, {pipeline_mode = #tpu.pipeline_mode<synchronous>, transform_indices = @transform_1, window_bounds = array<i64: 3, 384, 128>}, {pipeline_mode = #tpu.pipeline_mode<synchronous>, transform_indices = @transform_2, window_bounds = array<i64: 3, 192, 64>}, {pipeline_mode = #tpu.pipeline_mode<synchronous>, transform_indices = @transform_3, window_bounds = array<i64: 8, 128>}, {pipeline_mode = #tpu.pipeline_mode<synchronous>, transform_indices = @transform_4, window_bounds = array<i64: 128, 8>}, {transform_indices = @transform_5, window_bounds = array<i64: 1, 64, 8>}]} {
    %cst = arith.constant 0.000000e+00 : bf16
    %0 = vector.broadcast %cst : bf16 to vector<1x16x384xbf16>
    %c0 = arith.constant 0 : index
    %c0_0 = arith.constant 0 : index
    %c0_1 = arith.constant 0 : index
    %1 = vector.load %arg7[%c0, %c0_0, %c0_1] : memref<18x16x384xbf16, #tpu.memory_space<vmem>>, vector<1x16x384xbf16>
    tpu.vector_store %arg7[%c0, %c0_0, %c0_1], %0 {strides = array<i32>} : memref<18x16x384xbf16, #tpu.memory_space<vmem>>, vector<1x16x384xbf16>,
    %cst_2 = arith.constant 0.000000e+00 : bf16
    %2 = vector.broadcast %cst_2 : bf16 to vector<1x16x384xbf16>
    %c17 = arith.constant 17 : index
    %c0_3 = arith.constant 0 : index
    %c0_4 = arith.constant 0 : index
    %3 = vector.load %arg7[%c17, %c0_3, %c0_4] : memref<18x16x384xbf16, #tpu.memory_space<vmem>>, vector<1x16x384xbf16>
    tpu.vector_store %arg7[%c17, %c0_3, %c0_4], %2 {strides = array<i32>} : memref<18x16x384xbf16, #tpu.memory_space<vmem>>, vector<1x16x384xbf16>,
    %cst_5 = arith.constant 0.000000e+00 : bf16
    %4 = vector.broadcast %cst_5 : bf16 to vector<1x16x192xbf16>
    %c0_6 = arith.constant 0 : index
    %c0_7 = arith.constant 0 : index
    %c0_8 = arith.constant 0 : index
    %5 = vector.load %arg8[%c0_6, %c0_7, %c0_8] : memref<18x16x192xbf16, #tpu.memory_space<vmem>>, vector<1x16x192xbf16>
    tpu.vector_store %arg8[%c0_6, %c0_7, %c0_8], %4 {strides = array<i32>} : memref<18x16x192xbf16, #tpu.memory_space<vmem>>, vector<1x16x192xbf16>,
    %cst_9 = arith.constant 0.000000e+00 : bf16
    %6 = vector.broadcast %cst_9 : bf16 to vector<1x16x192xbf16>
    %c17_10 = arith.constant 17 : index
    %c0_11 = arith.constant 0 : index
    %c0_12 = arith.constant 0 : index
    %7 = vector.load %arg8[%c17_10, %c0_11, %c0_12] : memref<18x16x192xbf16, #tpu.memory_space<vmem>>, vector<1x16x192xbf16>
    tpu.vector_store %arg8[%c17_10, %c0_11, %c0_12], %6 {strides = array<i32>} : memref<18x16x192xbf16, #tpu.memory_space<vmem>>, vector<1x16x192xbf16>,
    %c0_13 = arith.constant 0 : index
    %c0_14 = arith.constant 0 : index
    %8 = vector.load %arg4[%c0_13, %c0_14] : memref<8x128xf32, #tpu.memory_space<vmem>>, vector<8x128xf32>
    %9 = vector.extract_strided_slice %8 {offsets = [0, 0], sizes = [1, 128], strides = [1, 1]} : vector<8x128xf32> to vector<1x128xf32>
    %10 = vector.extract_strided_slice %8 {offsets = [1, 0], sizes = [1, 128], strides = [1, 1]} : vector<8x128xf32> to vector<1x128xf32>
    %11 = vector.extract_strided_slice %8 {offsets = [2, 0], sizes = [1, 64], strides = [1, 1]} : vector<8x128xf32> to vector<1x64xf32>
    %12 = vector.extract_strided_slice %8 {offsets = [3, 0], sizes = [1, 64], strides = [1, 1]} : vector<8x128xf32> to vector<1x64xf32>
    %13 = tpu.iota {dimensions = array<i32: 1>} : vector<256x128xi32>
    %c0_15 = arith.constant 0 : index
    %c0_16 = arith.constant 0 : index
    %c0_17 = arith.constant 0 : index
    %c0_18 = arith.constant 0 : index
    %14 = vector.load %arg1[%c0_15, %c0_16, %c0_17, %c0_18] : memref<1x16x16x128xbf16, #tpu.memory_space<vmem>>, vector<1x16x16x128xbf16>
    %15 = vector.shape_cast %14 : vector<1x16x16x128xbf16> to vector<16x16x128xbf16>
    %cst_19 = arith.constant 0.000000e+00 : bf16
    %16 = vector.broadcast %cst_19 : bf16 to vector<16x1x128xbf16>
    %17 = vector.extract_strided_slice %15 {offsets = [0, 0, 0], sizes = [16, 15, 128], strides = [1, 1, 1]} : vector<16x16x128xbf16> to vector<16x15x128xbf16>
    %18 = tpu.concatenate %16, %17 in 1 : vector<16x1x128xbf16>, vector<16x15x128xbf16> -> vector<16x16x128xbf16>
    %c1 = arith.constant 1 : index
    %c0_20 = arith.constant 0 : index
    %c0_21 = arith.constant 0 : index
    %19 = vector.load %arg7[%c1, %c0_20, %c0_21] : memref<18x16x384xbf16, #tpu.memory_space<vmem>>, vector<16x16x128xbf16>
    tpu.vector_store %arg7[%c1, %c0_20, %c0_21], %18 {strides = array<i32>} : memref<18x16x384xbf16, #tpu.memory_space<vmem>>, vector<16x16x128xbf16>,
    %c1_22 = arith.constant 1 : index
    %c0_23 = arith.constant 0 : index
    %c128 = arith.constant 128 : index
    %20 = vector.load %arg7[%c1_22, %c0_23, %c128] : memref<18x16x384xbf16, #tpu.memory_space<vmem>>, vector<16x16x128xbf16>
    tpu.vector_store %arg7[%c1_22, %c0_23, %c128], %15 {strides = array<i32>} : memref<18x16x384xbf16, #tpu.memory_space<vmem>>, vector<16x16x128xbf16>,
    %21 = vector.extract_strided_slice %15 {offsets = [0, 1, 0], sizes = [16, 15, 128], strides = [1, 1, 1]} : vector<16x16x128xbf16> to vector<16x15x128xbf16>
    %22 = tpu.concatenate %21, %16 in 1 : vector<16x15x128xbf16>, vector<16x1x128xbf16> -> vector<16x16x128xbf16>
    %c1_24 = arith.constant 1 : index
    %c0_25 = arith.constant 0 : index
    %c256 = arith.constant 256 : index
    %23 = vector.load %arg7[%c1_24, %c0_25, %c256] : memref<18x16x384xbf16, #tpu.memory_space<vmem>>, vector<16x16x128xbf16>
    tpu.vector_store %arg7[%c1_24, %c0_25, %c256], %22 {strides = array<i32>} : memref<18x16x384xbf16, #tpu.memory_space<vmem>>, vector<16x16x128xbf16>,
    %cst_26 = arith.constant 0.000000e+00 : f32
    %24 = vector.broadcast %cst_26 : f32 to vector<256x128xf32>
    %c0_27 = arith.constant 0 : index
    %c0_28 = arith.constant 0 : index
    %c0_29 = arith.constant 0 : index
    %25 = vector.load %arg7[%c0_27, %c0_28, %c0_29] : memref<18x16x384xbf16, #tpu.memory_space<vmem>>, vector<16x16x384xbf16>
    %26 = vector.shape_cast %25 : vector<16x16x384xbf16> to vector<256x384xbf16>
    %c0_30 = arith.constant 0 : index
    %c0_31 = arith.constant 0 : index
    %c0_32 = arith.constant 0 : index
    %27 = vector.load %arg2[%c0_30, %c0_31, %c0_32] : memref<3x384x128xbf16, #tpu.memory_space<vmem>>, vector<1x384x128xbf16>
    %28 = vector.shape_cast %27 : vector<1x384x128xbf16> to vector<384x128xbf16>
    %cst_33 = arith.constant dense<0.000000e+00> : vector<256x128xf32>
    %29 = tpu.matmul %26, %28, %cst_33 {dimension_numbers = #tpu.dot_dimension_numbers<[1], [0], [0], [1], [0, 0, 1, 1], [], []>} : vector<256x384xbf16>, vector<384x128xbf16>, vector<256x128xf32> -> vector<256x128xf32>
    %30 = arith.addf %24, %29 : vector<256x128xf32>
    %c1_34 = arith.constant 1 : index
    %c0_35 = arith.constant 0 : index
    %c0_36 = arith.constant 0 : index
    %31 = vector.load %arg7[%c1_34, %c0_35, %c0_36] : memref<18x16x384xbf16, #tpu.memory_space<vmem>>, vector<16x16x384xbf16>
    %32 = vector.shape_cast %31 : vector<16x16x384xbf16> to vector<256x384xbf16>
    %c1_37 = arith.constant 1 : index
    %c0_38 = arith.constant 0 : index
    %c0_39 = arith.constant 0 : index
    %33 = vector.load %arg2[%c1_37, %c0_38, %c0_39] : memref<3x384x128xbf16, #tpu.memory_space<vmem>>, vector<1x384x128xbf16>
    %34 = vector.shape_cast %33 : vector<1x384x128xbf16> to vector<384x128xbf16>
    %cst_40 = arith.constant dense<0.000000e+00> : vector<256x128xf32>
    %35 = tpu.matmul %32, %34, %cst_40 {dimension_numbers = #tpu.dot_dimension_numbers<[1], [0], [0], [1], [0, 0, 1, 1], [], []>} : vector<256x384xbf16>, vector<384x128xbf16>, vector<256x128xf32> -> vector<256x128xf32>
    %36 = arith.addf %30, %35 : vector<256x128xf32>
    %c2 = arith.constant 2 : index
    %c0_41 = arith.constant 0 : index
    %c0_42 = arith.constant 0 : index
    %37 = vector.load %arg7[%c2, %c0_41, %c0_42] : memref<18x16x384xbf16, #tpu.memory_space<vmem>>, vector<16x16x384xbf16>
    %38 = vector.shape_cast %37 : vector<16x16x384xbf16> to vector<256x384xbf16>
    %c2_43 = arith.constant 2 : index
    %c0_44 = arith.constant 0 : index
    %c0_45 = arith.constant 0 : index
    %39 = vector.load %arg2[%c2_43, %c0_44, %c0_45] : memref<3x384x128xbf16, #tpu.memory_space<vmem>>, vector<1x384x128xbf16>
    %40 = vector.shape_cast %39 : vector<1x384x128xbf16> to vector<384x128xbf16>
    %cst_46 = arith.constant dense<0.000000e+00> : vector<256x128xf32>
    %41 = tpu.matmul %38, %40, %cst_46 {dimension_numbers = #tpu.dot_dimension_numbers<[1], [0], [0], [1], [0, 0, 1, 1], [], []>} : vector<256x384xbf16>, vector<384x128xbf16>, vector<256x128xf32> -> vector<256x128xf32>
    %42 = arith.addf %36, %41 : vector<256x128xf32>
    %43 = vector.broadcast %9 : vector<1x128xf32> to vector<256x128xf32>
    %44 = arith.mulf %42, %43 : vector<256x128xf32>
    %45 = vector.broadcast %10 : vector<1x128xf32> to vector<256x128xf32>
    %46 = arith.addf %44, %45 : vector<256x128xf32>
    %cst_47 = arith.constant 0.000000e+00 : f32
    %47 = vector.broadcast %cst_47 : f32 to vector<256x128xf32>
    %48 = arith.cmpf ogt, %46, %47 : vector<256x128xf32>
    %c64_i32 = arith.constant 64 : i32
    %49 = vector.broadcast %c64_i32 : i32 to vector<256x128xi32>
    %50 = arith.cmpi sge, %13, %49 : vector<256x128xi32>
    %51 = arith.ori %48, %50 : vector<256x128xi1>
    %cst_48 = arith.constant 1.000000e-01 : f32
    %52 = vector.broadcast %cst_48 : f32 to vector<256x128xf32>
    %53 = arith.mulf %52, %46 : vector<256x128xf32>
    %54 = arith.select %51, %46, %53 : vector<256x128xi1>, vector<256x128xf32>
    %55 = vector.extract_strided_slice %54 {offsets = [0, 64], sizes = [256, 64], strides = [1, 1]} : vector<256x128xf32> to vector<256x64xf32>
    %56 = vector.extract_strided_slice %54 {offsets = [0, 0], sizes = [256, 64], strides = [1, 1]} : vector<256x128xf32> to vector<256x64xf32>
    %57 = arith.truncf %56 : vector<256x64xf32> to vector<256x64xbf16>
    %58 = vector.shape_cast %57 : vector<256x64xbf16> to vector<16x16x64xbf16>
    %cst_49 = arith.constant 0.000000e+00 : bf16
    %59 = vector.broadcast %cst_49 : bf16 to vector<16x1x64xbf16>
    %60 = vector.extract_strided_slice %58 {offsets = [0, 0, 0], sizes = [16, 15, 64], strides = [1, 1, 1]} : vector<16x16x64xbf16> to vector<16x15x64xbf16>
    %61 = tpu.concatenate %59, %60 in 1 : vector<16x1x64xbf16>, vector<16x15x64xbf16> -> vector<16x16x64xbf16>
    %62 = vector.extract_strided_slice %58 {offsets = [0, 1, 0], sizes = [16, 15, 64], strides = [1, 1, 1]} : vector<16x16x64xbf16> to vector<16x15x64xbf16>
    %63 = tpu.concatenate %62, %59 in 1 : vector<16x15x64xbf16>, vector<16x1x64xbf16> -> vector<16x16x64xbf16>
    %64 = tpu.concatenate %61, %58 in 2 : vector<16x16x64xbf16>, vector<16x16x64xbf16> -> vector<16x16x128xbf16>
    %c1_50 = arith.constant 1 : index
    %c0_51 = arith.constant 0 : index
    %c0_52 = arith.constant 0 : index
    %65 = vector.load %arg8[%c1_50, %c0_51, %c0_52] : memref<18x16x192xbf16, #tpu.memory_space<vmem>>, vector<16x16x128xbf16>
    tpu.vector_store %arg8[%c1_50, %c0_51, %c0_52], %64 {strides = array<i32>} : memref<18x16x192xbf16, #tpu.memory_space<vmem>>, vector<16x16x128xbf16>,
    %c1_53 = arith.constant 1 : index
    %c0_54 = arith.constant 0 : index
    %c128_55 = arith.constant 128 : index
    %66 = vector.load %arg8[%c1_53, %c0_54, %c128_55] : memref<18x16x192xbf16, #tpu.memory_space<vmem>>, vector<16x16x64xbf16>
    tpu.vector_store %arg8[%c1_53, %c0_54, %c128_55], %63 {strides = array<i32>} : memref<18x16x192xbf16, #tpu.memory_space<vmem>>, vector<16x16x64xbf16>,
    %cst_56 = arith.constant 0.000000e+00 : f32
    %67 = vector.broadcast %cst_56 : f32 to vector<256x64xf32>
    %c0_57 = arith.constant 0 : index
    %c0_58 = arith.constant 0 : index
    %c0_59 = arith.constant 0 : index
    %68 = vector.load %arg8[%c0_57, %c0_58, %c0_59] : memref<18x16x192xbf16, #tpu.memory_space<vmem>>, vector<16x16x192xbf16>
    %69 = vector.shape_cast %68 : vector<16x16x192xbf16> to vector<256x192xbf16>
    %c0_60 = arith.constant 0 : index
    %c0_61 = arith.constant 0 : index
    %c0_62 = arith.constant 0 : index
    %70 = vector.load %arg3[%c0_60, %c0_61, %c0_62] : memref<3x192x64xbf16, #tpu.memory_space<vmem>>, vector<1x192x64xbf16>
    %71 = vector.shape_cast %70 : vector<1x192x64xbf16> to vector<192x64xbf16>
    %cst_63 = arith.constant dense<0.000000e+00> : vector<256x64xf32>
    %72 = tpu.matmul %69, %71, %cst_63 {dimension_numbers = #tpu.dot_dimension_numbers<[1], [0], [0], [1], [0, 0, 1, 1], [], []>} : vector<256x192xbf16>, vector<192x64xbf16>, vector<256x64xf32> -> vector<256x64xf32>
    %73 = arith.addf %67, %72 : vector<256x64xf32>
    %c1_64 = arith.constant 1 : index
    %c0_65 = arith.constant 0 : index
    %c0_66 = arith.constant 0 : index
    %74 = vector.load %arg8[%c1_64, %c0_65, %c0_66] : memref<18x16x192xbf16, #tpu.memory_space<vmem>>, vector<16x16x192xbf16>
    %75 = vector.shape_cast %74 : vector<16x16x192xbf16> to vector<256x192xbf16>
    %c1_67 = arith.constant 1 : index
    %c0_68 = arith.constant 0 : index
    %c0_69 = arith.constant 0 : index
    %76 = vector.load %arg3[%c1_67, %c0_68, %c0_69] : memref<3x192x64xbf16, #tpu.memory_space<vmem>>, vector<1x192x64xbf16>
    %77 = vector.shape_cast %76 : vector<1x192x64xbf16> to vector<192x64xbf16>
    %cst_70 = arith.constant dense<0.000000e+00> : vector<256x64xf32>
    %78 = tpu.matmul %75, %77, %cst_70 {dimension_numbers = #tpu.dot_dimension_numbers<[1], [0], [0], [1], [0, 0, 1, 1], [], []>} : vector<256x192xbf16>, vector<192x64xbf16>, vector<256x64xf32> -> vector<256x64xf32>
    %79 = arith.addf %73, %78 : vector<256x64xf32>
    %c2_71 = arith.constant 2 : index
    %c0_72 = arith.constant 0 : index
    %c0_73 = arith.constant 0 : index
    %80 = vector.load %arg8[%c2_71, %c0_72, %c0_73] : memref<18x16x192xbf16, #tpu.memory_space<vmem>>, vector<16x16x192xbf16>
    %81 = vector.shape_cast %80 : vector<16x16x192xbf16> to vector<256x192xbf16>
    %c2_74 = arith.constant 2 : index
    %c0_75 = arith.constant 0 : index
    %c0_76 = arith.constant 0 : index
    %82 = vector.load %arg3[%c2_74, %c0_75, %c0_76] : memref<3x192x64xbf16, #tpu.memory_space<vmem>>, vector<1x192x64xbf16>
    %83 = vector.shape_cast %82 : vector<1x192x64xbf16> to vector<192x64xbf16>
    %cst_77 = arith.constant dense<0.000000e+00> : vector<256x64xf32>
    %84 = tpu.matmul %81, %83, %cst_77 {dimension_numbers = #tpu.dot_dimension_numbers<[1], [0], [0], [1], [0, 0, 1, 1], [], []>} : vector<256x192xbf16>, vector<192x64xbf16>, vector<256x64xf32> -> vector<256x64xf32>
    %85 = arith.addf %79, %84 : vector<256x64xf32>
    %86 = vector.broadcast %11 : vector<1x64xf32> to vector<256x64xf32>
    %87 = arith.mulf %85, %86 : vector<256x64xf32>
    %88 = vector.broadcast %12 : vector<1x64xf32> to vector<256x64xf32>
    %89 = arith.addf %87, %88 : vector<256x64xf32>
    %90 = arith.addf %89, %55 : vector<256x64xf32>
    %cst_78 = arith.constant 0.000000e+00 : f32
    %91 = vector.broadcast %cst_78 : f32 to vector<256x64xf32>
    %92 = arith.cmpf ogt, %90, %91 : vector<256x64xf32>
    %cst_79 = arith.constant 1.000000e-01 : f32
    %93 = vector.broadcast %cst_79 : f32 to vector<256x64xf32>
    %94 = arith.mulf %93, %90 : vector<256x64xf32>
    %95 = arith.select %92, %90, %94 : vector<256x64xi1>, vector<256x64xf32>
    %96 = vector.shape_cast %95 : vector<256x64xf32> to vector<8x2x16x64xf32>
    %97 = vector.extract_strided_slice %96 {offsets = [0, 0, 0, 0], sizes = [8, 1, 16, 64], strides = [1, 1, 1, 1]} : vector<8x2x16x64xf32> to vector<8x1x16x64xf32>
    %98 = vector.shape_cast %97 : vector<8x1x16x64xf32> to vector<8x16x64xf32>
    %99 = vector.extract_strided_slice %96 {offsets = [0, 1, 0, 0], sizes = [8, 1, 16, 64], strides = [1, 1, 1, 1]} : vector<8x2x16x64xf32> to vector<8x1x16x64xf32>
    %100 = vector.shape_cast %99 : vector<8x1x16x64xf32> to vector<8x16x64xf32>
    %101 = arith.maximumf %98, %100 : vector<8x16x64xf32>
    %102 = vector.extract_strided_slice %101 {offsets = [0, 1, 0], sizes = [8, 15, 64], strides = [1, 1, 1]} : vector<8x16x64xf32> to vector<8x15x64xf32>
    %103 = vector.extract_strided_slice %101 {offsets = [0, 15, 0], sizes = [8, 1, 64], strides = [1, 1, 1]} : vector<8x16x64xf32> to vector<8x1x64xf32>
    %104 = tpu.concatenate %102, %103 in 1 : vector<8x15x64xf32>, vector<8x1x64xf32> -> vector<8x16x64xf32>
    %105 = arith.maximumf %101, %104 : vector<8x16x64xf32>
    %106 = vector.shape_cast %105 : vector<8x16x64xf32> to vector<128x64xf32>
    %c0_80 = arith.constant 0 : index
    %c0_81 = arith.constant 0 : index
    %107 = vector.load %arg5[%c0_80, %c0_81] : memref<128x8xf32, #tpu.memory_space<vmem>>, vector<128x8xf32>
    %cst_82 = arith.constant dense<0.000000e+00> : vector<64x8xf32>
    %108 = tpu.matmul %106, %107, %cst_82 {dimension_numbers = #tpu.dot_dimension_numbers<[0], [0], [1], [1], [0, 1, 1, 1], [], []>} : vector<128x64xf32>, vector<128x8xf32>, vector<64x8xf32> -> vector<64x8xf32>
    %c0_83 = arith.constant 0 : index
    %c0_84 = arith.constant 0 : index
    %c0_85 = arith.constant 0 : index
    %109 = vector.load %arg6[%c0_83, %c0_84, %c0_85] : memref<1x64x8xf32, #tpu.memory_space<vmem>>, vector<1x64x8xf32>
    %110 = vector.shape_cast %109 : vector<1x64x8xf32> to vector<64x8xf32>
    %111 = vector.shape_cast %108 : vector<64x8xf32> to vector<1x64x8xf32>
    tpu.vector_store %arg6[%c0_83, %c0_84, %c0_85], %111 {strides = array<i32>} : memref<1x64x8xf32, #tpu.memory_space<vmem>>, vector<1x64x8xf32>,
    return
  }
  func.func @transform_0(%arg0: i32) -> (i32, i32, i32, i32) {
    %c0_i32 = arith.constant 0 : i32
    %c0_i32_0 = arith.constant 0 : i32
    %c0_i32_1 = arith.constant 0 : i32
    %c0_i32_2 = arith.constant 0 : i32
    return %arg0, %c0_i32, %c0_i32_0, %c0_i32_1 : i32, i32, i32, i32
  }
  func.func @transform_1(%arg0: i32) -> (i32, i32, i32) {
    %c0_i32 = arith.constant 0 : i32
    %c0_i32_0 = arith.constant 0 : i32
    %c0_i32_1 = arith.constant 0 : i32
    %c0_i32_2 = arith.constant 0 : i32
    return %c0_i32, %c0_i32_0, %c0_i32_1 : i32, i32, i32
  }
  func.func @transform_2(%arg0: i32) -> (i32, i32, i32) {
    %c0_i32 = arith.constant 0 : i32
    %c0_i32_0 = arith.constant 0 : i32
    %c0_i32_1 = arith.constant 0 : i32
    %c0_i32_2 = arith.constant 0 : i32
    return %c0_i32, %c0_i32_0, %c0_i32_1 : i32, i32, i32
  }
  func.func @transform_3(%arg0: i32) -> (i32, i32) {
    %c0_i32 = arith.constant 0 : i32
    %c0_i32_0 = arith.constant 0 : i32
    %c0_i32_1 = arith.constant 0 : i32
    return %c0_i32, %c0_i32_0 : i32, i32
  }
  func.func @transform_4(%arg0: i32) -> (i32, i32) {
    %c0_i32 = arith.constant 0 : i32
    %c0_i32_0 = arith.constant 0 : i32
    %c0_i32_1 = arith.constant 0 : i32
    return %c0_i32, %c0_i32_0 : i32, i32
  }
  func.func @transform_5(%arg0: i32) -> (i32, i32, i32) {
    %c0_i32 = arith.constant 0 : i32
    %c0_i32_0 = arith.constant 0 : i32
    %c0_i32_1 = arith.constant 0 : i32
    return %arg0, %c0_i32, %c0_i32_0 : i32, i32, i32
  }
}

</mosaic_0001>

<bundles_post_ra>
// kernel: light_model_forward.1
= control target key start
LH: loop header
LB: loop body
LE: loop exit
PB: predicated region body
PF: predicated region fallthrough
CT: control target
= control target key end

     0   :  { %s8382_s18 = smov 0   ;;  %s10722_s0 = inlined_call_operand.vmem [shape: bf16[2,16,16,128], index: 0, kind: input, shape index: {}]   ;;  %s10723_s1 = inlined_call_operand.vmem [shape: bf16[3,384,128], index: 1, kind: input, shape index: {}]   ;;  %s10724_s2 = inlined_call_operand.vmem [shape: bf16[3,192,64], index: 2, kind: input, shape index: {}]   ;;  %s10725_s3 = inlined_call_operand.vmem [shape: f32[8,128], index: 3, kind: input, shape index: {}]   ;;  %s10726_s4 = inlined_call_operand.vmem [shape: f32[128,8], index: 4, kind: input, shape index: {}]   ;;  %s10727_s5 = inlined_call_operand.vmem [shape: f32[2,64,8], index: 5, kind: output, shape index: {}]  }
   0x1 LB: > { %s6252_s19 = sadd.s32 4294967295, %s8347_s18   ;;  %p6256_p0 = scmp.ge.s32.totalorder %s8347_s18, 1  ;;  %s8347_s18 = sphi %s8382_s18, %s15_s18  }
   0x2   : > { %p187_p1 = scmp.lt.s32.totalorder %s8347_s18, 3 }
   0x4   : > { %p188_p2 = pnand %p6256_p0, %p187_p1 }
   0x6   : > { %191 = sbr.rel (%p188_p2) target bundleno = 1698 (0x6a2), region = 40 }
   0xb   : > { %v8056_v0 = vld [vmem:[%s10723_s1 + $0xf8] sm:$0xff]  ;;  %p215_p3 = scmp.lt.s32.totalorder %s6252_s19, 1  ;;  %v8055_v3 = vld [vmem:[%s10723_s1 + $0xf0] sm:$0xff]  ;;  %v8054_v6 = vld [vmem:[%s10723_s1 + $0xe8] sm:$0xff]  ;;  %vm487_vm0 = vsmask.f32 256 }
   0xc   : > { %v8396_v1 = vld [vmem:[%s10723_s1 + $0x138] sm:$0xff]  ;;  %1518 = vmatpush.bf16.msra.mxu0 %v8056_v0  ;;  %8277 = vmatpush.bf16.msra.mxu3 %v8056_v0  ;;  %v8413_v4 = vld [vmem:[%s10723_s1 + $0x130] sm:$0xff]  ;;  %v8434_v7 = vld [vmem:[%s10723_s1 + $0x128] sm:$0xff]  ;;  %vm486_vm1 = vcmask 1040384   ;;  %vm731_vm2 = vsmask.f32 7424 }
   0xd   : > { %v8401_v2 = vld [vmem:[%s10723_s1 + $0x178] sm:$0xff]  ;;  %s10857_s19 = smov (!%p215_p3, %s6252_s19), 1  ;;  %1607 = vmatpush.bf16.msra.mxu1 %v8396_v1  ;;  %v8418_v5 = vld [vmem:[%s10723_s1 + $0x170] sm:$0xff]  ;;  %v8439_v8 = vld [vmem:[%s10723_s1 + $0x168] sm:$0xff]  ;;  %vm730_vm3 = vcmask 1047552   ;;  %s8350_s29 = smov 64  }
   0xe   : > { %1696 = vmatpush.bf16.msra.mxu2 %v8401_v2  ;;  %s7911_s7 = sshll.u32 %s10857_s19, 7  ;;  %v8053_v9 = vld [vmem:[%s10723_s1 + $0xe0] sm:$0xff]  ;;  %vm8470_vm4 = vmand %vm486_vm1, %vm487_vm0  ;;  %v8052_v33 = vld [vmem:[%s10723_s1 + $0xd8] sm:$0xff]  ;;  %vm4118_vm14 = vcmask 519168   ;;  %s7912_s27 = sshll.u32 %s10857_s19, 6 }
   0xf   : > { %s8424_s10 = scalar_lea.vmem %s10722_s0, %s7911_s7  ;;  %v8451_v12 = vld [vmem:[%s10723_s1 + $0x120] sm:$0xff]  ;;  %vm8479_vm5 = vmand %vm730_vm3, %vm731_vm2  ;;  %v8492_v34 = vld [vmem:[%s10723_s1 + $0x118] sm:$0xff]  ;;  %vm3812_vm2 = vcmask 523264   ;;  %s224_s6 = scalar_lea.vmem %s10727_s5, %s7912_s27 }
  0x10   : > { %1519 = vmatpush.bf16.msra.mxu0 %v8055_v3  ;;  %8278 = vmatpush.bf16.msra.mxu3 %v8055_v3  ;;  %v7913_v10 = vld [vmem:[%s8424_s10] sm:$0xff]  ;;  %v8446_v11 = vld [vmem:[%s8424_s10 + $0x68] sm:$0xff]  ;;  %v8466_v21 = vld [vmem:[%s8424_s10 + $0x70] sm:$0xff] }
  0x11   : > { %1608 = vmatpush.bf16.msra.mxu1 %v8413_v4  ;;  %v246_v13 = vld [vmem:[%s8424_s10] sm:$0xf]  ;;  %v247_v14 = vld [vmem:[%s8424_s10 + $0x4] sm:$0xf]  ;;  %v359_v15 = vshrl.u32 %v7913_v10, 16  ;;  %v362_v16 = vshll.u32 %v7913_v10, 16 }
  0x12   : > { %1697 = vmatpush.bf16.msra.mxu2 %v8418_v5  ;;  %v450_v17 = vshrl.u32 %v8446_v11, 16  ;;  %v453_v18 = vshll.u32 %v8446_v11, 16  ;;  %650 = vst [vmem:[#allocation2 + $0x1c] sm:$0xf] %v246_v13  ;;  %v8462_v19 = vld [vmem:[%s10723_s1 + $0x160] sm:$0xff]  ;;  %v7914_v20 = vld [vmem:[%s8424_s10 + $0x8] sm:$0xff] }
  0x13   : > { %651 = vst [vmem:[#allocation2 + $0x28] sm:$0xf] %v247_v14  ;;  %v361_v22 = vrot.slane %v359_v15, 7  ;;  %v682_v25 = vrot.slane %v362_v16, 1  ;;  %v248_v26 = vld [vmem:[%s8424_s10 + $0x8] sm:$0xf] }
  0x14   : > { %1520 = vmatpush.bf16.msra.mxu0 %v8054_v6  ;;  %8279 = vmatpush.bf16.msra.mxu3 %v8054_v6  ;;  %v452_v24 = vrot.slane %v450_v17, 7  ;;  %v366_v28 = vshrl.u32 %v7914_v20, 16  ;;  %v369_v29 = vshll.u32 %v7914_v20, 16  ;;  %v457_v30 = vshrl.u32 %v8466_v21, 16  ;;  %v249_v32 = vld [vmem:[%s8424_s10 + $0xc] sm:$0xf] }
  0x15   : > { %1609 = vmatpush.bf16.msra.mxu1 %v8434_v7  ;;  %v460_v31 = vshll.u32 %v8466_v21, 16  ;;  %v364_v35 = vor.u32 %v362_v16, %v361_v22  ;;  %v683_v37 = vor.u32 %v682_v25, %v359_v15  ;;  %652 = vst [vmem:[#allocation2 + $0x34] sm:$0xf] %v248_v26  ;;  %v8497_v38 = vld [vmem:[%s8424_s10 + $0x10] sm:$0xff]  ;;  %v8504_v39 = vld [vmem:[%s10723_s1 + $0x158] sm:$0xff]  ;;  %v8050_v13 = vld [vmem:[%s10723_s1 + $0xc8] sm:$0xff] }
  0x16   : > { %1698 = vmatpush.bf16.msra.mxu2 %v8439_v8  ;;  %v455_v36 = vor.u32 %v453_v18, %v452_v24  ;;  %v368_v40 = vrot.slane %v366_v28, 7  ;;  %v459_v41 = vrot.slane %v457_v30, 7  ;;  %653 = vst [vmem:[#allocation2 + $0x40] sm:$0xf] %v249_v32  ;;  %v684_v42 = vrot.slane %v369_v29, 1  ;;  %v8051_v51 = vld [vmem:[%s10723_s1 + $0xd0] sm:$0xff] }
  0x17   : > { %v489_v43 = vsel %vm8470_vm4, 0, %v364_v35  ;;  %v733_v45 = vsel %vm8479_vm5, %v683_v37, 0  ;;  %v373_v46 = vshrl.u32 %v8497_v38, 16  ;;  %v8525_v56 = vld [vmem:[%s10723_s1 + $0x110] sm:$0xff]  ;;  %v8533_v61 = vld [vmem:[%s8424_s10 + $0x78] sm:$0xff]  ;;  %v8547_v14 = vld [vmem:[%s10723_s1 + $0x108] sm:$0xff] }
  0x18   : > { %1521 = vmatpush.bf16.msra.mxu0 %v8053_v9  ;;  %8280 = vmatpush.bf16.msra.mxu3 %v8053_v9  ;;  %v502_v44 = vsel %vm8470_vm4, 0, %v455_v36  ;;  %v521_v47 = vunpack.c.l.b16 %v489_v43  ;;  %v522_v48 = vunpack.c.h.b16 %v489_v43  ;;  %v765_v52 = vunpack.c.l.b16 %v733_v45  ;;  %v8530_v57 = vld [vmem:[%s10723_s1 + $0x150] sm:$0xff]  ;;  %v8554_v24 = vld [vmem:[%s10723_s1 + $0x148] sm:$0xff]  ;;  %v8049_v35 = vld [vmem:[%s10723_s1 + $0xc0] sm:$0xff] }
  0x19   : > { %1610 = vmatpush.bf16.msra.mxu1 %v8451_v12  ;;  %v547_v49 = vunpack.c.l.b16 %v502_v44  ;;  %v548_v50 = vunpack.c.h.b16 %v502_v44  ;;  %v766_v53 = vunpack.c.h.b16 %v733_v45  ;;  %v371_v54 = vor.u32 %v369_v29, %v368_v40  ;;  %v8001_v36 = vld [vmem:[#allocation2 + $0x1c] sm:$0xf] }
  0x1a   : > { %1699 = vmatpush.bf16.msra.mxu2 %v8462_v19  ;;  %v462_v55 = vor.u32 %v460_v31, %v459_v41  ;;  %v553_v58 = vpack.c.b16 %v521_v47, %v521_v47  ;;  %v554_v59 = vpack.c.b16 %v522_v48, %v522_v48  ;;  %v797_v63 = vpack.c.b16 %v765_v52, %v765_v52  ;;  %v6377_v43 = vld [vmem:[#allocation2 + $0x24] sm:$0xf0]  ;;  %v8571_v48 = vld [vmem:[%s10723_s1 + $0x100] sm:$0xff] }
  0x1b   : > { %v579_v60 = vpack.c.b16 %v547_v49, %v547_v49  ;;  %v580_v62 = vpack.c.b16 %v548_v50, %v548_v50  ;;  %v375_v0 = vrot.slane %v373_v46, 7  ;;  %v798_v3 = vpack.c.b16 %v766_v53, %v766_v53  ;;  %v8576_v49 = vld [vmem:[%s10723_s1 + $0x140] sm:$0xff] }
  0x1c   : > { %1522 = vmatpush.bf16.msra.mxu0 %v8052_v33  ;;  %8281 = vmatpush.bf16.msra.mxu3 %v8052_v33  ;;  %618 = vst [vmem:[#allocation2 + $0x18] sm:$0xf] %v553_v58  ;;  %v490_v6 = vsel %vm8470_vm4, 0, %v371_v54  ;;  %v503_v9 = vsel %vm8470_vm4, 0, %v462_v55  ;;  %v685_v10 = vor.u32 %v684_v42, %v366_v28  ;;  %v376_v26 = vshll.u32 %v8497_v38, 16  ;;  %v7992_v54 = vld [vmem:[%s10723_s1 + $0x78] sm:$0xff] }
  0x1d   : > { %1611 = vmatpush.bf16.msra.mxu1 %v8492_v34  ;;  %619 = vst [vmem:[#allocation2 + $0x24] sm:$0xf] %v554_v59  ;;  %v523_v15 = vunpack.c.l.b16 %v490_v6  ;;  %v524_v16 = vunpack.c.h.b16 %v490_v6  ;;  %v549_v20 = vunpack.c.l.b16 %v503_v9  ;;  %v550_v22 = vunpack.c.h.b16 %v503_v9  ;;  %v7991_v9 = vld [vmem:[%s10723_s1 + $0x70] sm:$0xff] }
  0x1e   : > { %1700 = vmatpush.bf16.msra.mxu2 %v8504_v39  ;;  %644 = vst [vmem:[#allocation2 + $0x150] sm:$0xf] %v579_v60  ;;  %v734_v25 = vsel %vm8479_vm5, %v685_v10, 0  ;;  %v464_v28 = vshrl.u32 %v8533_v61, 16  ;;  %v378_v41 = vor.u32 %v376_v26, %v375_v0  ;;  %v467_v45 = vshll.u32 %v8533_v61, 16  ;;  %v7916_v0 = vld [vmem:[%s8424_s10 + $0x18] sm:$0xff] }
  0x1f   : > { %645 = vst [vmem:[#allocation2 + $0x15c] sm:$0xf] %v580_v62  ;;  %v555_v29 = vpack.c.b16 %v523_v15, %v523_v15  ;;  %v556_v32 = vpack.c.b16 %v524_v16, %v524_v16  ;;  %v581_v33 = vpack.c.b16 %v549_v20, %v549_v20  ;;  %v767_v37 = vunpack.c.l.b16 %v734_v25 }
  0x20   : > { %1523 = vmatpush.bf16.msra.mxu0 %v8051_v51  ;;  %8282 = vmatpush.bf16.msra.mxu3 %v8051_v51  ;;  %861 = vst [vmem:[#allocation2 + $0x20] sm:$0xf] %v797_v63  ;;  %v768_v40 = vunpack.c.h.b16 %v734_v25  ;;  %v466_v42 = vrot.slane %v464_v28, 7  ;;  %v582_v44 = vpack.c.b16 %v550_v22, %v550_v22  ;;  %v686_v47 = vrot.slane %v376_v26, 1  ;;  %v250_v26 = vld [vmem:[%s8424_s10 + $0x10] sm:$0xf] }
  0x21   : > { %1612 = vmatpush.bf16.msra.mxu1 %v8525_v56  ;;  %862 = vst [vmem:[#allocation2 + $0x2c] sm:$0xf] %v798_v3  ;;  %v799_v50 = vpack.c.b16 %v767_v37, %v767_v37  ;;  %v491_v52 = vsel %vm8470_vm4, 0, %v378_v41  ;;  %v6380_v63 = vor.u32 %v8001_v36, %v6377_v43  ;;  %v383_v36 = vshll.u32 %v7916_v0, 16 }
  0x22   : > { %1701 = vmatpush.bf16.msra.mxu2 %v8530_v57  ;;  %620 = vst [vmem:[#allocation2 + $0x30] sm:$0xf] %v555_v29  ;;  %v800_v51 = vpack.c.b16 %v768_v40, %v768_v40  ;;  %v525_v55 = vunpack.c.l.b16 %v491_v52  ;;  %v526_v58 = vunpack.c.h.b16 %v491_v52  ;;  %v469_v59 = vor.u32 %v467_v45, %v466_v42  ;;  %v251_v42 = vld [vmem:[%s8424_s10 + $0x14] sm:$0xf] }
  0x23   : > { %v6375_v53 = vld [vmem:[#allocation2 + $0x18] sm:$0xf]  ;;  %621 = vst [vmem:[#allocation2 + $0x3c] sm:$0xf] %v556_v32  ;;  %v687_v60 = vor.u32 %v686_v47, %v373_v46  ;;  %v688_v47 = vrot.slane %v383_v36, 1 }
  0x24   : > { %1524 = vmatpush.bf16.msra.mxu0 %v8050_v13  ;;  %8283 = vmatpush.bf16.msra.mxu3 %v8050_v13  ;;  %v8002_v62 = vld [vmem:[#allocation2 + $0x20] sm:$0xf0]  ;;  %646 = vst [vmem:[#allocation2 + $0x168] sm:$0xf] %v581_v33  ;;  %v557_v10 = vpack.c.b16 %v525_v55, %v525_v55  ;;  %v558_v13 = vpack.c.b16 %v526_v58, %v526_v58  ;;  %v504_v46 = vsel %vm8470_vm4, 0, %v469_v59 }
  0x25   : > { %1613 = vmatpush.bf16.msra.mxu1 %v8547_v14  ;;  %v6376_v3 = vor.u32 %v8002_v62, %v6375_v53  ;;  %v6531_v6 = vld [vmem:[#allocation2 + $0x150] sm:$0xf]  ;;  %647 = vst [vmem:[#allocation2 + $0x174] sm:$0xf] %v582_v44  ;;  %v735_v15 = vsel %vm8479_vm5, %v687_v60, 0  ;;  %v551_v22 = vunpack.c.l.b16 %v504_v46  ;;  %v552_v25 = vunpack.c.h.b16 %v504_v46 }
  0x26   : > { %1702 = vmatpush.bf16.msra.mxu2 %v8554_v24  ;;  %v8041_v38 = vld [vmem:[#allocation2 + $0x158] sm:$0xf0]  ;;  %863 = vst [vmem:[#allocation2 + $0x38] sm:$0xf] %v799_v50  ;;  %v769_v29 = vunpack.c.l.b16 %v735_v15  ;;  %v770_v33 = vunpack.c.h.b16 %v735_v15  ;;  %v8004_v60 = vld [vmem:[#allocation2 + $0x34] sm:$0xf] }
  0x27   : > { %v6532_v16 = vor.u32 %v8041_v38, %v6531_v6  ;;  %v6383_v20 = vld [vmem:[#allocation2 + $0x20] sm:$0xf]  ;;  %864 = vst [vmem:[#allocation2 + $0x44] sm:$0xf] %v800_v51  ;;  %v583_v40 = vpack.c.b16 %v551_v22, %v551_v22  ;;  %v584_v41 = vpack.c.b16 %v552_v25, %v552_v25  ;;  %v272_v38 = vld [vmem:[%s8424_s10 + $0x68] sm:$0xf] }
  0x28   : > { %1525 = vmatpush.bf16.msra.mxu0 %v8049_v35  ;;  %8284 = vmatpush.bf16.msra.mxu3 %v8049_v35  ;;  %v8003_v32 = vld [vmem:[#allocation2 + $0x28] sm:$0xf0]  ;;  %622 = vst [vmem:[#allocation2 + $0x48] sm:$0xf] %v557_v10  ;;  %v380_v35 = vshrl.u32 %v7916_v0, 16  ;;  %v801_v43 = vpack.c.b16 %v769_v29, %v769_v29  ;;  %v802_v50 = vpack.c.b16 %v770_v33, %v770_v33 }
  0x29   : > { %1614 = vmatpush.bf16.msra.mxu1 %v8571_v48  ;;  %v6384_v37 = vor.u32 %v8003_v32, %v6383_v20  ;;  %623 = vst [vmem:[#allocation2 + $0x54] sm:$0xf] %v558_v13  ;;  %v6387_v59 = vld [vmem:[#allocation2 + $0x30] sm:$0xf]  ;;  %v6389_v62 = vld [vmem:[#allocation2 + $0x3c] sm:$0xf0] }
  0x2a   : > { %1703 = vmatpush.bf16.msra.mxu2 %v8576_v49  ;;  %654 = vst [vmem:[#allocation2 + $0x4c] sm:$0xf] %v250_v26  ;;  %v382_v44 = vrot.slane %v380_v35, 7  ;;  %v689_v52 = vor.u32 %v688_v47, %v380_v35  ;;  %v253_v0 = vld [vmem:[%s8424_s10 + $0x1c] sm:$0xf]  ;;  %v7917_v26 = vld [vmem:[%s8424_s10 + $0x20] sm:$0xff]  ;;  %v6392_v32 = vor.u32 %v8004_v60, %v6389_v62 }
  0x2b   : > { %1526 = vmatmul.bf16.vlgmr.msra.gmra.mxu0 %v6376_v3  ;;  %1591 = vmatmul.bf16.vlgmr.msra.gmra.mxu3 %v6532_v16  ;;  %648 = vst [vmem:[#allocation2 + $0x180] sm:$0xf] %v583_v40  ;;  %v6543_v6 = vld [vmem:[#allocation2 + $0x168] sm:$0xf]  ;;  %v273_v15 = vld [vmem:[%s8424_s10 + $0x6c] sm:$0xf] }
  0x2c   : > { %2274 = vmatpush.bf16.msrb.mxu0 %v7992_v54  ;;  %1615 = vmatmul.bf16.vlgmr.msra.gmra.mxu1 %v6380_v63  ;;  %649 = vst [vmem:[#allocation2 + $0x18c] sm:$0xf] %v584_v41  ;;  %v385_v51 = vor.u32 %v383_v36, %v382_v44  ;;  %v736_v53 = vsel %vm8479_vm5, %v689_v52, 0  ;;  %v252_v63 = vld [vmem:[%s8424_s10 + $0x18] sm:$0xf]  ;;  %v387_v33 = vshrl.u32 %v7917_v26, 16 }
  0x2d   : > { %8285 = vmatpush.bf16.msra.mxu3 %v8396_v1  ;;  %1704 = vmatmul.bf16.vlgmr.msra.gmra.mxu2 %v6384_v37  ;;  %655 = vst [vmem:[#allocation2 + $0x58] sm:$0xf] %v251_v42  ;;  %v771_v58 = vunpack.c.l.b16 %v736_v53  ;;  %v772_v3 = vunpack.c.h.b16 %v736_v53  ;;  %v8044_v13 = vld [vmem:[#allocation2 + $0x170] sm:$0xf0]  ;;  %v6395_v46 = vld [vmem:[#allocation2 + $0x38] sm:$0xf] }
  0x2e   : > { %865 = vst [vmem:[#allocation2 + $0x50] sm:$0xf] %v801_v43  ;;  %v492_v1 = vsel %vm8470_vm4, 0, %v385_v51  ;;  %v8006_v22 = vld [vmem:[#allocation2 + $0x40] sm:$0xf0]  ;;  %v6544_v29 = vor.u32 %v8044_v13, %v6543_v6  ;;  %v390_v35 = vshll.u32 %v7917_v26, 16 }
  0x2f   : > { %866 = vst [vmem:[#allocation2 + $0x5c] sm:$0xf] %v802_v50  ;;  %v527_v54 = vunpack.c.l.b16 %v492_v1  ;;  %v528_v55 = vunpack.c.h.b16 %v492_v1  ;;  %v803_v16 = vpack.c.b16 %v771_v58, %v771_v58  ;;  %v804_v25 = vpack.c.b16 %v772_v3, %v772_v3  ;;  %v255_v60 = vld [vmem:[%s8424_s10 + $0x24] sm:$0xf] }
  0x30   : > { %2275 = vmatpush.bf16.msrb.mxu0 %v7991_v9  ;;  %656 = vst [vmem:[#allocation2 + $0x64] sm:$0xf] %v252_v63  ;;  %v389_v36 = vrot.slane %v387_v33, 7  ;;  %v690_v37 = vrot.slane %v390_v35, 1  ;;  %v8008_v50 = vld [vmem:[#allocation2 + $0x50] sm:$0xf0] }
  0x31   : > { %8286 = vmatpush.bf16.msra.mxu3 %v8413_v4  ;;  %v8005_v4 = vld [vmem:[#allocation2 + $0x38] sm:$0xf0]  ;;  %v559_v9 = vpack.c.b16 %v527_v54, %v527_v54  ;;  %v560_v10 = vpack.c.b16 %v528_v55, %v528_v55  ;;  %657 = vst [vmem:[#allocation2 + $0x70] sm:$0xf] %v253_v0  ;;  %v8007_v54 = vld [vmem:[#allocation2 + $0x4c] sm:$0xf] }
  0x32   : > { %v6388_v20 = vor.u32 %v8005_v4, %v6387_v59  ;;  %676 = vst [vmem:[#allocation2 + $0x154] sm:$0xf] %v272_v38  ;;  %v392_v40 = vor.u32 %v390_v35, %v389_v36  ;;  %v691_v41 = vor.u32 %v690_v37, %v387_v33  ;;  %v6555_v53 = vld [vmem:[#allocation2 + $0x180] sm:$0xf]  ;;  %v275_v0 = vld [vmem:[%s8424_s10 + $0x74] sm:$0xf] }
  0x33   : > { %624 = vst [vmem:[#allocation2 + $0x60] sm:$0xf] %v559_v9  ;;  %v254_v55 = vld [vmem:[%s8424_s10 + $0x20] sm:$0xf]  ;;  %v8047_v59 = vld [vmem:[#allocation2 + $0x188] sm:$0xf0] }
  0x34   : > { %625 = vst [vmem:[#allocation2 + $0x6c] sm:$0xf] %v560_v10  ;;  %v493_v42 = vsel %vm8470_vm4, 0, %v392_v40  ;;  %v737_v43 = vsel %vm8479_vm5, %v691_v41, 0  ;;  %v6401_v62 = vld [vmem:[#allocation2 + $0x54] sm:$0xf0]  ;;  %v6556_v13 = vor.u32 %v8047_v59, %v6555_v53 }
  0x35   : > { %8287 = vmatpush.bf16.msra.mxu3 %v8434_v7  ;;  %677 = vst [vmem:[#allocation2 + $0x160] sm:$0xf] %v273_v15  ;;  %v6396_v7 = vor.u32 %v8006_v22, %v6395_v46  ;;  %v529_v44 = vunpack.c.l.b16 %v493_v42  ;;  %v530_v47 = vunpack.c.h.b16 %v493_v42  ;;  %v773_v1 = vunpack.c.l.b16 %v737_v43  ;;  %v6407_v63 = vld [vmem:[#allocation2 + $0x50] sm:$0xf]  ;;  %v7918_v10 = vld [vmem:[%s8424_s10 + $0x28] sm:$0xff]  ;;  %v7989_v26 = vld [vmem:[%s10723_s1 + $0x60] sm:$0xff] }
  0x36   : > { %867 = vst [vmem:[#allocation2 + $0x68] sm:$0xf] %v803_v16  ;;  %v774_v58 = vunpack.c.h.b16 %v737_v43  ;;  %v8009_v6 = vld [vmem:[#allocation2 + $0x58] sm:$0xf0]  ;;  %v6404_v38 = vor.u32 %v8007_v54, %v6401_v62  ;;  %v394_v46 = vshrl.u32 %v7918_v10, 16  ;;  %v397_v15 = vshll.u32 %v7918_v10, 16 }
  0x37   : > { %868 = vst [vmem:[#allocation2 + $0x74] sm:$0xf] %v804_v25  ;;  %v561_v51 = vpack.c.b16 %v529_v44, %v529_v44  ;;  %v562_v52 = vpack.c.b16 %v530_v47, %v530_v47  ;;  %v805_v3 = vpack.c.b16 %v773_v1, %v773_v1  ;;  %v8010_v41 = vld [vmem:[#allocation2 + $0x64] sm:$0xf]  ;;  %v256_v42 = vld [vmem:[%s8424_s10 + $0x28] sm:$0xf] }
  0x38   : > { %658 = vst [vmem:[#allocation2 + $0x7c] sm:$0xf] %v254_v55  ;;  %v806_v9 = vpack.c.b16 %v774_v58, %v774_v58  ;;  %v396_v16 = vrot.slane %v394_v46, 7  ;;  %v257_v47 = vld [vmem:[%s8424_s10 + $0x2c] sm:$0xf]  ;;  %v7919_v58 = vld [vmem:[%s8424_s10 + $0x30] sm:$0xff] }
  0x39   : > { %8288 = vmatpush.bf16.msra.mxu3 %v8451_v12  ;;  %v7990_v12 = vld [vmem:[%s10723_s1 + $0x68] sm:$0xff]  ;;  %626 = vst [vmem:[#allocation2 + $0x78] sm:$0xf] %v561_v51  ;;  %v8040_v44 = vld [vmem:[#allocation2 + $0x154] sm:$0xf]  ;;  %v708_v62 = vrot.slane %v453_v18, 1 }
  0x3a   : > { %2276 = vmatpush.bf16.msrb.mxu0 %v7990_v12  ;;  %627 = vst [vmem:[#allocation2 + $0x84] sm:$0xf] %v562_v52  ;;  %v399_v22 = vor.u32 %v397_v15, %v396_v16  ;;  %v6411_v37 = vld [vmem:[#allocation2 + $0x60] sm:$0xf]  ;;  %v6413_v12 = vld [vmem:[#allocation2 + $0x6c] sm:$0xf0] }
  0x3b   : > { %1531 = vmatmul.bf16.gmra.mxu0 %v6388_v20  ;;  %1596 = vmatmul.bf16.gmra.mxu3 %v6544_v29  ;;  %659 = vst [vmem:[#allocation2 + $0x88] sm:$0xf] %v255_v60  ;;  %v692_v20 = vrot.slane %v397_v15, 1  ;;  %v8011_v40 = vld [vmem:[#allocation2 + $0x68] sm:$0xf0]  ;;  %v6416_v59 = vor.u32 %v8010_v41, %v6413_v12  ;;  %v709_v10 = vor.u32 %v708_v62, %v450_v17 }
  0x3c   : > { %1620 = vmatmul.bf16.gmra.mxu1 %v6392_v32  ;;  %679 = vst [vmem:[#allocation2 + $0x178] sm:$0xf] %v275_v0  ;;  %v277_v52 = vld [vmem:[%s8424_s10 + $0x7c] sm:$0xf]  ;;  %v6412_v53 = vor.u32 %v8011_v40, %v6411_v37 }
  0x3d   : > { %8289 = vmatpush.bf16.msra.mxu3 %v8492_v34  ;;  %1709 = vmatmul.bf16.gmra.mxu2 %v6396_v7  ;;  %v6399_v34 = vld [vmem:[#allocation2 + $0x48] sm:$0xf]  ;;  %869 = vst [vmem:[#allocation2 + $0x80] sm:$0xf] %v805_v3  ;;  %v693_v25 = vor.u32 %v692_v20, %v394_v46 }
  0x3e   : > { %v6400_v4 = vor.u32 %v8008_v50, %v6399_v34  ;;  %870 = vst [vmem:[#allocation2 + $0x8c] sm:$0xf] %v806_v9  ;;  %2277 = vmatpush.bf16.msrb.mxu0 %v7989_v26  ;;  %v6533_v34 = vld [vmem:[#allocation2 + $0x15c] sm:$0xf0]  ;;  %v276_v50 = vld [vmem:[%s8424_s10 + $0x78] sm:$0xf] }
  0x3f   : > { %v738_v29 = vsel %vm8479_vm5, %v693_v25, 0  ;;  %v6419_v51 = vld [vmem:[#allocation2 + $0x68] sm:$0xf]  ;;  %660 = vst [vmem:[#allocation2 + $0x94] sm:$0xf] %v256_v42  ;;  %v6536_v60 = vor.u32 %v8040_v44, %v6533_v34  ;;  %v7920_v42 = vld [vmem:[%s8424_s10 + $0x38] sm:$0xff] }
  0x40   : > { %v775_v36 = vunpack.c.l.b16 %v738_v29  ;;  %v776_v43 = vunpack.c.h.b16 %v738_v29  ;;  %v8012_v54 = vld [vmem:[#allocation2 + $0x70] sm:$0xf0]  ;;  %661 = vst [vmem:[#allocation2 + $0xa0] sm:$0xf] %v257_v47  ;;  %v6423_v11 = vld [vmem:[#allocation2 + $0x78] sm:$0xf] }
  0x41   : > { %8290 = vmatpush.bf16.msra.mxu3 %v8525_v56  ;;  %v274_v56 = vld [vmem:[%s8424_s10 + $0x70] sm:$0xf]  ;;  %680 = vst [vmem:[#allocation2 + $0x184] sm:$0xf] %v276_v50  ;;  %v6420_v0 = vor.u32 %v8012_v54, %v6419_v51  ;;  %v8013_v25 = vld [vmem:[#allocation2 + $0x7c] sm:$0xf] }
  0x42   : > { %678 = vst [vmem:[#allocation2 + $0x16c] sm:$0xf] %v274_v56  ;;  %v807_v1 = vpack.c.b16 %v775_v36, %v775_v36  ;;  %v808_v55 = vpack.c.b16 %v776_v43, %v776_v43  ;;  %v401_v56 = vshrl.u32 %v7919_v58, 16  ;;  %v258_v26 = vld [vmem:[%s8424_s10 + $0x30] sm:$0xf]  ;;  %v408_v47 = vshrl.u32 %v7920_v42, 16 }
  0x43   : > { %681 = vst [vmem:[#allocation2 + $0x190] sm:$0xf] %v277_v52  ;;  %v6425_v29 = vld [vmem:[#allocation2 + $0x84] sm:$0xf0]  ;;  %v411_v34 = vshll.u32 %v7920_v42, 16  ;;  %v710_v52 = vrot.slane %v460_v31, 1 }
  0x44   : > { %871 = vst [vmem:[#allocation2 + $0x98] sm:$0xf] %v807_v1  ;;  %v403_v3 = vrot.slane %v401_v56, 7  ;;  %v6431_v36 = vld [vmem:[#allocation2 + $0x80] sm:$0xf]  ;;  %v6428_v43 = vor.u32 %v8013_v25, %v6425_v29  ;;  %v712_v29 = vrot.slane %v467_v45, 1 }
  0x45   : > { %8291 = vmatpush.bf16.msra.mxu3 %v8547_v14  ;;  %v6408_v14 = vor.u32 %v8009_v6, %v6407_v63  ;;  %v404_v63 = vshll.u32 %v7919_v58, 16  ;;  %872 = vst [vmem:[#allocation2 + $0xa4] sm:$0xf] %v808_v55  ;;  %v8015_v41 = vld [vmem:[#allocation2 + $0x88] sm:$0xf0]  ;;  %v696_v51 = vrot.slane %v411_v34, 1  ;;  %v711_v54 = vor.u32 %v710_v52, %v457_v30 }
  0x46   : > { %662 = vst [vmem:[#allocation2 + $0xac] sm:$0xf] %v258_v26  ;;  %v6432_v50 = vor.u32 %v8015_v41, %v6431_v36 }
  0x47   : > { %v406_v6 = vor.u32 %v404_v63, %v403_v3  ;;  %v747_v62 = vsel %vm8479_vm5, %v711_v54, 0  ;;  %v260_v3 = vld [vmem:[%s8424_s10 + $0x38] sm:$0xf] }
  0x48   : > { %664 = vst [vmem:[#allocation2 + $0xc4] sm:$0xf] %v260_v3 }
  0x49   : > { %8292 = vmatpush.bf16.msra.mxu3 %v8571_v48  ;;  %v494_v48 = vsel %vm8470_vm4, 0, %v399_v22  ;;  %v495_v18 = vsel %vm8470_vm4, 0, %v406_v6  ;;  %v8014_v22 = vld [vmem:[#allocation2 + $0x80] sm:$0xf0]  ;;  %v794_v6 = vunpack.c.h.b16 %v747_v62 }
  0x4a   : > { %v531_v32 = vunpack.c.l.b16 %v494_v48  ;;  %v532_v33 = vunpack.c.h.b16 %v494_v48  ;;  %v533_v46 = vunpack.c.l.b16 %v495_v18  ;;  %v534_v15 = vunpack.c.h.b16 %v495_v18 }
  0x4b   : > { %1536 = vmatmul.bf16.gmra.mxu0 %v6400_v4  ;;  %1601 = vmatmul.bf16.gmra.mxu3 %v6556_v13  ;;  %v694_v4 = vrot.slane %v404_v63, 1  ;;  %v6424_v40 = vor.u32 %v8014_v22, %v6423_v11  ;;  %v826_v11 = vpack.c.b16 %v794_v6, %v794_v6  ;;  %v7987_v6 = vld [vmem:[%s10723_s1 + $0x50] sm:$0xff] }
  0x4c   : > { %1625 = vmatmul.bf16.gmra.mxu1 %v6404_v38  ;;  %v563_v35 = vpack.c.b16 %v531_v32, %v531_v32  ;;  %v564_v7 = vpack.c.b16 %v532_v33, %v532_v33  ;;  %v746_v38 = vsel %vm8479_vm5, %v709_v10, 0  ;;  %v565_v17 = vpack.c.b16 %v533_v46, %v533_v46  ;;  %v259_v32 = vld [vmem:[%s8424_s10 + $0x34] sm:$0xf]  ;;  %v261_v10 = vld [vmem:[%s8424_s10 + $0x3c] sm:$0xf] }
  0x4d   : > { %1714 = vmatmul.bf16.gmra.mxu2 %v6408_v14  ;;  %v695_v9 = vor.u32 %v694_v4, %v401_v56  ;;  %v566_v16 = vpack.c.b16 %v534_v15, %v534_v15  ;;  %v791_v20 = vunpack.c.l.b16 %v746_v38  ;;  %v792_v48 = vunpack.c.h.b16 %v746_v38  ;;  %663 = vst [vmem:[#allocation2 + $0xb8] sm:$0xf] %v259_v32  ;;  %v6557_v38 = vld [vmem:[#allocation2 + $0x18c] sm:$0xf0]  ;;  %v6443_v46 = vld [vmem:[#allocation2 + $0x98] sm:$0xf] }
  0x4e   : > { %628 = vst [vmem:[#allocation2 + $0x90] sm:$0xf] %v563_v35  ;;  %v8043_v35 = vld [vmem:[#allocation2 + $0x16c] sm:$0xf]  ;;  %v793_v4 = vunpack.c.l.b16 %v747_v62 }
  0x4f   : > { %629 = vst [vmem:[#allocation2 + $0x9c] sm:$0xf] %v564_v7  ;;  %v739_v13 = vsel %vm8479_vm5, %v695_v9, 0  ;;  %v6545_v7 = vld [vmem:[#allocation2 + $0x174] sm:$0xf0]  ;;  %v823_v37 = vpack.c.b16 %v791_v20, %v791_v20  ;;  %v824_v12 = vpack.c.b16 %v792_v48, %v792_v48 }
  0x50   : > { %v778_v14 = vunpack.c.h.b16 %v739_v13  ;;  %630 = vst [vmem:[#allocation2 + $0xa8] sm:$0xf] %v565_v17  ;;  %v6548_v44 = vor.u32 %v8043_v35, %v6545_v7  ;;  %v6437_v9 = vld [vmem:[#allocation2 + $0x9c] sm:$0xf0]  ;;  %v825_v15 = vpack.c.b16 %v793_v4, %v793_v4  ;;  %v8019_v61 = vld [vmem:[#allocation2 + $0xac] sm:$0xf] }
  0x51   : > { %631 = vst [vmem:[#allocation2 + $0xb4] sm:$0xf] %v566_v16  ;;  %v7921_v17 = vld [vmem:[%s8424_s10 + $0x40] sm:$0xff] }
  0x52   : > { %887 = vst [vmem:[#allocation2 + $0x158] sm:$0xf] %v823_v37  ;;  %v415_v22 = vshrl.u32 %v7921_v17, 16  ;;  %v418_v25 = vshll.u32 %v7921_v17, 16  ;;  %v8022_v17 = vld [vmem:[#allocation2 + $0xc4] sm:$0xf] }
  0x53   : > { %888 = vst [vmem:[#allocation2 + $0x164] sm:$0xf] %v824_v12 }
  0x54   : > { %665 = vst [vmem:[#allocation2 + $0xd0] sm:$0xf] %v261_v10  ;;  %v698_v48 = vrot.slane %v418_v25, 1 }
  0x55   : > { %v6435_v21 = vld [vmem:[#allocation2 + $0x90] sm:$0xf]  ;;  %889 = vst [vmem:[#allocation2 + $0x170] sm:$0xf] %v825_v15 }
  0x56   : > { %v8017_v63 = vld [vmem:[#allocation2 + $0x98] sm:$0xf0]  ;;  %890 = vst [vmem:[#allocation2 + $0x17c] sm:$0xf] %v826_v11 }
  0x57   : > { %v6447_v41 = vld [vmem:[#allocation2 + $0xa8] sm:$0xf] }
  0x5a   : > { %v8042_v52 = vld [vmem:[#allocation2 + $0x160] sm:$0xf0] }
  0x5b   : > { %1541 = vmatmul.bf16.gmra.mxu0 %v6412_v53  ;;  %1680 = vmatmul.bf16.vlgmr.msra.gmra.mxu3 %v6536_v60  ;;  %v697_v53 = vor.u32 %v696_v51, %v408_v47  ;;  %v6539_v51 = vld [vmem:[#allocation2 + $0x158] sm:$0xf] }
  0x5c   : > { %1630 = vmatmul.bf16.gmra.mxu1 %v6416_v59  ;;  %8293 = vmatpush.bf16.msra.mxu3 %v8401_v2  ;;  %v777_v2 = vunpack.c.l.b16 %v739_v13  ;;  %v8046_v13 = vld [vmem:[#allocation2 + $0x184] sm:$0xf] }
  0x5d   : > { %1719 = vmatmul.bf16.gmra.mxu2 %v6420_v0  ;;  %v740_v58 = vsel %vm8479_vm5, %v697_v53, 0  ;;  %v8016_v0 = vld [vmem:[#allocation2 + $0x94] sm:$0xf]  ;;  %v6560_v20 = vor.u32 %v8046_v13, %v6557_v38 }
  0x5e   : > { %v809_v33 = vpack.c.b16 %v777_v2, %v777_v2  ;;  %v779_v59 = vunpack.c.l.b16 %v740_v58  ;;  %v780_v60 = vunpack.c.h.b16 %v740_v58  ;;  %v6436_v2 = vor.u32 %v8017_v63, %v6435_v21 }
  0x5f   : > { %v6440_v16 = vor.u32 %v8016_v0, %v6437_v9  ;;  %v7983_v0 = vld [vmem:[%s10723_s1 + $0x30] sm:$0xff] }
  0x60   : > { %8294 = vmatpush.bf16.msra.mxu3 %v8418_v5  ;;  %v810_v5 = vpack.c.b16 %v778_v14, %v778_v14  ;;  %873 = vst [vmem:[#allocation2 + $0xb0] sm:$0xf] %v809_v33  ;;  %v811_v18 = vpack.c.b16 %v779_v59, %v779_v59  ;;  %v8018_v14 = vld [vmem:[#allocation2 + $0xa0] sm:$0xf0]  ;;  %v699_v33 = vor.u32 %v698_v48, %v415_v22 }
  0x61   : > { %v6444_v26 = vor.u32 %v8018_v14, %v6443_v46  ;;  %v6540_v59 = vor.u32 %v8042_v52, %v6539_v51  ;;  %v7981_v48 = vld [vmem:[%s10723_s1 + $0x20] sm:$0xff]  ;;  %v7978_v51 = vld [vmem:[%s10723_s1 + $0x8] sm:$0xff] }
  0x62   : > { %874 = vst [vmem:[#allocation2 + $0xbc] sm:$0xf] %v810_v5  ;;  %v741_v7 = vsel %vm8479_vm5, %v699_v33, 0 }
  0x63   : > { %875 = vst [vmem:[#allocation2 + $0xc8] sm:$0xf] %v811_v18  ;;  %v781_v37 = vunpack.c.l.b16 %v741_v7 }
  0x64   : > { %8295 = vmatpush.bf16.msra.mxu3 %v8439_v8  ;;  %v410_v8 = vrot.slane %v408_v47, 7 }
  0x66   : > { %v413_v1 = vor.u32 %v411_v34, %v410_v8  ;;  %v6449_v34 = vld [vmem:[#allocation2 + $0xb4] sm:$0xf0]  ;;  %v813_v8 = vpack.c.b16 %v781_v37, %v781_v37 }
  0x67   : > { %v6455_v53 = vld [vmem:[#allocation2 + $0xb0] sm:$0xf] }
  0x68   : > { %8296 = vmatpush.bf16.msra.mxu3 %v8462_v19  ;;  %v7988_v19 = vld [vmem:[%s10723_s1 + $0x58] sm:$0xff]  ;;  %v496_v55 = vsel %vm8470_vm4, 0, %v413_v1  ;;  %877 = vst [vmem:[#allocation2 + $0xe0] sm:$0xf] %v813_v8 }
  0x69   : > { %2278 = vmatpush.bf16.msrb.mxu0 %v7988_v19  ;;  %v535_v31 = vunpack.c.l.b16 %v496_v55 }
  0x6b   : > { %1546 = vmatmul.bf16.gmra.mxu0 %v6424_v40  ;;  %1685 = vmatmul.bf16.gmra.mxu3 %v6548_v44  ;;  %v567_v56 = vpack.c.b16 %v535_v31, %v535_v31  ;;  %v782_v40 = vunpack.c.h.b16 %v741_v7  ;;  %v7922_v31 = vld [vmem:[%s8424_s10 + $0x48] sm:$0xff] }
  0x6c   : > { %1635 = vmatmul.bf16.gmra.mxu1 %v6428_v43  ;;  %8297 = vmatpush.bf16.msra.mxu3 %v8504_v39  ;;  %v536_v39 = vunpack.c.h.b16 %v496_v55  ;;  %v8020_v43 = vld [vmem:[#allocation2 + $0xb0] sm:$0xf0]  ;;  %v8021_v55 = vld [vmem:[#allocation2 + $0xb8] sm:$0xf0]  ;;  %v422_v62 = vshrl.u32 %v7922_v31, 16  ;;  %v425_v21 = vshll.u32 %v7922_v31, 16 }
  0x6d   : > { %1724 = vmatmul.bf16.gmra.mxu2 %v6432_v50  ;;  %632 = vst [vmem:[#allocation2 + $0xc0] sm:$0xf] %v567_v56  ;;  %v263_v50 = vld [vmem:[%s8424_s10 + $0x44] sm:$0xf]  ;;  %v814_v1 = vpack.c.b16 %v782_v40, %v782_v40  ;;  %v6448_v54 = vor.u32 %v8020_v43, %v6447_v41  ;;  %v6456_v56 = vor.u32 %v8021_v55, %v6455_v53  ;;  %v8349_v41 = vmov 0   ;;  %v7979_v43 = vld [vmem:[%s10723_s1 + $0x10] sm:$0xff] }
  0x6e   : > { %v568_v30 = vpack.c.b16 %v536_v39, %v536_v39  ;;  %667 = vst [vmem:[#allocation2 + $0xe8] sm:$0xf] %v263_v50  ;;  %v6452_v39 = vor.u32 %v8019_v61, %v6449_v34  ;;  %v700_v63 = vrot.slane %v425_v21, 1  ;;  %2279 = vmatpush.bf16.msrb.mxu0 %v7987_v6  ;;  %v266_v31 = vld [vmem:[%s8424_s10 + $0x50] sm:$0xf] }
  0x6f   : > { %878 = vst [vmem:[#allocation2 + $0xec] sm:$0xf] %v814_v1 }
  0x70   : > { %8298 = vmatpush.bf16.msra.mxu3 %v8530_v57  ;;  %633 = vst [vmem:[#allocation2 + $0xcc] sm:$0xf] %v568_v30  ;;  %v812_v57 = vpack.c.b16 %v780_v60, %v780_v60  ;;  %v7984_v60 = vld [vmem:[%s10723_s1 + $0x38] sm:$0xff]  ;;  %v424_v30 = vrot.slane %v422_v62, 7  ;;  %v701_v4 = vor.u32 %v700_v63, %v422_v62 }
  0x71   : > { %226 = vst [vmem:[#allocation2] sm:$0xff] %v8349_v41 }
  0x72   : > { %876 = vst [vmem:[#allocation2 + $0xd4] sm:$0xf] %v812_v57  ;;  %v427_v3 = vor.u32 %v425_v21, %v424_v30  ;;  %v742_v10 = vsel %vm8479_vm5, %v701_v4, 0  ;;  %v7982_v57 = vld [vmem:[%s10723_s1 + $0x28] sm:$0xff]  ;;  %v7977_v21 = vld [vmem:[%s10723_s1] sm:$0xff] }
  0x73   : > { %v783_v38 = vunpack.c.l.b16 %v742_v10  ;;  %v784_v46 = vunpack.c.h.b16 %v742_v10  ;;  %228 = vst [vmem:[#allocation2 + $0xc] sm:$0xff] %v8349_v41  ;;  %v6479_v30 = vld [vmem:[#allocation2 + $0xe0] sm:$0xf] }
  0x74   : > { %8299 = vmatpush.bf16.msra.mxu3 %v8554_v24  ;;  %v417_v24 = vrot.slane %v415_v22, 7  ;;  %v498_v9 = vsel %vm8470_vm4, 0, %v427_v3  ;;  %v6459_v15 = vld [vmem:[#allocation2 + $0xc0] sm:$0xf]  ;;  %v6551_v22 = vld [vmem:[#allocation2 + $0x170] sm:$0xf] }
  0x75   : > { %v539_v18 = vunpack.c.l.b16 %v498_v9  ;;  %v540_v13 = vunpack.c.h.b16 %v498_v9  ;;  %227 = vst [vmem:[#allocation2 + $0x8] sm:$0xf] %v8349_v41  ;;  %v7924_v3 = vld [vmem:[%s8424_s10 + $0x58] sm:$0xff] }
  0x76   : > { %v420_v32 = vor.u32 %v418_v25, %v417_v24  ;;  %v265_v25 = vld [vmem:[%s8424_s10 + $0x4c] sm:$0xf]  ;;  %v8045_v24 = vld [vmem:[#allocation2 + $0x178] sm:$0xf0]  ;;  %229 = vst [vmem:[#allocation2 + $0x14] sm:$0xf] %v8349_v41 }
  0x77   : > { %v571_v14 = vpack.c.b16 %v539_v18, %v539_v18  ;;  %v572_v11 = vpack.c.b16 %v540_v13, %v540_v13  ;;  %669 = vst [vmem:[#allocation2 + $0x100] sm:$0xf] %v265_v25  ;;  %v436_v18 = vshrl.u32 %v7924_v3, 16  ;;  %v439_v13 = vshll.u32 %v7924_v3, 16 }
  0x78   : > { %8300 = vmatpush.bf16.msra.mxu3 %v8576_v49  ;;  %v713_v49 = vor.u32 %v712_v29, %v464_v28  ;;  %v497_v35 = vsel %vm8470_vm4, 0, %v420_v32  ;;  %v262_v28 = vld [vmem:[%s8424_s10 + $0x40] sm:$0xf]  ;;  %v816_v29 = vpack.c.b16 %v784_v46, %v784_v46  ;;  %v6467_v32 = vld [vmem:[#allocation2 + $0xc8] sm:$0xf]  ;;  %231 = vst [vmem:[#allocation2 + $0x198] sm:$0xff] %v8349_v41 }
  0x79   : > { %v537_v5 = vunpack.c.l.b16 %v497_v35  ;;  %v538_v36 = vunpack.c.h.b16 %v497_v35  ;;  %666 = vst [vmem:[#allocation2 + $0xdc] sm:$0xf] %v262_v28  ;;  %v7923_v35 = vld [vmem:[%s8424_s10 + $0x50] sm:$0xff]  ;;  %v7986_v46 = vld [vmem:[%s10723_s1 + $0x48] sm:$0xff] }
  0x7a   : > { %v748_v45 = vsel %vm8479_vm5, %v713_v49, 0  ;;  %636 = vst [vmem:[#allocation2 + $0xf0] sm:$0xf] %v571_v14  ;;  %v8024_v49 = vld [vmem:[#allocation2 + $0xd0] sm:$0xf0]  ;;  %v429_v37 = vshrl.u32 %v7923_v35, 16  ;;  %2280 = vmatpush.bf16.msrb.mxu0 %v7986_v46 }
  0x7b   : > { %1551 = vmatmul.bf16.gmra.mxu0 %v6436_v2  ;;  %1690 = vmatmul.bf16.gmra.mxu3 %v6560_v20  ;;  %v569_v12 = vpack.c.b16 %v537_v5, %v537_v5  ;;  %v570_v42 = vpack.c.b16 %v538_v36, %v538_v36  ;;  %v795_v44 = vunpack.c.l.b16 %v748_v45  ;;  %v796_v47 = vunpack.c.h.b16 %v748_v45  ;;  %v8023_v2 = vld [vmem:[#allocation2 + $0xc8] sm:$0xf0]  ;;  %v264_v20 = vld [vmem:[%s8424_s10 + $0x48] sm:$0xf]  ;;  %637 = vst [vmem:[#allocation2 + $0xfc] sm:$0xf] %v572_v11 }
  0x7c   : > { %1640 = vmatmul.bf16.gmra.mxu1 %v6440_v16  ;;  %v6461_v16 = vld [vmem:[#allocation2 + $0xcc] sm:$0xf0]  ;;  %668 = vst [vmem:[#allocation2 + $0xf4] sm:$0xf] %v264_v20  ;;  %v6460_v33 = vor.u32 %v8023_v2, %v6459_v15  ;;  %v6552_v5 = vor.u32 %v8045_v24, %v6551_v22  ;;  %v7980_v36 = vld [vmem:[%s10723_s1 + $0x18] sm:$0xff]  ;;  %v432_v40 = vshll.u32 %v7923_v35, 16  ;;  %v6468_v45 = vor.u32 %v8024_v49, %v6467_v32 }
  0x7d   : > { %1729 = vmatmul.bf16.gmra.mxu2 %v6444_v26  ;;  %634 = vst [vmem:[#allocation2 + $0xd8] sm:$0xf] %v569_v12  ;;  %v827_v19 = vpack.c.b16 %v795_v44, %v795_v44  ;;  %v828_v58 = vpack.c.b16 %v796_v47, %v796_v47  ;;  %v815_v26 = vpack.c.b16 %v783_v38, %v783_v38  ;;  %v431_v12 = vrot.slane %v429_v37, 7  ;;  %v7999_v46 = vld [vmem:[%s10723_s1 + $0xb0] sm:$0xff] }
  0x7e   : > { %635 = vst [vmem:[#allocation2 + $0xe4] sm:$0xf] %v570_v42  ;;  %v6464_v7 = vor.u32 %v8022_v17, %v6461_v16  ;;  %v702_v42 = vrot.slane %v432_v40, 1  ;;  %v438_v15 = vrot.slane %v436_v18, 7  ;;  %v704_v2 = vrot.slane %v439_v13, 1 }
  0x7f   : > { %891 = vst [vmem:[#allocation2 + $0x188] sm:$0xf] %v827_v19  ;;  %v434_v61 = vor.u32 %v432_v40, %v431_v12  ;;  %v268_v40 = vld [vmem:[%s8424_s10 + $0x58] sm:$0xf] }
  0x80   : > { %892 = vst [vmem:[#allocation2 + $0x194] sm:$0xf] %v828_v58  ;;  %v703_v28 = vor.u32 %v702_v42, %v429_v37  ;;  %v8025_v55 = vld [vmem:[#allocation2 + $0xdc] sm:$0xf]  ;;  %v6473_v58 = vld [vmem:[#allocation2 + $0xe4] sm:$0xf0]  ;;  %v441_v14 = vor.u32 %v439_v13, %v438_v15  ;;  %v705_v11 = vor.u32 %v704_v2, %v436_v18 }
  0x81   : > { %879 = vst [vmem:[#allocation2 + $0xf8] sm:$0xf] %v815_v26  ;;  %v499_v44 = vsel %vm8470_vm4, 0, %v434_v61  ;;  %v6476_v6 = vor.u32 %v8025_v55, %v6473_v58  ;;  %v6483_v49 = vld [vmem:[#allocation2 + $0xf0] sm:$0xf] }
  0x82   : > { %880 = vst [vmem:[#allocation2 + $0x104] sm:$0xf] %v816_v29  ;;  %v743_v47 = vsel %vm8479_vm5, %v703_v28, 0  ;;  %v541_v34 = vunpack.c.l.b16 %v499_v44  ;;  %v542_v50 = vunpack.c.h.b16 %v499_v44  ;;  %v500_v20 = vsel %vm8470_vm4, 0, %v441_v14  ;;  %v6663_v42 = vld [vmem:[#allocation2] sm:$0xf] }
  0x83   : > { %232 = vst [vmem:[#allocation2 + $0x1a0] sm:$0xf] %v8349_v41  ;;  %v785_v8 = vunpack.c.l.b16 %v743_v47  ;;  %v786_v52 = vunpack.c.h.b16 %v743_v47  ;;  %v744_v22 = vsel %vm8479_vm5, %v705_v11, 0  ;;  %v543_v24 = vunpack.c.l.b16 %v500_v20  ;;  %v6675_v2 = vld [vmem:[#allocation2 + $0x18] sm:$0xf] }
  0x84   : > { %233 = vst [vmem:[#allocation2 + $0x1a4] sm:$0xff] %v8349_v41  ;;  %v6471_v1 = vld [vmem:[#allocation2 + $0xd8] sm:$0xf]  ;;  %v573_v19 = vpack.c.b16 %v541_v34, %v541_v34  ;;  %v787_v29 = vunpack.c.l.b16 %v744_v22  ;;  %v788_v35 = vunpack.c.h.b16 %v744_v22  ;;  %v7933_v14 = vld [vmem:[#allocation2 + $0x20] sm:$0xf0] }
  0x85   : > { %234 = vst [vmem:[#allocation2 + $0x1ac] sm:$0xf] %v8349_v41  ;;  %v8026_v53 = vld [vmem:[#allocation2 + $0xe0] sm:$0xf0]  ;;  %v269_v41 = vld [vmem:[%s8424_s10 + $0x5c] sm:$0xf] }
  0x86   : > { %638 = vst [vmem:[#allocation2 + $0x108] sm:$0xf] %v573_v19  ;;  %v6472_v63 = vor.u32 %v8026_v53, %v6471_v1  ;;  %v819_v12 = vpack.c.b16 %v787_v29, %v787_v29  ;;  %v820_v61 = vpack.c.b16 %v788_v35, %v788_v35 }
  0x87   : > { %v8048_v62 = vld [vmem:[#allocation2 + $0x190] sm:$0xf0]  ;;  %670 = vst [vmem:[#allocation2 + $0x10c] sm:$0xf] %v266_v31 }
  0x88   : > { %672 = vst [vmem:[#allocation2 + $0x124] sm:$0xf] %v268_v40  ;;  %v6491_v28 = vld [vmem:[#allocation2 + $0xf8] sm:$0xf]  ;;  %v6676_v40 = vor.u32 %v7933_v14, %v6675_v2 }
  0x89   : > { %v8030_v34 = vld [vmem:[#allocation2 + $0x100] sm:$0xf0]  ;;  %673 = vst [vmem:[#allocation2 + $0x130] sm:$0xf] %v269_v41 }
  0x8a   : > { %883 = vst [vmem:[#allocation2 + $0x128] sm:$0xf] %v819_v12  ;;  %v6492_v31 = vor.u32 %v8030_v34, %v6491_v28  ;;  %v7996_v28 = vld [vmem:[%s10723_s1 + $0x98] sm:$0xff] }
  0x8b   : > { %1556 = vmatmul.bf16.gmra.mxu0 %v6448_v54  ;;  %1769 = vmatmul.bf16.vlgmr.msra.gmra.mxu3 %v6540_v59  ;;  %v574_v54 = vpack.c.b16 %v542_v50, %v542_v50  ;;  %v267_v59 = vld [vmem:[%s8424_s10 + $0x54] sm:$0xf]  ;;  %v7925_v50 = vld [vmem:[%s8424_s10 + $0x60] sm:$0xff]  ;;  %884 = vst [vmem:[#allocation2 + $0x134] sm:$0xf] %v820_v61 }
  0x8c   : > { %1645 = vmatmul.bf16.gmra.mxu1 %v6452_v39  ;;  %2185 = vmatpush.bf16.msra.mxu3 %v7984_v60  ;;  %v6563_v39 = vld [vmem:[#allocation2 + $0x188] sm:$0xf]  ;;  %v817_v60 = vpack.c.b16 %v785_v8, %v785_v8  ;;  %671 = vst [vmem:[#allocation2 + $0x118] sm:$0xf] %v267_v59  ;;  %v443_v19 = vshrl.u32 %v7925_v50, 16 }
  0x8d   : > { %1734 = vmatmul.bf16.gmra.mxu2 %v6456_v56  ;;  %639 = vst [vmem:[#allocation2 + $0x114] sm:$0xf] %v574_v54  ;;  %v818_v56 = vpack.c.b16 %v786_v52, %v786_v52  ;;  %v6564_v9 = vor.u32 %v8048_v62, %v6563_v39  ;;  %v446_v54 = vshll.u32 %v7925_v50, 16 }
  0x8e   : > { %881 = vst [vmem:[#allocation2 + $0x110] sm:$0xf] %v817_v60  ;;  %v445_v39 = vrot.slane %v443_v19, 7 }
  0x8f   : > { %882 = vst [vmem:[#allocation2 + $0x11c] sm:$0xf] %v818_v56  ;;  %v706_v59 = vrot.slane %v446_v54, 1  ;;  %v8000_v56 = vld [vmem:[%s10723_s1 + $0xb8] sm:$0xff] }
  0x90   : > { %2186 = vmatpush.bf16.msra.mxu3 %v7983_v0  ;;  %v8027_v0 = vld [vmem:[#allocation2 + $0xe8] sm:$0xf0]  ;;  %v448_v60 = vor.u32 %v446_v54, %v445_v39  ;;  %2363 = vmatpush.bf16.msrb.mxu1 %v8000_v56  ;;  %v8034_v54 = vld [vmem:[#allocation2 + $0x124] sm:$0xf]  ;;  %v7936_v39 = vld [vmem:[#allocation2 + $0x38] sm:$0xf0] }
  0x91   : > { %v707_v62 = vor.u32 %v706_v59, %v443_v19 }
  0x92   : > { %v8036_v56 = vld [vmem:[#allocation2 + $0x130] sm:$0xf0] }
  0x94   : > { %2187 = vmatpush.bf16.msra.mxu3 %v7982_v57  ;;  %v6480_v57 = vor.u32 %v8027_v0, %v6479_v30  ;;  %v745_v0 = vsel %vm8479_vm5, %v707_v62, 0  ;;  %v8032_v22 = vld [vmem:[#allocation2 + $0x110] sm:$0xf0]  ;;  %2364 = vmatpush.bf16.msrb.mxu1 %v7999_v46  ;;  %v6515_v62 = vld [vmem:[#allocation2 + $0x128] sm:$0xf] }
  0x95   : > { %v790_v15 = vunpack.c.h.b16 %v745_v0 }
  0x97   : > { %v822_v29 = vpack.c.b16 %v790_v15, %v790_v15 }
  0x98   : > { %2188 = vmatpush.bf16.msra.mxu3 %v7981_v48  ;;  %v544_v48 = vunpack.c.h.b16 %v500_v20  ;;  %v270_v20 = vld [vmem:[%s8424_s10 + $0x60] sm:$0xf] }
  0x99   : > { %674 = vst [vmem:[#allocation2 + $0x13c] sm:$0xf] %v270_v20 }
  0x9a   : > { %v576_v37 = vpack.c.b16 %v544_v48, %v544_v48  ;;  %v6497_v48 = vld [vmem:[#allocation2 + $0x114] sm:$0xf0]  ;;  %886 = vst [vmem:[#allocation2 + $0x14c] sm:$0xf] %v822_v29  ;;  %v7939_v29 = vld [vmem:[#allocation2 + $0x50] sm:$0xf0] }
  0x9b   : > { %1561 = vmatmul.bf16.gmra.mxu0 %v6460_v33  ;;  %1774 = vmatmul.bf16.gmra.mxu3 %v6552_v5  ;;  %v8028_v5 = vld [vmem:[#allocation2 + $0xf4] sm:$0xf] }
  0x9c   : > { %1650 = vmatmul.bf16.gmra.mxu1 %v6464_v7  ;;  %2189 = vmatpush.bf16.msra.mxu3 %v7980_v36  ;;  %v8029_v7 = vld [vmem:[#allocation2 + $0xf8] sm:$0xf0]  ;;  %v575_v36 = vpack.c.b16 %v543_v24, %v543_v24  ;;  %641 = vst [vmem:[#allocation2 + $0x12c] sm:$0xf] %v576_v37  ;;  %v8031_v24 = vld [vmem:[#allocation2 + $0x10c] sm:$0xf] }
  0x9d   : > { %1739 = vmatmul.bf16.gmra.mxu2 %v6468_v45  ;;  %v6485_v45 = vld [vmem:[#allocation2 + $0xfc] sm:$0xf0]  ;;  %v6484_v47 = vor.u32 %v8029_v7, %v6483_v49  ;;  %v8033_v7 = vld [vmem:[#allocation2 + $0x118] sm:$0xf0]  ;;  %v6500_v37 = vor.u32 %v8031_v24, %v6497_v48  ;;  %v6699_v48 = vld [vmem:[#allocation2 + $0x48] sm:$0xf] }
  0x9e   : > { %640 = vst [vmem:[#allocation2 + $0x120] sm:$0xf] %v575_v36 }
  0xa0   : > { %2190 = vmatpush.bf16.msra.mxu3 %v7979_v43  ;;  %v7930_v43 = vld [vmem:[#allocation2 + $0x8] sm:$0xf0] }
  0xa1   : > { %v6664_v52 = vor.u32 %v7930_v43, %v6663_v42  ;;  %v7997_v43 = vld [vmem:[%s10723_s1 + $0xa0] sm:$0xff] }
  0xa3   : > { %v8035_v19 = vld [vmem:[#allocation2 + $0x128] sm:$0xf0] }
  0xa4   : > { %2191 = vmatpush.bf16.msra.mxu3 %v7978_v51  ;;  %v6488_v51 = vor.u32 %v8028_v5, %v6485_v45  ;;  %v7998_v5 = vld [vmem:[%s10723_s1 + $0xa8] sm:$0xff] }
  0xa5   : > { %2365 = vmatpush.bf16.msrb.mxu1 %v7998_v5  ;;  %v8039_v5 = vld [vmem:[#allocation2 + $0x148] sm:$0xf0] }
  0xa8   : > { %v1527_v4 = vpop.f32.mrf.mxu0  ;;  %2192 = vmatpush.bf16.msra.mxu3 %v7977_v21 }
  0xa9   : > { %v1616_v10 = vpop.f32.mrf.mxu1  ;;  %2366 = vmatpush.bf16.msrb.mxu1 %v7997_v43 }
  0xaa   : > { %v1617_v38 = vadd.f32 %v1616_v10, %v1527_v4  ;;  %v789_v10 = vunpack.c.l.b16 %v745_v0 }
  0xab   : > { %1566 = vmatmul.bf16.gmra.mxu0 %v6472_v63  ;;  %1779 = vmatmul.bf16.gmra.mxu3 %v6564_v9  ;;  %v501_v63 = vsel %vm8470_vm4, 0, %v448_v60 }
  0xac   : > { %1655 = vmatmul.bf16.gmra.mxu1 %v6476_v6  ;;  %v545_v6 = vunpack.c.l.b16 %v501_v63  ;;  %v546_v9 = vunpack.c.h.b16 %v501_v63 }
  0xad   : > { %1744 = vmatmul.bf16.gmra.mxu2 %v6480_v57  ;;  %v7985_v57 = vld [vmem:[%s10723_s1 + $0x40] sm:$0xff]  ;;  %2367 = vmatpush.bf16.msrb.mxu1 %v7996_v28 }
  0xae   : > { %v8734_v17 = vpop.f32.mrf.mxu3  ;;  %v577_v11 = vpack.c.b16 %v545_v6, %v545_v6  ;;  %2281 = vmatpush.bf16.msrb.mxu0 %v7985_v57  ;;  %v8144_v57 = vld [vmem:[%s10723_s1 + $0x238] sm:$0xff] }
  0xb0   : > { %v1529_v16 = vpop.f32.mrf.mxu0  ;;  %v1705_v25 = vpop.f32.mrf.mxu2  ;;  %642 = vst [vmem:[#allocation2 + $0x138] sm:$0xf] %v577_v11 }
  0xb1   : > { %v1618_v26 = vpop.f32.mrf.mxu1  ;;  %v8740_v32 = vadd.f32 %v1705_v25, %v1617_v38  ;;  %v6495_v38 = vld [vmem:[#allocation2 + $0x108] sm:$0xf]  ;;  %v271_v25 = vld [vmem:[%s8424_s10 + $0x64] sm:$0xf] }
  0xb2   : > { %v1619_v33 = vadd.f32 %v1618_v26, %v1529_v16  ;;  %v578_v16 = vpack.c.b16 %v546_v9, %v546_v9  ;;  %v821_v26 = vpack.c.b16 %v789_v10, %v789_v10  ;;  %v6496_v35 = vor.u32 %v8032_v22, %v6495_v38  ;;  %675 = vst [vmem:[#allocation2 + $0x148] sm:$0xf] %v271_v25  ;;  %v7993_v38 = vld [vmem:[%s10723_s1 + $0x80] sm:$0xff] }
  0xb3   : > { %v6516_v10 = vor.u32 %v8036_v56, %v6515_v62  ;;  %3144 = vmatpush.bf16.msra.mxu0 %v8144_v57 }
  0xb4   : > { %643 = vst [vmem:[#allocation2 + $0x144] sm:$0xf] %v578_v16 }
  0xb5   : > { %885 = vst [vmem:[#allocation2 + $0x140] sm:$0xf] %v821_v26  ;;  %v8037_v26 = vld [vmem:[#allocation2 + $0x13c] sm:$0xf] }
  0xb6   : > { %v8744_v44 = vpop.f32.mrf.mxu3 }
  0xb7   : > { %v6519_v22 = vld [vmem:[#allocation2 + $0x138] sm:$0xf] }
  0xb8   : > { %v1532_v8 = vpop.f32.mrf.mxu0  ;;  %v1707_v1 = vpop.f32.mrf.mxu2 }
  0xb9   : > { %v1621_v53 = vpop.f32.mrf.mxu1  ;;  %v8747_v55 = vadd.f32 %v1707_v1, %v1619_v33  ;;  %v6503_v33 = vld [vmem:[#allocation2 + $0x110] sm:$0xf]  ;;  %v8136_v1 = vld [vmem:[%s10723_s1 + $0x1f8] sm:$0xff]  ;;  %v6521_v24 = vld [vmem:[#allocation2 + $0x144] sm:$0xf0] }
  0xba   : > { %v1622_v58 = vadd.f32 %v1621_v53, %v1532_v8  ;;  %v6504_v42 = vor.u32 %v8033_v7, %v6503_v33  ;;  %v6507_v53 = vld [vmem:[#allocation2 + $0x120] sm:$0xf] }
  0xbb   : > { %1571 = vmatmul.bf16.gmra.mxu0 %v6484_v47  ;;  %2193 = vmatmul.bf16.vlgmr.msra.gmra.mxu3 %v6664_v52  ;;  %v7995_v52 = vld [vmem:[%s10723_s1 + $0x90] sm:$0xff]  ;;  %v6508_v60 = vor.u32 %v8035_v19, %v6507_v53  ;;  %v8038_v25 = vld [vmem:[#allocation2 + $0x140] sm:$0xf0]  ;;  %v6711_v19 = vld [vmem:[#allocation2 + $0x60] sm:$0xf] }
  0xbc   : > { %1660 = vmatmul.bf16.gmra.mxu1 %v6488_v51  ;;  %3055 = vmatpush.bf16.msra.mxu3 %v8136_v1  ;;  %v6527_v7 = vld [vmem:[#allocation2 + $0x140] sm:$0xf]  ;;  %v8135_v53 = vld [vmem:[%s10723_s1 + $0x1f0] sm:$0xff] }
  0xbd   : > { %1749 = vmatmul.bf16.gmra.mxu2 %v6492_v31  ;;  %v6687_v31 = vld [vmem:[#allocation2 + $0x30] sm:$0xf]  ;;  %2368 = vmatpush.bf16.msrb.mxu1 %v7995_v52  ;;  %v6528_v43 = vor.u32 %v8039_v5, %v6527_v7 }
  0xbe   : > { %v8749_v21 = vpop.f32.mrf.mxu3 }
  0xc0   : > { %v1534_v30 = vpop.f32.mrf.mxu0  ;;  %v1710_v3 = vpop.f32.mrf.mxu2  ;;  %3056 = vmatpush.bf16.msra.mxu3 %v8135_v53 }
  0xc1   : > { %v1623_v4 = vpop.f32.mrf.mxu1  ;;  %v8758_v18 = vadd.f32 %v1710_v3, %v1622_v58  ;;  %v6509_v58 = vld [vmem:[#allocation2 + $0x12c] sm:$0xf0]  ;;  %v6688_v3 = vor.u32 %v7936_v39, %v6687_v31  ;;  %v7942_v31 = vld [vmem:[#allocation2 + $0x68] sm:$0xf0]  ;;  %v6671_v39 = vld [vmem:[#allocation2 + $0x8] sm:$0xf] }
  0xc2   : > { %v8760_v13 = vadd.f32 %v1623_v4, %v1534_v30  ;;  %v7994_v30 = vld [vmem:[%s10723_s1 + $0x88] sm:$0xff]  ;;  %v6512_v0 = vor.u32 %v8034_v54, %v6509_v58  ;;  %v7929_v54 = vld [vmem:[#allocation2 + $0x4] sm:$0xf]  ;;  %v6665_v58 = vld [vmem:[#allocation2 + $0xc] sm:$0xf0] }
  0xc3   : > { %2369 = vmatpush.bf16.msrb.mxu1 %v7994_v30  ;;  %v6668_v62 = vor.u32 %v7929_v54, %v6665_v58  ;;  %v6735_v54 = vld [vmem:[#allocation2 + $0x90] sm:$0xf]  ;;  %v7935_v58 = vld [vmem:[#allocation2 + $0x34] sm:$0xf] }
  0xc6   : > { %v8770_v49 = vpop.f32.mrf.mxu3 }
  0xc7   : > { %2370 = vmatpush.bf16.msrb.mxu1 %v7993_v38 }
  0xc8   : > { %v1537_v36 = vpop.f32.mrf.mxu0  ;;  %v8775_v45 = vpop.f32.mrf.mxu2 }
  0xc9   : > { %v1626_v41 = vpop.f32.mrf.mxu1 }
  0xca   : > { %v1627_v12 = vadd.f32 %v1626_v41, %v1537_v36 }
  0xcb   : > { %1576 = vmatmul.bf16.gmra.mxu0 %v6496_v35  ;;  %2198 = vmatmul.bf16.gmra.mxu3 %v6676_v40  ;;  %v6520_v35 = vor.u32 %v8038_v25, %v6519_v22  ;;  %v6700_v40 = vor.u32 %v7939_v29, %v6699_v48  ;;  %v8128_v22 = vld [vmem:[%s10723_s1 + $0x1b8] sm:$0xff]  ;;  %v7945_v48 = vld [vmem:[#allocation2 + $0x80] sm:$0xf0]  ;;  %v6683_v29 = vld [vmem:[#allocation2 + $0x20] sm:$0xf] }
  0xcc   : > { %1665 = vmatmul.bf16.gmra.mxu1 %v6500_v37  ;;  %v6524_v37 = vor.u32 %v8037_v26, %v6521_v24  ;;  %v6723_v25 = vld [vmem:[#allocation2 + $0x78] sm:$0xf]  ;;  %v7932_v26 = vld [vmem:[#allocation2 + $0x1c] sm:$0xf]  ;;  %v6677_v24 = vld [vmem:[#allocation2 + $0x24] sm:$0xf0]  ;;  %2966 = vmatpush.bf16.msrb.mxu2 %v8128_v22 }
  0xcd   : > { %1754 = vmatmul.bf16.gmra.mxu2 %v6504_v42 }
  0xce   : > { %v8780_v61 = vpop.f32.mrf.mxu3 }
  0xd0   : > { %v1539_v47 = vpop.f32.mrf.mxu0  ;;  %v1715_v34 = vpop.f32.mrf.mxu2 }
  0xd1   : > { %v1628_v50 = vpop.f32.mrf.mxu1  ;;  %v8785_v8 = vadd.f32 %v1715_v34, %v1627_v12 }
  0xd2   : > { %v8787_v51 = vadd.f32 %v1628_v50, %v1539_v47 }
  0xd6   : > { %v8795_v59 = vpop.f32.mrf.mxu3 }
  0xd8   : > { %v1542_v63 = vpop.f32.mrf.mxu0  ;;  %v8800_v4 = vpop.f32.mrf.mxu2 }
  0xd9   : > { %v1631_v6 = vpop.f32.mrf.mxu1 }
  0xda   : > { %v1632_v9 = vadd.f32 %v1631_v6, %v1542_v63  ;;  %v6712_v63 = vor.u32 %v7942_v31, %v6711_v19  ;;  %v8134_v19 = vld [vmem:[%s10723_s1 + $0x1e8] sm:$0xff]  ;;  %v6689_v31 = vld [vmem:[#allocation2 + $0x3c] sm:$0xf0] }
  0xdb   : > { %1581 = vmatmul.bf16.gmra.mxu0 %v6508_v60  ;;  %2203 = vmatmul.bf16.gmra.mxu3 %v6688_v3  ;;  %v7931_v60 = vld [vmem:[#allocation2 + $0x10] sm:$0xf0] }
  0xdc   : > { %1670 = vmatmul.bf16.gmra.mxu1 %v6512_v0  ;;  %v6672_v0 = vor.u32 %v7931_v60, %v6671_v39  ;;  %3057 = vmatpush.bf16.msra.mxu3 %v8134_v19  ;;  %v7948_v39 = vld [vmem:[#allocation2 + $0x98] sm:$0xf0]  ;;  %v6695_v60 = vld [vmem:[#allocation2 + $0x38] sm:$0xf] }
  0xdd   : > { %1759 = vmatmul.bf16.gmra.mxu2 %v6516_v10  ;;  %v8143_v10 = vld [vmem:[%s10723_s1 + $0x230] sm:$0xff] }
  0xde   : > { %v1681_v46 = vpop.f32.mrf.mxu3  ;;  %3145 = vmatpush.bf16.msra.mxu0 %v8143_v10 }
  0xdf   : > { %v8809_v15 = vadd.f32 %v1681_v46, %v8734_v17 }
  0xe0   : > { %v1544_v2 = vpop.f32.mrf.mxu0  ;;  %v1720_v14 = vpop.f32.mrf.mxu2 }
  0xe1   : > { %v1633_v11 = vpop.f32.mrf.mxu1  ;;  %v8811_v16 = vadd.f32 %v1720_v14, %v1632_v9 }
  0xe2   : > { %v8813_v20 = vadd.f32 %v1633_v11, %v1544_v2 }
  0xe6   : > { %v1683_v33 = vpop.f32.mrf.mxu3 }
  0xe7   : > { %v8816_v17 = vadd.f32 %v1683_v33, %v8744_v44  ;;  %v7934_v33 = vld [vmem:[#allocation2 + $0x28] sm:$0xf0] }
  0xe8   : > { %v1547_v36 = vpop.f32.mrf.mxu0  ;;  %v8818_v41 = vpop.f32.mrf.mxu2 }
  0xe9   : > { %v1636_v12 = vpop.f32.mrf.mxu1 }
  0xea   : > { %v1637_v42 = vadd.f32 %v1636_v12, %v1547_v36  ;;  %v6724_v36 = vor.u32 %v7945_v48, %v6723_v25 }
  0xeb   : > { %1586 = vmatmul.bf16.gmra.mxu0 %v6520_v35  ;;  %2208 = vmatmul.bf16.gmra.mxu3 %v6700_v40  ;;  %v6680_v35 = vor.u32 %v7932_v26, %v6677_v24 }
  0xec   : > { %1675 = vmatmul.bf16.gmra.mxu1 %v6524_v37  ;;  %v6684_v37 = vor.u32 %v7934_v33, %v6683_v29  ;;  %v6747_v29 = vld [vmem:[#allocation2 + $0xa8] sm:$0xf]  ;;  %v7938_v33 = vld [vmem:[#allocation2 + $0x4c] sm:$0xf] }
  0xed   : > { %1764 = vmatmul.bf16.gmra.mxu2 %v6528_v43 }
  0xee   : > { %v1686_v28 = vpop.f32.mrf.mxu3 }
  0xef   : > { %v8821_v47 = vadd.f32 %v1686_v28, %v8749_v21 }
  0xf0   : > { %v1549_v34 = vpop.f32.mrf.mxu0  ;;  %v1725_v50 = vpop.f32.mrf.mxu2 }
  0xf1   : > { %v1638_v44 = vpop.f32.mrf.mxu1  ;;  %v8823_v52 = vadd.f32 %v1725_v50, %v1637_v42 }
  0xf2   : > { %v8825_v1 = vadd.f32 %v1638_v44, %v1549_v34 }
  0xf6   : > { %v1688_v21 = vpop.f32.mrf.mxu3 }
  0xf7   : > { %v8831_v56 = vadd.f32 %v1688_v21, %v8770_v49  ;;  %v7937_v21 = vld [vmem:[#allocation2 + $0x40] sm:$0xf0] }
  0xf8   : > { %v1552_v30 = vpop.f32.mrf.mxu0  ;;  %v8833_v3 = vpop.f32.mrf.mxu2 }
  0xf9   : > { %v1641_v6 = vpop.f32.mrf.mxu1 }
  0xfa   : > { %v1642_v9 = vadd.f32 %v1641_v6, %v1552_v30  ;;  %v6696_v6 = vor.u32 %v7937_v21, %v6695_v60 }
  0xfb   : > { %2282 = vmatmul.bf16.vlgmr.msrb.gmra.mxu0 %v6668_v62  ;;  %2213 = vmatmul.bf16.gmra.mxu3 %v6712_v63  ;;  %v6692_v62 = vor.u32 %v7935_v58, %v6689_v31 }
  0xfc   : > { %2371 = vmatmul.bf16.vlgmr.msrb.gmra.mxu1 %v6672_v0  ;;  %v6736_v0 = vor.u32 %v7948_v39, %v6735_v54 }
  0xfe   : > { %v1691_v38 = vpop.f32.mrf.mxu3 }
  0xff   : > { %v8839_v57 = vadd.f32 %v1691_v38, %v8780_v61 }
 0x100   : > { %v1554_v49 = vpop.f32.mrf.mxu0  ;;  %v1730_v46 = vpop.f32.mrf.mxu2 }
 0x101   : > { %v1643_v2 = vpop.f32.mrf.mxu1  ;;  %v8841_v14 = vadd.f32 %v1730_v46, %v1642_v9  ;;  %v8127_v46 = vld [vmem:[%s10723_s1 + $0x1b0] sm:$0xff] }
 0x102   : > { %v8843_v11 = vadd.f32 %v1643_v2, %v1554_v49  ;;  %v8142_v49 = vld [vmem:[%s10723_s1 + $0x228] sm:$0xff]  ;;  %2967 = vmatpush.bf16.msrb.mxu2 %v8127_v46 }
 0x103   : > { %3146 = vmatpush.bf16.msra.mxu0 %v8142_v49 }
 0x106   : > { %v1693_v61 = vpop.f32.mrf.mxu3 }
 0x107   : > { %v8849_v7 = vadd.f32 %v1693_v61, %v8795_v59  ;;  %v6701_v61 = vld [vmem:[#allocation2 + $0x54] sm:$0xf0] }
 0x108   : > { %v1557_v5 = vpop.f32.mrf.mxu0  ;;  %v8851_v40 = vpop.f32.mrf.mxu2 }
 0x109   : > { %v1646_v12 = vpop.f32.mrf.mxu1 }
 0x10a   : > { %v1647_v42 = vadd.f32 %v1646_v12, %v1557_v5  ;;  %v6707_v5 = vld [vmem:[#allocation2 + $0x50] sm:$0xf]  ;;  %v6704_v12 = vor.u32 %v7938_v33, %v6701_v61  ;;  %v8126_v61 = vld [vmem:[%s10723_s1 + $0x1a8] sm:$0xff] }
 0x10b   : > { %2287 = vmatmul.bf16.gmra.mxu0 %v6680_v35  ;;  %2218 = vmatmul.bf16.gmra.mxu3 %v6724_v36  ;;  %v7951_v35 = vld [vmem:[#allocation2 + $0xb0] sm:$0xf0]  ;;  %v7940_v36 = vld [vmem:[#allocation2 + $0x58] sm:$0xf0] }
 0x10c   : > { %2376 = vmatmul.bf16.gmra.mxu1 %v6684_v37  ;;  %2968 = vmatpush.bf16.msrb.mxu2 %v8126_v61  ;;  %v8132_v61 = vld [vmem:[%s10723_s1 + $0x1d8] sm:$0xff] }
 0x10e   : > { %v1770_v43 = vpop.f32.mrf.mxu3 }
 0x10f   : > { %v8854_v28 = vadd.f32 %v1770_v43, %v8809_v15  ;;  %v6748_v43 = vor.u32 %v7951_v35, %v6747_v29  ;;  %v8141_v35 = vld [vmem:[%s10723_s1 + $0x220] sm:$0xff] }
 0x110   : > { %v1559_v34 = vpop.f32.mrf.mxu0  ;;  %v1735_v50 = vpop.f32.mrf.mxu2  ;;  %3147 = vmatpush.bf16.msra.mxu0 %v8141_v35  ;;  %v6783_v35 = vld [vmem:[#allocation2 + $0xf0] sm:$0xf] }
 0x111   : > { %v1648_v44 = vpop.f32.mrf.mxu1  ;;  %v8856_v53 = vadd.f32 %v1735_v50, %v1647_v42 }
 0x112   : > { %v8858_v59 = vadd.f32 %v1648_v44, %v1559_v34  ;;  %v6708_v34 = vor.u32 %v7940_v36, %v6707_v5 }
 0x116   : > { %v1772_v15 = vpop.f32.mrf.mxu3 }
 0x117   : > { %v8864_v30 = vadd.f32 %v1772_v15, %v8816_v17  ;;  %v8133_v15 = vld [vmem:[%s10723_s1 + $0x1e0] sm:$0xff] }
 0x118   : > { %v1562_v63 = vpop.f32.mrf.mxu0  ;;  %v8866_v9 = vpop.f32.mrf.mxu2  ;;  %3058 = vmatpush.bf16.msra.mxu3 %v8133_v15 }
 0x119   : > { %v1651_v10 = vpop.f32.mrf.mxu1 }
 0x11a   : > { %v1652_v38 = vadd.f32 %v1651_v10, %v1562_v63  ;;  %v7941_v63 = vld [vmem:[#allocation2 + $0x64] sm:$0xf]  ;;  %v6719_v10 = vld [vmem:[#allocation2 + $0x68] sm:$0xf] }
 0x11b   : > { %2292 = vmatmul.bf16.gmra.mxu0 %v6692_v62  ;;  %2223 = vmatmul.bf16.gmra.mxu3 %v6736_v0  ;;  %v6759_v62 = vld [vmem:[#allocation2 + $0xc0] sm:$0xf]  ;;  %v6713_v0 = vld [vmem:[#allocation2 + $0x6c] sm:$0xf0] }
 0x11c   : > { %2381 = vmatmul.bf16.gmra.mxu1 %v6696_v6  ;;  %v7954_v6 = vld [vmem:[#allocation2 + $0xc8] sm:$0xf0]  ;;  %v6716_v49 = vor.u32 %v7941_v63, %v6713_v0  ;;  %3059 = vmatpush.bf16.msra.mxu3 %v8132_v61  ;;  %v6749_v61 = vld [vmem:[#allocation2 + $0xb4] sm:$0xf0] }
 0x11e   : > { %v1775_v17 = vpop.f32.mrf.mxu3 }
 0x11f   : > { %v8875_v2 = vadd.f32 %v1775_v17, %v8821_v47 }
 0x120   : > { %v1564_v22 = vpop.f32.mrf.mxu0  ;;  %v1740_v25 = vpop.f32.mrf.mxu2 }
 0x121   : > { %v1653_v26 = vpop.f32.mrf.mxu1  ;;  %v8877_v24 = vadd.f32 %v1740_v25, %v1652_v38  ;;  %v7943_v38 = vld [vmem:[#allocation2 + $0x70] sm:$0xf0] }
 0x122   : > { %v8879_v48 = vadd.f32 %v1653_v26, %v1564_v22  ;;  %v6760_v22 = vor.u32 %v7954_v6, %v6759_v62  ;;  %v6720_v25 = vor.u32 %v7943_v38, %v6719_v10 }
 0x126   : > { %v1777_v37 = vpop.f32.mrf.mxu3 }
 0x127   : > { %v8882_v42 = vadd.f32 %v1777_v37, %v8831_v56 }
 0x128   : > { %v1567_v47 = vpop.f32.mrf.mxu0  ;;  %v8884_v50 = vpop.f32.mrf.mxu2 }
 0x129   : > { %v1656_v44 = vpop.f32.mrf.mxu1 }
 0x12a   : > { %v1657_v19 = vadd.f32 %v1656_v44, %v1567_v47  ;;  %v7944_v44 = vld [vmem:[#allocation2 + $0x7c] sm:$0xf] }
 0x12b   : > { %2297 = vmatmul.bf16.gmra.mxu0 %v6704_v12  ;;  %2228 = vmatmul.bf16.gmra.mxu3 %v6748_v43 }
 0x12c   : > { %2386 = vmatmul.bf16.gmra.mxu1 %v6708_v34  ;;  %v6771_v34 = vld [vmem:[#allocation2 + $0xd8] sm:$0xf] }
 0x12e   : > { %v1780_v54 = vpop.f32.mrf.mxu3 }
 0x12f   : > { %v8887_v58 = vadd.f32 %v1780_v54, %v8839_v57  ;;  %v7957_v54 = vld [vmem:[#allocation2 + $0xe0] sm:$0xf0] }
 0x130   : > { %v1569_v31 = vpop.f32.mrf.mxu0  ;;  %v1745_v39 = vpop.f32.mrf.mxu2  ;;  %v6772_v63 = vor.u32 %v7957_v54, %v6771_v34  ;;  %v1713_v34 = vadd.f32 %v8775_v45, %v8760_v13 }
 0x131   : > { %v1658_v60 = vpop.f32.mrf.mxu1  ;;  %v8889_v21 = vadd.f32 %v1745_v39, %v1657_v19  ;;  %v6725_v19 = vld [vmem:[#allocation2 + $0x84] sm:$0xf0]  ;;  %v7946_v39 = vld [vmem:[#allocation2 + $0x88] sm:$0xf0] }
 0x132   : > { %v8891_v56 = vadd.f32 %v1658_v60, %v1569_v31  ;;  %v6731_v31 = vld [vmem:[#allocation2 + $0x80] sm:$0xf]  ;;  %v6728_v15 = vor.u32 %v7944_v44, %v6725_v19 }
 0x133   : > { %v6732_v0 = vor.u32 %v7946_v39, %v6731_v31 }
 0x136   : > { %v1782_v57 = vpop.f32.mrf.mxu3 }
 0x137   : > { %v8897_v46 = vadd.f32 %v1782_v57, %v8849_v7 }
 0x138   : > { %v1572_v17 = vpop.f32.mrf.mxu0  ;;  %v8899_v26 = vpop.f32.mrf.mxu2 }
 0x139   : > { %v1661_v29 = vpop.f32.mrf.mxu1 }
 0x13a   : > { %v1662_v33 = vadd.f32 %v1661_v29, %v1572_v17 }
 0x13b   : > { %2302 = vmatmul.bf16.gmra.mxu0 %v6716_v49  ;;  %2233 = vmatmul.bf16.gmra.mxu3 %v6760_v22 }
 0x13c   : > { %2391 = vmatmul.bf16.gmra.mxu1 %v6720_v25 }
 0x13e   : > { %v2194_v7 = vpop.f32.mrf.mxu3 }
 0x13f   : > { %v8908_v5 = vadd.f32 %v2194_v7, %v8740_v32  ;;  %v7947_v7 = vld [vmem:[#allocation2 + $0x94] sm:$0xf] }
 0x140   : > { %v1574_v36 = vpop.f32.mrf.mxu0  ;;  %v1750_v37 = vpop.f32.mrf.mxu2 }
 0x141   : > { %v1663_v12 = vpop.f32.mrf.mxu1  ;;  %v8910_v47 = vadd.f32 %v1750_v37, %v1662_v33  ;;  %v8125_v33 = vld [vmem:[%s10723_s1 + $0x1a0] sm:$0xff]  ;;  %v6743_v37 = vld [vmem:[#allocation2 + $0x98] sm:$0xf] }
 0x142   : > { %v8912_v43 = vadd.f32 %v1663_v12, %v1574_v36  ;;  %v6737_v36 = vld [vmem:[#allocation2 + $0x9c] sm:$0xf0]  ;;  %2969 = vmatpush.bf16.msrb.mxu2 %v8125_v33  ;;  %v7949_v12 = vld [vmem:[#allocation2 + $0xa0] sm:$0xf0]  ;;  %v7950_v33 = vld [vmem:[#allocation2 + $0xac] sm:$0xf] }
 0x143   : > { %v6740_v19 = vor.u32 %v7947_v7, %v6737_v36  ;;  %v6755_v7 = vld [vmem:[#allocation2 + $0xb0] sm:$0xf]  ;;  %v7952_v36 = vld [vmem:[#allocation2 + $0xb8] sm:$0xf0] }
 0x146   : > { %v2196_v60 = vpop.f32.mrf.mxu3 }
 0x147   : > { %v8915_v62 = vadd.f32 %v2196_v60, %v8747_v55  ;;  %v6744_v60 = vor.u32 %v7949_v12, %v6743_v37  ;;  %v6752_v12 = vor.u32 %v7950_v33, %v6749_v61  ;;  %v7953_v33 = vld [vmem:[#allocation2 + $0xc4] sm:$0xf]  ;;  %v6761_v61 = vld [vmem:[#allocation2 + $0xcc] sm:$0xf0] }
 0x148   : > { %v1577_v32 = vpop.f32.mrf.mxu0  ;;  %v8917_v6 = vpop.f32.mrf.mxu2 }
 0x149   : > { %v1666_v10 = vpop.f32.mrf.mxu1 }
 0x14a   : > { %v1667_v38 = vadd.f32 %v1666_v10, %v1577_v32 }
 0x14b   : > { %2307 = vmatmul.bf16.gmra.mxu0 %v6728_v15  ;;  %2238 = vmatmul.bf16.gmra.mxu3 %v6772_v63 }
 0x14c   : > { %2396 = vmatmul.bf16.gmra.mxu1 %v6732_v0  ;;  %v8140_v0 = vld [vmem:[%s10723_s1 + $0x218] sm:$0xff] }
 0x14d   : > { %3148 = vmatpush.bf16.msra.mxu0 %v8140_v0 }
 0x14e   : > { %v2199_v57 = vpop.f32.mrf.mxu3 }
 0x14f   : > { %v8920_v49 = vadd.f32 %v2199_v57, %v8758_v18  ;;  %v7960_v18 = vld [vmem:[#allocation2 + $0xf8] sm:$0xf0] }
 0x150   : > { %v1579_v17 = vpop.f32.mrf.mxu0  ;;  %v1755_v22 = vpop.f32.mrf.mxu2  ;;  %v6784_v39 = vor.u32 %v7960_v18, %v6783_v35  ;;  %v7963_v35 = vld [vmem:[#allocation2 + $0x110] sm:$0xf0]  ;;  %v1718_v18 = vadd.f32 %v8800_v4, %v8787_v51 }
 0x151   : > { %v1668_v25 = vpop.f32.mrf.mxu1  ;;  %v8922_v29 = vadd.f32 %v1755_v22, %v1667_v38 }
 0x152   : > { %v8924_v55 = vadd.f32 %v1668_v25, %v1579_v17  ;;  %v6795_v25 = vld [vmem:[#allocation2 + $0x108] sm:$0xf] }
 0x156   : > { %v2201_v44 = vpop.f32.mrf.mxu3 }
 0x157   : > { %v8934_v54 = vadd.f32 %v2201_v44, %v1713_v34  ;;  %v6796_v44 = vor.u32 %v7963_v35, %v6795_v25  ;;  %v6807_v25 = vld [vmem:[#allocation2 + $0x120] sm:$0xf]  ;;  %v7966_v35 = vld [vmem:[#allocation2 + $0x128] sm:$0xf0] }
 0x158   : > { %v1582_v31 = vpop.f32.mrf.mxu0  ;;  %v8936_v15 = vpop.f32.mrf.mxu2 }
 0x159   : > { %v1671_v32 = vpop.f32.mrf.mxu1 }
 0x15a   : > { %v1672_v63 = vadd.f32 %v1671_v32, %v1582_v31  ;;  %v8124_v32 = vld [vmem:[%s10723_s1 + $0x198] sm:$0xff] }
 0x15b   : > { %2312 = vmatmul.bf16.gmra.mxu0 %v6740_v19  ;;  %2243 = vmatmul.bf16.gmra.mxu3 %v6784_v39  ;;  %v6756_v19 = vor.u32 %v7952_v36, %v6755_v7  ;;  %v6767_v7 = vld [vmem:[#allocation2 + $0xc8] sm:$0xf]  ;;  %v7955_v36 = vld [vmem:[#allocation2 + $0xd0] sm:$0xf0] }
 0x15c   : > { %2401 = vmatmul.bf16.gmra.mxu1 %v6744_v60  ;;  %2970 = vmatpush.bf16.msrb.mxu2 %v8124_v32 }
 0x15e   : > { %v2204_v13 = vpop.f32.mrf.mxu3 }
 0x15f   : > { %v8942_v45 = vadd.f32 %v2204_v13, %v8785_v8 }
 0x160   : > { %v1584_v10 = vpop.f32.mrf.mxu0  ;;  %v1760_v38 = vpop.f32.mrf.mxu2 }
 0x161   : > { %v1673_v57 = vpop.f32.mrf.mxu1  ;;  %v8944_v17 = vadd.f32 %v1760_v38, %v1672_v63 }
 0x162   : > { %v8946_v22 = vadd.f32 %v1673_v57, %v1584_v10  ;;  %v8131_v57 = vld [vmem:[%s10723_s1 + $0x1d0] sm:$0xff] }
 0x163   : > { %3060 = vmatpush.bf16.msra.mxu3 %v8131_v57  ;;  %v8122_v57 = vld [vmem:[%s10723_s1 + $0x188] sm:$0xff] }
 0x166   : > { %v2206_v37 = vpop.f32.mrf.mxu3 }
 0x167   : > { %v8950_v8 = vadd.f32 %v2206_v37, %v1718_v18  ;;  %v6764_v37 = vor.u32 %v7953_v33, %v6761_v61  ;;  %v8121_v33 = vld [vmem:[%s10723_s1 + $0x180] sm:$0xff]  ;;  %v6819_v61 = vld [vmem:[#allocation2 + $0x138] sm:$0xf] }
 0x168   : > { %v1587_v34 = vpop.f32.mrf.mxu0  ;;  %v8952_v31 = vpop.f32.mrf.mxu2 }
 0x169   : > { %v1676_v39 = vpop.f32.mrf.mxu1 }
 0x16a   : > { %v1677_v60 = vadd.f32 %v1676_v39, %v1587_v34 }
 0x16b   : > { %2317 = vmatmul.bf16.gmra.mxu0 %v6752_v12  ;;  %2248 = vmatmul.bf16.gmra.mxu3 %v6796_v44  ;;  %v6808_v44 = vor.u32 %v7966_v35, %v6807_v25  ;;  %v7956_v35 = vld [vmem:[#allocation2 + $0xdc] sm:$0xf] }
 0x16c   : > { %2406 = vmatmul.bf16.gmra.mxu1 %v6756_v19  ;;  %v6768_v19 = vor.u32 %v7955_v36, %v6767_v7  ;;  %v6773_v7 = vld [vmem:[#allocation2 + $0xe4] sm:$0xf0]  ;;  %v6779_v36 = vld [vmem:[#allocation2 + $0xe0] sm:$0xf] }
 0x16e   : > { %v2209_v51 = vpop.f32.mrf.mxu3 }
 0x16f   : > { %v8958_v4 = vadd.f32 %v2209_v51, %v8811_v16  ;;  %v1723_v16 = vadd.f32 %v8818_v41, %v8813_v20  ;;  %v8139_v51 = vld [vmem:[%s10723_s1 + $0x210] sm:$0xff] }
 0x170   : > { %v1589_v63 = vpop.f32.mrf.mxu0  ;;  %v1765_v0 = vpop.f32.mrf.mxu2  ;;  %v8123_v20 = vld [vmem:[%s10723_s1 + $0x190] sm:$0xff]  ;;  %3149 = vmatpush.bf16.msra.mxu0 %v8139_v51 }
 0x171   : > { %v1678_v13 = vpop.f32.mrf.mxu1  ;;  %v8960_v10 = vadd.f32 %v1765_v0, %v1677_v60  ;;  %2971 = vmatpush.bf16.msrb.mxu2 %v8123_v20 }
 0x172   : > { %v8962_v38 = vadd.f32 %v1678_v13, %v1589_v63 }
 0x175   : > { %2972 = vmatpush.bf16.msrb.mxu2 %v8122_v57 }
 0x176   : > { %v2211_v18 = vpop.f32.mrf.mxu3 }
 0x177   : > { %v8969_v12 = vadd.f32 %v2211_v18, %v1723_v16  ;;  %v7958_v16 = vld [vmem:[#allocation2 + $0xe8] sm:$0xf0] }
 0x178   : > { %v2283_v34 = vpop.f32.mrf.mxu0 }
 0x179   : > { %v2284_v39 = vadd.f32 %v2283_v34, %v8908_v5  ;;  %v2372_v60 = vpop.f32.mrf.mxu1  ;;  %2973 = vmatpush.bf16.msrb.mxu2 %v8121_v33  ;;  %v8074_v34 = vld [vmem:[#allocation2 + $0x38] sm:$0xf0] }
 0x17b   : > { %v8972_v32 = vadd.f32 %v2372_v60, %v2284_v39  ;;  %2322 = vmatmul.bf16.gmra.mxu0 %v6764_v37  ;;  %2253 = vmatmul.bf16.gmra.mxu3 %v6808_v44  ;;  %v6999_v37 = vld [vmem:[#allocation2 + $0x30] sm:$0xf]  ;;  %v6780_v39 = vor.u32 %v7958_v16, %v6779_v36  ;;  %v7972_v36 = vld [vmem:[#allocation2 + $0x158] sm:$0xf0]  ;;  %v6791_v16 = vld [vmem:[#allocation2 + $0xf8] sm:$0xf] }
 0x17c   : > { %2411 = vmatmul.bf16.gmra.mxu1 %v6768_v19  ;;  %v7000_v60 = vor.u32 %v8074_v34, %v6999_v37  ;;  %v7011_v34 = vld [vmem:[#allocation2 + $0x48] sm:$0xf] }
 0x17e   : > { %v2214_v41 = vpop.f32.mrf.mxu3  ;;  %2974 = vmatmul.bf16.vlgmr.msrb.gmra.mxu2 %v7000_v60 }
 0x17f   : > { %v8981_v63 = vadd.f32 %v2214_v41, %v8823_v52  ;;  %v7969_v52 = vld [vmem:[#allocation2 + $0x140] sm:$0xf0] }
 0x180   : > { %v2285_v5 = vpop.f32.mrf.mxu0  ;;  %v6820_v19 = vor.u32 %v7969_v52, %v6819_v61  ;;  %v6785_v52 = vld [vmem:[#allocation2 + $0xfc] sm:$0xf0] }
 0x181   : > { %v2286_v0 = vadd.f32 %v2285_v5, %v8915_v62  ;;  %v2374_v13 = vpop.f32.mrf.mxu1  ;;  %v6776_v62 = vor.u32 %v7956_v35, %v6773_v7  ;;  %v6831_v35 = vld [vmem:[#allocation2 + $0x150] sm:$0xf]  ;;  %v7959_v7 = vld [vmem:[#allocation2 + $0xf4] sm:$0xf] }
 0x183   : > { %v8987_v25 = vadd.f32 %v2374_v13, %v2286_v0 }
 0x186   : > { %v8992_v18 = vpop.f32.mrf.mxu3 }
 0x188   : > { %v2288_v44 = vpop.f32.mrf.mxu0 }
 0x189   : > { %v2289_v51 = vadd.f32 %v2288_v44, %v8920_v49  ;;  %v2377_v20 = vpop.f32.mrf.mxu1  ;;  %v8130_v49 = vld [vmem:[%s10723_s1 + $0x1c8] sm:$0xff]  ;;  %v8077_v44 = vld [vmem:[#allocation2 + $0x50] sm:$0xf0] }
 0x18a   : > { %3061 = vmatpush.bf16.msra.mxu3 %v8130_v49  ;;  %v7012_v60 = vor.u32 %v8077_v44, %v7011_v34  ;;  %v7964_v34 = vld [vmem:[#allocation2 + $0x118] sm:$0xf0] }
 0x18b   : > { %v8995_v41 = vadd.f32 %v2377_v20, %v2289_v51  ;;  %2327 = vmatmul.bf16.gmra.mxu0 %v6776_v62  ;;  %2258 = vmatmul.bf16.gmra.mxu3 %v6820_v19  ;;  %v7961_v62 = vld [vmem:[#allocation2 + $0x100] sm:$0xf0]  ;;  %v6832_v19 = vor.u32 %v7972_v36, %v6831_v35  ;;  %v7962_v36 = vld [vmem:[#allocation2 + $0x10c] sm:$0xf] }
 0x18c   : > { %2416 = vmatmul.bf16.gmra.mxu1 %v6780_v39  ;;  %v6792_v39 = vor.u32 %v7961_v62, %v6791_v16  ;;  %v6797_v16 = vld [vmem:[#allocation2 + $0x114] sm:$0xf0]  ;;  %v7975_v62 = vld [vmem:[#allocation2 + $0x170] sm:$0xf0] }
 0x18e   : > { %v2219_v5 = vpop.f32.mrf.mxu3  ;;  %2979 = vmatmul.bf16.gmra.mxu2 %v7012_v60 }
 0x18f   : > { %v8998_v0 = vadd.f32 %v2219_v5, %v8841_v14  ;;  %v6788_v14 = vor.u32 %v7959_v7, %v6785_v52  ;;  %v6843_v52 = vld [vmem:[#allocation2 + $0x168] sm:$0xf] }
 0x190   : > { %v2290_v13 = vpop.f32.mrf.mxu0 }
 0x191   : > { %v2291_v57 = vadd.f32 %v2290_v13, %v8934_v54  ;;  %v2379_v33 = vpop.f32.mrf.mxu1  ;;  %v8138_v13 = vld [vmem:[%s10723_s1 + $0x208] sm:$0xff] }
 0x192   : > { %3150 = vmatpush.bf16.msra.mxu0 %v8138_v13 }
 0x193   : > { %v9001_v61 = vadd.f32 %v2379_v33, %v2291_v57 }
 0x196   : > { %v9006_v37 = vpop.f32.mrf.mxu3 }
 0x198   : > { %v2293_v54 = vpop.f32.mrf.mxu0 }
 0x199   : > { %v2294_v51 = vadd.f32 %v2293_v54, %v8942_v45  ;;  %v2382_v20 = vpop.f32.mrf.mxu1  ;;  %v6800_v54 = vor.u32 %v7962_v36, %v6797_v16 }
 0x19b   : > { %v9009_v5 = vadd.f32 %v2382_v20, %v2294_v51  ;;  %2332 = vmatmul.bf16.gmra.mxu0 %v6788_v14  ;;  %2263 = vmatmul.bf16.gmra.mxu3 %v6832_v19  ;;  %v6803_v14 = vld [vmem:[#allocation2 + $0x110] sm:$0xf]  ;;  %v7023_v19 = vld [vmem:[#allocation2 + $0x60] sm:$0xf] }
 0x19c   : > { %2421 = vmatmul.bf16.gmra.mxu1 %v6792_v39  ;;  %v8080_v39 = vld [vmem:[#allocation2 + $0x68] sm:$0xf0]  ;;  %v6804_v51 = vor.u32 %v7964_v34, %v6803_v14  ;;  %v6809_v14 = vld [vmem:[#allocation2 + $0x12c] sm:$0xf0]  ;;  %v6815_v34 = vld [vmem:[#allocation2 + $0x128] sm:$0xf] }
 0x19d   : > { %v7024_v20 = vor.u32 %v8080_v39, %v7023_v19 }
 0x19e   : > { %v2224_v57 = vpop.f32.mrf.mxu3 }
 0x19f   : > { %v9015_v33 = vadd.f32 %v2224_v57, %v8856_v53  ;;  %v6844_v53 = vor.u32 %v7975_v62, %v6843_v52  ;;  %2984 = vmatmul.bf16.gmra.mxu2 %v7024_v20  ;;  %v7965_v62 = vld [vmem:[#allocation2 + $0x124] sm:$0xf] }
 0x1a0   : > { %v2295_v49 = vpop.f32.mrf.mxu0  ;;  %v6812_v39 = vor.u32 %v7965_v62, %v6809_v14  ;;  %v6821_v62 = vld [vmem:[#allocation2 + $0x144] sm:$0xf0]  ;;  %v6827_v14 = vld [vmem:[#allocation2 + $0x140] sm:$0xf] }
 0x1a1   : > { %v2296_v35 = vadd.f32 %v2295_v49, %v8950_v8  ;;  %v2384_v45 = vpop.f32.mrf.mxu1 }
 0x1a3   : > { %v9018_v7 = vadd.f32 %v2384_v45, %v2296_v35 }
 0x1a6   : > { %v9020_v44 = vpop.f32.mrf.mxu3 }
 0x1a8   : > { %v2298_v60 = vpop.f32.mrf.mxu0 }
 0x1a9   : > { %v2299_v8 = vadd.f32 %v2298_v60, %v8958_v4  ;;  %v2387_v13 = vpop.f32.mrf.mxu1  ;;  %v8129_v4 = vld [vmem:[%s10723_s1 + $0x1c0] sm:$0xff] }
 0x1aa   : > { %3062 = vmatpush.bf16.msra.mxu3 %v8129_v4  ;;  %v8083_v60 = vld [vmem:[#allocation2 + $0x80] sm:$0xf0]  ;;  %v7968_v4 = vld [vmem:[#allocation2 + $0x13c] sm:$0xf] }
 0x1ab   : > { %v9023_v57 = vadd.f32 %v2387_v13, %v2299_v8  ;;  %2337 = vmatmul.bf16.gmra.mxu0 %v6800_v54  ;;  %2268 = vmatmul.bf16.gmra.mxu3 %v6844_v53  ;;  %v7967_v54 = vld [vmem:[#allocation2 + $0x130] sm:$0xf0]  ;;  %v8137_v8 = vld [vmem:[%s10723_s1 + $0x200] sm:$0xff]  ;;  %v1728_v13 = vadd.f32 %v8833_v3, %v8825_v1 }
 0x1ac   : > { %2426 = vmatmul.bf16.gmra.mxu1 %v6804_v51  ;;  %v6816_v51 = vor.u32 %v7967_v54, %v6815_v34  ;;  %3151 = vmatpush.bf16.msra.mxu0 %v8137_v8  ;;  %v7970_v34 = vld [vmem:[#allocation2 + $0x148] sm:$0xf0] }
 0x1ad   : > { %v6828_v3 = vor.u32 %v7970_v34, %v6827_v14  ;;  %v6839_v14 = vld [vmem:[#allocation2 + $0x158] sm:$0xf]  ;;  %v7973_v34 = vld [vmem:[#allocation2 + $0x160] sm:$0xf0] }
 0x1ae   : > { %v2229_v49 = vpop.f32.mrf.mxu3 }
 0x1af   : > { %v9026_v35 = vadd.f32 %v2229_v49, %v8877_v24  ;;  %v7035_v24 = vld [vmem:[#allocation2 + $0x78] sm:$0xf]  ;;  %v2217_v49 = vadd.f32 %v8992_v18, %v1728_v13 }
 0x1b0   : > { %v2300_v45 = vpop.f32.mrf.mxu0 }
 0x1b1   : > { %v2301_v36 = vadd.f32 %v2300_v45, %v8969_v12  ;;  %v2389_v16 = vpop.f32.mrf.mxu1  ;;  %v7036_v12 = vor.u32 %v8083_v60, %v7035_v24  ;;  %v7047_v24 = vld [vmem:[#allocation2 + $0x90] sm:$0xf]  ;;  %v8086_v60 = vld [vmem:[#allocation2 + $0x98] sm:$0xf0] }
 0x1b3   : > { %v9029_v52 = vadd.f32 %v2389_v16, %v2301_v36  ;;  %2989 = vmatmul.bf16.gmra.mxu2 %v7036_v12  ;;  %v1733_v12 = vadd.f32 %v8851_v40, %v8843_v11  ;;  %v8089_v11 = vld [vmem:[#allocation2 + $0xb0] sm:$0xf0] }
 0x1b5   : > { %v2222_v13 = vadd.f32 %v9006_v37, %v1733_v12 }
 0x1b6   : > { %v9034_v19 = vpop.f32.mrf.mxu3 }
 0x1b8   : > { %v2303_v53 = vpop.f32.mrf.mxu0 }
 0x1b9   : > { %v9037_v20 = vadd.f32 %v2303_v53, %v8981_v63  ;;  %v7048_v53 = vor.u32 %v8086_v60, %v7047_v24  ;;  %v7059_v60 = vld [vmem:[#allocation2 + $0xa8] sm:$0xf] }
 0x1ba   : > { %v7060_v37 = vor.u32 %v8089_v11, %v7059_v60  ;;  %v7071_v60 = vld [vmem:[#allocation2 + $0xc0] sm:$0xf]  ;;  %v8092_v11 = vld [vmem:[#allocation2 + $0xc8] sm:$0xf0] }
 0x1bb   : > { %2342 = vmatmul.bf16.gmra.mxu0 %v6812_v39  ;;  %v6824_v39 = vor.u32 %v7968_v4, %v6821_v62  ;;  %v6833_v62 = vld [vmem:[#allocation2 + $0x15c] sm:$0xf0] }
 0x1bc   : > { %2431 = vmatmul.bf16.gmra.mxu1 %v6816_v51  ;;  %v7001_v51 = vld [vmem:[#allocation2 + $0x3c] sm:$0xf0] }
 0x1be   : > { %v2234_v45 = vpop.f32.mrf.mxu3 }
 0x1bf   : > { %v9046_v36 = vadd.f32 %v2234_v45, %v8889_v21  ;;  %v8073_v21 = vld [vmem:[#allocation2 + $0x34] sm:$0xf] }
 0x1c0   : > { %v2305_v16 = vpop.f32.mrf.mxu0  ;;  %v7004_v8 = vor.u32 %v8073_v21, %v7001_v51  ;;  %v1738_v51 = vadd.f32 %v8866_v9, %v8858_v59 }
 0x1c1   : > { %v9048_v63 = vadd.f32 %v2305_v16, %v2217_v49 }
 0x1c2   : > { %3063 = vmatmul.bf16.vlgmr.msra.gmra.mxu3 %v7004_v8  ;;  %v2227_v12 = vadd.f32 %v9020_v44, %v1738_v51  ;;  %v7072_v44 = vor.u32 %v8092_v11, %v7071_v60  ;;  %v8082_v60 = vld [vmem:[#allocation2 + $0x7c] sm:$0xf]  ;;  %v7037_v11 = vld [vmem:[#allocation2 + $0x84] sm:$0xf0] }
 0x1c3   : > { %2994 = vmatmul.bf16.gmra.mxu2 %v7048_v53  ;;  %v7013_v53 = vld [vmem:[#allocation2 + $0x54] sm:$0xf0] }
 0x1c6   : > { %v9050_v54 = vpop.f32.mrf.mxu3 }
 0x1c8   : > { %v2308_v1 = vpop.f32.mrf.mxu0 }
 0x1c9   : > { %v9053_v18 = vadd.f32 %v2308_v1, %v8998_v0  ;;  %v7971_v0 = vld [vmem:[#allocation2 + $0x154] sm:$0xf]  ;;  %v6840_v1 = vor.u32 %v7973_v34, %v6839_v14  ;;  %v7976_v14 = vld [vmem:[#allocation2 + $0x178] sm:$0xf0] }
 0x1ca   : > { %v6836_v24 = vor.u32 %v7971_v0, %v6833_v62  ;;  %v6845_v0 = vld [vmem:[#allocation2 + $0x174] sm:$0xf0]  ;;  %v6851_v62 = vld [vmem:[#allocation2 + $0x170] sm:$0xf] }
 0x1cb   : > { %2347 = vmatmul.bf16.gmra.mxu0 %v6824_v39  ;;  %v6852_v9 = vor.u32 %v7976_v14, %v6851_v62 }
 0x1cc   : > { %2436 = vmatmul.bf16.gmra.mxu1 %v6828_v3 }
 0x1ce   : > { %v2239_v49 = vpop.f32.mrf.mxu3 }
 0x1cf   : > { %v9059_v45 = vadd.f32 %v2239_v49, %v8910_v47  ;;  %v8076_v47 = vld [vmem:[#allocation2 + $0x4c] sm:$0xf] }
 0x1d0   : > { %v2310_v16 = vpop.f32.mrf.mxu0  ;;  %v7016_v21 = vor.u32 %v8076_v47, %v7013_v53  ;;  %v1743_v47 = vadd.f32 %v8884_v50, %v8879_v48  ;;  %v7007_v48 = vld [vmem:[#allocation2 + $0x38] sm:$0xf]  ;;  %v8075_v50 = vld [vmem:[#allocation2 + $0x40] sm:$0xf0] }
 0x1d1   : > { %v9061_v4 = vadd.f32 %v2310_v16, %v2222_v13 }
 0x1d2   : > { %3068 = vmatmul.bf16.gmra.mxu3 %v7016_v21  ;;  %v2232_v53 = vadd.f32 %v9034_v19, %v1743_v47 }
 0x1d3   : > { %2999 = vmatmul.bf16.gmra.mxu2 %v7060_v37 }
 0x1d6   : > { %v9063_v39 = vpop.f32.mrf.mxu3 }
 0x1d8   : > { %v2313_v40 = vpop.f32.mrf.mxu0 }
 0x1d9   : > { %v9066_v3 = vadd.f32 %v2313_v40, %v9015_v33  ;;  %v7974_v33 = vld [vmem:[#allocation2 + $0x16c] sm:$0xf] }
 0x1db   : > { %2352 = vmatmul.bf16.gmra.mxu0 %v6836_v24  ;;  %v6848_v24 = vor.u32 %v7974_v33, %v6845_v0  ;;  %v7008_v33 = vor.u32 %v8075_v50, %v7007_v48  ;;  %v8095_v0 = vld [vmem:[#allocation2 + $0xe0] sm:$0xf0]  ;;  %v8098_v48 = vld [vmem:[#allocation2 + $0xf8] sm:$0xf0]  ;;  %v7049_v50 = vld [vmem:[#allocation2 + $0x9c] sm:$0xf0] }
 0x1dc   : > { %2441 = vmatmul.bf16.gmra.mxu1 %v6840_v1  ;;  %v7025_v1 = vld [vmem:[#allocation2 + $0x6c] sm:$0xf0] }
 0x1de   : > { %v2244_v8 = vpop.f32.mrf.mxu3 }
 0x1df   : > { %v9072_v13 = vadd.f32 %v2244_v8, %v8922_v29  ;;  %v8079_v29 = vld [vmem:[#allocation2 + $0x64] sm:$0xf] }
 0x1e0   : > { %v2315_v49 = vpop.f32.mrf.mxu0  ;;  %v7028_v37 = vor.u32 %v8079_v29, %v7025_v1 }
 0x1e1   : > { %v9074_v16 = vadd.f32 %v2315_v49, %v2227_v12  ;;  %v8228_v49 = vld [vmem:[%s10724_s2 + $0x98] sm:$0xff] }
 0x1e2   : > { %3073 = vmatmul.bf16.gmra.mxu3 %v7028_v37  ;;  %4528 = vmatpush.bf16.msra.mxu1 %v8228_v49  ;;  %v7095_v49 = vld [vmem:[#allocation2 + $0xf0] sm:$0xf] }
 0x1e3   : > { %3004 = vmatmul.bf16.gmra.mxu2 %v7072_v44 }
 0x1e6   : > { %v9076_v34 = vpop.f32.mrf.mxu3 }
 0x1e8   : > { %v2318_v59 = vpop.f32.mrf.mxu0 }
 0x1e9   : > { %v9079_v40 = vadd.f32 %v2318_v59, %v9026_v35  ;;  %v8232_v35 = vld [vmem:[%s10724_s2 + $0xb8] sm:$0xff]  ;;  %v7040_v59 = vor.u32 %v8082_v60, %v7037_v11 }
 0x1ea   : > { %4621 = vmatpush.bf16.msra.mxu2 %v8232_v35 }
 0x1eb   : > { %2357 = vmatmul.bf16.gmra.mxu0 %v6848_v24 }
 0x1ec   : > { %2446 = vmatmul.bf16.gmra.mxu1 %v6852_v9  ;;  %v1748_v9 = vadd.f32 %v8899_v26, %v8891_v56  ;;  %v7096_v26 = vor.u32 %v8098_v48, %v7095_v49  ;;  %v7061_v49 = vld [vmem:[#allocation2 + $0xb4] sm:$0xf0] }
 0x1ee   : > { %v2249_v21 = vpop.f32.mrf.mxu3  ;;  %v2237_v44 = vadd.f32 %v9050_v54, %v1748_v9  ;;  %v7031_v9 = vld [vmem:[#allocation2 + $0x68] sm:$0xf] }
 0x1ef   : > { %v9085_v51 = vadd.f32 %v2249_v21, %v8944_v17  ;;  %v7083_v17 = vld [vmem:[#allocation2 + $0xd8] sm:$0xf]  ;;  %v9108_v21 = vpop.f32.mrf.mxu2 }
 0x1f0   : > { %v2320_v12 = vpop.f32.mrf.mxu0  ;;  %v7084_v14 = vor.u32 %v8095_v0, %v7083_v17  ;;  %v1753_v17 = vadd.f32 %v8917_v6, %v8912_v43 }
 0x1f1   : > { %v9090_v8 = vadd.f32 %v2320_v12, %v2232_v53  ;;  %v8078_v53 = vld [vmem:[#allocation2 + $0x58] sm:$0xf0] }
 0x1f2   : > { %3078 = vmatmul.bf16.gmra.mxu3 %v7040_v59  ;;  %v8227_v59 = vld [vmem:[%s10724_s2 + $0x90] sm:$0xff] }
 0x1f3   : > { %3009 = vmatmul.bf16.gmra.mxu2 %v7084_v14  ;;  %4529 = vmatpush.bf16.msra.mxu1 %v8227_v59  ;;  %v8084_v59 = vld [vmem:[#allocation2 + $0x88] sm:$0xf0] }
 0x1f6   : > { %v9095_v19 = vpop.f32.mrf.mxu3 }
 0x1f8   : > { %v2323_v62 = vpop.f32.mrf.mxu0 }
 0x1f9   : > { %v9098_v24 = vadd.f32 %v2323_v62, %v9046_v36  ;;  %v7019_v36 = vld [vmem:[#allocation2 + $0x50] sm:$0xf]  ;;  %v2242_v62 = vadd.f32 %v9063_v39, %v1753_v17  ;;  %v7107_v39 = vld [vmem:[#allocation2 + $0x108] sm:$0xf] }
 0x1fa   : > { %v7020_v35 = vor.u32 %v8078_v53, %v7019_v36 }
 0x1fb   : > { %3152 = vmatmul.bf16.vlgmr.msra.gmra.mxu0 %v7008_v33 }
 0x1fe   : > { %v2254_v29 = vpop.f32.mrf.mxu3 }
 0x1ff   : > { %v9104_v1 = vadd.f32 %v2254_v29, %v8960_v10  ;;  %v8085_v10 = vld [vmem:[#allocation2 + $0x94] sm:$0xf] }
 0x200   : > { %v2325_v37 = vpop.f32.mrf.mxu0  ;;  %v7052_v33 = vor.u32 %v8085_v10, %v7049_v50 }
 0x201   : > { %v9106_v47 = vadd.f32 %v2325_v37, %v2237_v44  ;;  %v9117_v0 = vpop.f32.mrf.mxu2  ;;  %v8081_v44 = vld [vmem:[#allocation2 + $0x70] sm:$0xf0] }
 0x202   : > { %3083 = vmatmul.bf16.gmra.mxu3 %v7052_v33  ;;  %v7032_v6 = vor.u32 %v8081_v44, %v7031_v9  ;;  %v8101_v37 = vld [vmem:[#allocation2 + $0x110] sm:$0xf0] }
 0x203   : > { %3014 = vmatmul.bf16.gmra.mxu2 %v7096_v26 }
 0x206   : > { %v9110_v12 = vpop.f32.mrf.mxu3 }
 0x208   : > { %v2328_v56 = vpop.f32.mrf.mxu0 }
 0x209   : > { %v9113_v54 = vadd.f32 %v2328_v56, %v9059_v45  ;;  %v9128_v29 = vpop.f32.mrf.mxu2  ;;  %v1758_v56 = vadd.f32 %v8936_v15, %v8924_v55 }
 0x20b   : > { %3157 = vmatmul.bf16.gmra.mxu0 %v7020_v35  ;;  %v8088_v35 = vld [vmem:[#allocation2 + $0xac] sm:$0xf]  ;;  %v2247_v10 = vadd.f32 %v9076_v34, %v1758_v56 }
 0x20c   : > { %v7064_v48 = vor.u32 %v8088_v35, %v7061_v49 }
 0x20e   : > { %v2259_v14 = vpop.f32.mrf.mxu3 }
 0x20f   : > { %v9121_v60 = vadd.f32 %v2259_v14, %v8854_v28  ;;  %v7108_v28 = vor.u32 %v8101_v37, %v7107_v39  ;;  %v8104_v14 = vld [vmem:[#allocation2 + $0x128] sm:$0xf0]  ;;  %v7073_v39 = vld [vmem:[#allocation2 + $0xcc] sm:$0xf0] }
 0x210   : > { %v2330_v11 = vpop.f32.mrf.mxu0 }
 0x211   : > { %v9123_v45 = vadd.f32 %v2330_v11, %v2242_v62  ;;  %v9137_v26 = vpop.f32.mrf.mxu2  ;;  %v7119_v62 = vld [vmem:[#allocation2 + $0x120] sm:$0xf] }
 0x212   : > { %3088 = vmatmul.bf16.gmra.mxu3 %v7064_v48  ;;  %v7043_v11 = vld [vmem:[#allocation2 + $0x80] sm:$0xf]  ;;  %v7120_v44 = vor.u32 %v8104_v14, %v7119_v62  ;;  %v8107_v62 = vld [vmem:[#allocation2 + $0x140] sm:$0xf0] }
 0x213   : > { %3019 = vmatmul.bf16.gmra.mxu2 %v7108_v28  ;;  %v7044_v15 = vor.u32 %v8084_v59, %v7043_v11  ;;  %v1763_v28 = vadd.f32 %v8952_v31, %v8946_v22  ;;  %v7055_v22 = vld [vmem:[#allocation2 + $0x98] sm:$0xf]  ;;  %v8087_v31 = vld [vmem:[#allocation2 + $0xa0] sm:$0xf0] }
 0x214   : > { %v7056_v11 = vor.u32 %v8087_v31, %v7055_v22 }
 0x215   : > { %v2252_v49 = vadd.f32 %v9095_v19, %v1763_v28 }
 0x216   : > { %v9130_v43 = vpop.f32.mrf.mxu3 }
 0x218   : > { %v2333_v36 = vpop.f32.mrf.mxu0 }
 0x219   : > { %v9133_v53 = vadd.f32 %v2333_v36, %v9072_v13  ;;  %v9145_v9 = vpop.f32.mrf.mxu2  ;;  %v8231_v36 = vld [vmem:[%s10724_s2 + $0xb0] sm:$0xff] }
 0x21a   : > { %4622 = vmatpush.bf16.msra.mxu2 %v8231_v36 }
 0x21b   : > { %3162 = vmatmul.bf16.gmra.mxu0 %v7032_v6 }
 0x21e   : > { %v2264_v50 = vpop.f32.mrf.mxu3 }
 0x21f   : > { %v9141_v33 = vadd.f32 %v2264_v50, %v8875_v2  ;;  %v8091_v2 = vld [vmem:[#allocation2 + $0xc4] sm:$0xf]  ;;  %v8226_v50 = vld [vmem:[%s10724_s2 + $0x88] sm:$0xff] }
 0x220   : > { %v2335_v17 = vpop.f32.mrf.mxu0  ;;  %v7076_v37 = vor.u32 %v8091_v2, %v7073_v39  ;;  %4530 = vmatpush.bf16.msra.mxu1 %v8226_v50  ;;  %v1768_v2 = vadd.f32 %v9108_v21, %v8962_v38  ;;  %v8097_v21 = vld [vmem:[#allocation2 + $0xf4] sm:$0xf] }
 0x221   : > { %v9143_v13 = vadd.f32 %v2335_v17, %v2247_v10  ;;  %v7131_v17 = vld [vmem:[#allocation2 + $0x138] sm:$0xf] }
 0x222   : > { %v9157_v35 = vpop.f32.mrf.mxu2  ;;  %3093 = vmatmul.bf16.gmra.mxu3 %v7076_v37  ;;  %v7132_v19 = vor.u32 %v8107_v62, %v7131_v17  ;;  %v2257_v37 = vadd.f32 %v9110_v12, %v1768_v2  ;;  %v7097_v12 = vld [vmem:[#allocation2 + $0xfc] sm:$0xf0]  ;;  %v7155_v2 = vld [vmem:[#allocation2 + $0x168] sm:$0xf] }
 0x223   : > { %10742 = vst [vmem:[#allocation4_spill] sm:$0xff] %v9143_v13  ;;  %3024 = vmatmul.bf16.gmra.mxu2 %v7120_v44  ;;  %v8094_v44 = vld [vmem:[#allocation2 + $0xdc] sm:$0xf] }
 0x226   : > { %v9147_v55 = vpop.f32.mrf.mxu3 }
 0x228   : > { %v2338_v6 = vpop.f32.mrf.mxu0 }
 0x229   : > { %v9150_v34 = vadd.f32 %v2338_v6, %v9085_v51 }
 0x22a   : > { %v9168_v14 = vpop.f32.mrf.mxu2 }
 0x22b   : > { %10743 = vst [vmem:[#allocation5_spill] sm:$0xff] %v9150_v34  ;;  %3167 = vmatmul.bf16.gmra.mxu0 %v7044_v15  ;;  %v7085_v15 = vld [vmem:[#allocation2 + $0xe4] sm:$0xf0] }
 0x22c   : > { %v7088_v6 = vor.u32 %v8094_v44, %v7085_v15 }
 0x22e   : > { %v2269_v48 = vpop.f32.mrf.mxu3 }
 0x22f   : > { %v9161_v51 = vadd.f32 %v2269_v48, %v8887_v58  ;;  %v8110_v48 = vld [vmem:[#allocation2 + $0x158] sm:$0xf0] }
 0x230   : > { %v2340_v56 = vpop.f32.mrf.mxu0 }
 0x231   : > { %v9163_v10 = vadd.f32 %v2340_v56, %v2252_v49  ;;  %v7143_v49 = vld [vmem:[#allocation2 + $0x150] sm:$0xf]  ;;  %v8090_v56 = vld [vmem:[#allocation2 + $0xb8] sm:$0xf0] }
 0x232   : > { %3098 = vmatmul.bf16.gmra.mxu3 %v7088_v6  ;;  %v7144_v17 = vor.u32 %v8110_v48, %v7143_v49  ;;  %v8093_v49 = vld [vmem:[#allocation2 + $0xd0] sm:$0xf0] }
 0x233   : > { %10744 = vst [vmem:[#allocation6_spill] sm:$0xff] %v9163_v10  ;;  %3029 = vmatmul.bf16.gmra.mxu2 %v7132_v19  ;;  %v7100_v19 = vor.u32 %v8097_v21, %v7097_v12 }
 0x236   : > { %v9175_v39 = vpop.f32.mrf.mxu2  ;;  %v2271_v38 = vpop.f32.mrf.mxu3 }
 0x238   : > { %v2343_v59 = vpop.f32.mrf.mxu0 }
 0x239   : > { %v9171_v58 = vadd.f32 %v2343_v59, %v9104_v1  ;;  %v7067_v1 = vld [vmem:[#allocation2 + $0xb0] sm:$0xf]  ;;  %v2262_v59 = vadd.f32 %v9130_v43, %v8864_v30 }
 0x23a   : > { %v7068_v62 = vor.u32 %v8090_v56, %v7067_v1 }
 0x23b   : > { %10745 = vst [vmem:[#allocation7_spill] sm:$0xff] %v9171_v58  ;;  %3172 = vmatmul.bf16.gmra.mxu0 %v7056_v11 }
 0x23e   : > { %v9180_v50 = vpop.f32.mrf.mxu2 }
 0x240   : > { %v2345_v36 = vpop.f32.mrf.mxu0 }
 0x241   : > { %v9178_v28 = vadd.f32 %v2345_v36, %v2257_v37  ;;  %v8113_v37 = vld [vmem:[#allocation2 + $0x170] sm:$0xf0]  ;;  %v7079_v36 = vld [vmem:[#allocation2 + $0xc8] sm:$0xf] }
 0x242   : > { %3103 = vmatmul.bf16.gmra.mxu3 %v7100_v19  ;;  %v7156_v1 = vor.u32 %v8113_v37, %v7155_v2  ;;  %v7080_v56 = vor.u32 %v8093_v49, %v7079_v36  ;;  %v2267_v19 = vadd.f32 %v9147_v55, %v8882_v42  ;;  %v7091_v2 = vld [vmem:[#allocation2 + $0xe0] sm:$0xf]  ;;  %v8103_v42 = vld [vmem:[#allocation2 + $0x124] sm:$0xf]  ;;  %v7121_v55 = vld [vmem:[#allocation2 + $0x12c] sm:$0xf0] }
 0x243   : > { %10746 = vst [vmem:[#allocation8_spill] sm:$0xff] %v9178_v28  ;;  %3034 = vmatmul.bf16.gmra.mxu2 %v7144_v17  ;;  %v7167_v49 = vld [vmem:[#allocation2 + $0x180] sm:$0xf] }
 0x245   : > { %v3064_v6 = vpop.f32.mrf.mxu3 }
 0x246   : > { %v9185_v11 = vpop.f32.mrf.mxu2 }
 0x248   : > { %v2348_v22 = vpop.f32.mrf.mxu0 }
 0x249   : > { %v9183_v31 = vadd.f32 %v2348_v22, %v9121_v60  ;;  %v8225_v60 = vld [vmem:[%s10724_s2 + $0x80] sm:$0xff]  ;;  %v7109_v22 = vld [vmem:[#allocation2 + $0x114] sm:$0xf0] }
 0x24a   : > { %4531 = vmatpush.bf16.msra.mxu1 %v8225_v60 }
 0x24b   : > { %10747 = vst [vmem:[#allocation9_spill] sm:$0xff] %v9183_v31  ;;  %3177 = vmatmul.bf16.gmra.mxu0 %v7068_v62  ;;  %v8100_v62 = vld [vmem:[#allocation2 + $0x10c] sm:$0xf] }
 0x24c   : > { %v7112_v21 = vor.u32 %v8100_v62, %v7109_v22 }
 0x24d   : > { %v3066_v43 = vpop.f32.mrf.mxu3 }
 0x24e   : > { %v9194_v48 = vpop.f32.mrf.mxu2 }
 0x250   : > { %v2350_v44 = vpop.f32.mrf.mxu0 }
 0x251   : > { %v9189_v15 = vadd.f32 %v2350_v44, %v2262_v59 }
 0x252   : > { %3108 = vmatmul.bf16.gmra.mxu3 %v7112_v21  ;;  %v7124_v21 = vor.u32 %v8103_v42, %v7121_v55  ;;  %v7179_v42 = vld [vmem:[#allocation2 + $0x198] sm:$0xf]  ;;  %v8119_v55 = vld [vmem:[#allocation2 + $0x1a0] sm:$0xf0] }
 0x253   : > { %10748 = vst [vmem:[#allocation10_spill] sm:$0xff] %v9189_v15  ;;  %3039 = vmatmul.bf16.gmra.mxu2 %v7156_v1  ;;  %v8116_v1 = vld [vmem:[#allocation2 + $0x188] sm:$0xf0] }
 0x255   : > { %v9205_v60 = vpop.f32.mrf.mxu3 }
 0x256   : > { %v9199_v12 = vpop.f32.mrf.mxu2 }
 0x258   : > { %v2353_v17 = vpop.f32.mrf.mxu0 }
 0x259   : > { %v9197_v30 = vadd.f32 %v2353_v17, %v9141_v33  ;;  %v8096_v33 = vld [vmem:[#allocation2 + $0xe8] sm:$0xf0]  ;;  %v7168_v17 = vor.u32 %v8116_v1, %v7167_v49  ;;  %v7103_v1 = vld [vmem:[#allocation2 + $0xf8] sm:$0xf] }
 0x25a   : > { %v7092_v36 = vor.u32 %v8096_v33, %v7091_v2 }
 0x25b   : > { %10749 = vst [vmem:[#allocation11_spill] sm:$0xff] %v9197_v30  ;;  %3182 = vmatmul.bf16.gmra.mxu0 %v7080_v56  ;;  %v7133_v30 = vld [vmem:[#allocation2 + $0x144] sm:$0xf0] }
 0x25d   : > { %v9212_v22 = vpop.f32.mrf.mxu3 }
 0x25e   : > { %v9207_v37 = vpop.f32.mrf.mxu2 }
 0x260   : > { %v2355_v59 = vpop.f32.mrf.mxu0 }
 0x261   : > { %v9203_v44 = vadd.f32 %v2355_v59, %v2267_v19  ;;  %v2272_v59 = vadd.f32 %v2271_v38, %v8897_v46  ;;  %v243_v46 = vld [vmem:[%s10725_s3] sm:$0xff] }
 0x262   : > { %3113 = vmatmul.bf16.gmra.mxu3 %v7124_v21 }
 0x263   : > { %10750 = vst [vmem:[#allocation12_spill] sm:$0xff] %v9203_v44  ;;  %3044 = vmatmul.bf16.gmra.mxu2 %v7168_v17  ;;  %v8106_v44 = vld [vmem:[#allocation2 + $0x13c] sm:$0xf] }
 0x264   : > { %v7136_v15 = vor.u32 %v8106_v44, %v7133_v30 }
 0x265   : > { %v9222_v49 = vpop.f32.mrf.mxu3 }
 0x266   : > { %v9214_v19 = vpop.f32.mrf.mxu2 }
 0x268   : > { %v2358_v56 = vpop.f32.mrf.mxu0 }
 0x269   : > { %v9210_v62 = vadd.f32 %v2358_v56, %v9161_v51  ;;  %v8230_v51 = vld [vmem:[%s10724_s2 + $0xa8] sm:$0xff]  ;;  %v3065_v56 = vadd.f32 %v3064_v6, %v9117_v0  ;;  %v9235_v6 = vperm.slane %v243_v46, 1 }
 0x26a   : > { %4623 = vmatpush.bf16.msra.mxu2 %v8230_v51 }
 0x26b   : > { %10751 = vst [vmem:[#allocation13_spill] sm:$0xff] %v9210_v62  ;;  %3187 = vmatmul.bf16.gmra.mxu0 %v7092_v36  ;;  %v8099_v36 = vld [vmem:[#allocation2 + $0x100] sm:$0xf0]  ;;  %v244_v62 = vlaneseq }
 0x26c   : > { %v7104_v38 = vor.u32 %v8099_v36, %v7103_v1 }
 0x26d   : > { %v9232_v51 = vpop.f32.mrf.mxu3  ;;  %v9238_v36 = vand.u32 127, %v244_v62 }
 0x26e   : > { %v9225_v17 = vpop.f32.mrf.mxu2 }
 0x26f   : > { %vm3363_vm7 = vcmp.ge.s32.totalorder %v9238_v36, 64 }
 0x270   : > { %v2360_v2 = vpop.f32.mrf.mxu0 }
 0x271   : > { %v9217_v33 = vadd.f32 %v2360_v2, %v2272_v59  ;;  %v7180_v59 = vor.u32 %v8119_v55, %v7179_v42  ;;  %v3067_v55 = vadd.f32 %v3066_v43, %v9128_v29  ;;  %v3070_v29 = vadd.f32 %v9205_v60, %v9137_v26 }
 0x272   : > { %3118 = vmatmul.bf16.gmra.mxu3 %v7136_v15 }
 0x273   : > { %10752 = vst [vmem:[#allocation14_spill] sm:$0xff] %v9217_v33  ;;  %v9230_v33 = vperm.slane %v243_v46, 0  ;;  %3049 = vmatmul.bf16.gmra.mxu2 %v7180_v59  ;;  %v8102_v59 = vld [vmem:[#allocation2 + $0x118] sm:$0xf0] }
 0x275   : > { %v9248_v30 = vpop.f32.mrf.mxu3 }
 0x276   : > { %v9240_v42 = vpop.f32.mrf.mxu2 }
 0x278   : > { %v3153_v21 = vpop.f32.mrf.mxu0 }
 0x279   : > { %v3154_v2 = vadd.f32 %v3153_v21, %v3065_v56  ;;  %v8224_v56 = vld [vmem:[%s10724_s2 + $0x78] sm:$0xff]  ;;  %v7115_v21 = vld [vmem:[#allocation2 + $0x110] sm:$0xf] }
 0x27a   : > { %4532 = vmatpush.bf16.msra.mxu1 %v8224_v56 }
 0x27b   : > { %v3233_v0 = vadd.f32 %v3154_v2, %v8972_v32  ;;  %3192 = vmatmul.bf16.gmra.mxu0 %v7104_v38  ;;  %v8229_v2 = vld [vmem:[%s10724_s2 + $0xa0] sm:$0xff] }
 0x27c   : > { %4624 = vmatpush.bf16.msra.mxu2 %v8229_v2 }
 0x27d   : > { %v3266_v1 = vmul.f32 %v9230_v33, %v3233_v0  ;;  %v9261_v0 = vpop.f32.mrf.mxu1 }
 0x27e   : > { %v9256_v43 = vpop.f32.mrf.mxu2 }
 0x27f   : > { %v3299_v32 = vadd.f32 %v9235_v6, %v3266_v1  ;;  %v7116_v1 = vor.u32 %v8102_v59, %v7115_v21 }
 0x280   : > { %v3155_v46 = vpop.f32.mrf.mxu0 }
 0x281   : > { %v3156_v38 = vadd.f32 %v3155_v46, %v3067_v55  ;;  %vm3331_vm6 = vcmp.gt.f32.partialorder %v3299_v32, 0.0  ;;  %v3396_v44 = vmul.f32 0.1, %v3299_v32 }
 0x282   : > { %vm3364_vm8 = vmor %vm3331_vm6, %vm3363_vm7 }
 0x283   : > { %v3234_v62 = vadd.f32 %v3156_v38, %v8987_v25  ;;  %v9264_v56 = vsel %vm3364_vm8, %v3299_v32, %v3396_v44  ;;  %v9270_v38 = vpop.f32.mrf.mxu3  ;;  %v8109_v32 = vld [vmem:[#allocation2 + $0x154] sm:$0xf]  ;;  %v7145_v44 = vld [vmem:[#allocation2 + $0x15c] sm:$0xf0] }
 0x284   : > { %10753 = vst [vmem:[#allocation15_spill] sm:$0xff] %v9264_v56  ;;  %v3460_v60 = vpack.c.bf16 %v9264_v56, %v9264_v56  ;;  %v7148_v59 = vor.u32 %v8109_v32, %v7145_v44  ;;  %v3072_v56 = vadd.f32 %v9212_v22, %v9145_v9 }
 0x285   : > { %v3267_v15 = vmul.f32 %v9230_v33, %v3234_v62 }
 0x286   : > { %v9278_v2 = vpop.f32.mrf.mxu2  ;;  %3123 = vmatmul.bf16.gmra.mxu3 %v7148_v59 }
 0x287   : > { %v3300_v25 = vadd.f32 %v9235_v6, %v3267_v15 }
 0x288   : > { %v3158_v55 = vpop.f32.mrf.mxu0 }
 0x289   : > { %v3159_v46 = vadd.f32 %v3158_v55, %v3070_v29  ;;  %vm3332_vm9 = vcmp.gt.f32.partialorder %v3300_v25, 0.0  ;;  %v3397_v26 = vmul.f32 0.1, %v3300_v25  ;;  %v3524_v55 = vunpack.c.l.b16 %v3460_v60 }
 0x28a   : > { %vm3365_vm10 = vmor %vm3332_vm9, %vm3363_vm7 }
 0x28b   : > { %v3235_v62 = vadd.f32 %v3159_v46, %v8995_v41  ;;  %3197 = vmatmul.bf16.gmra.mxu0 %v7116_v1  ;;  %v9273_v15 = vsel %vm3365_vm10, %v3300_v25, %v3397_v26  ;;  %v9283_v46 = vpop.f32.mrf.mxu1  ;;  %v9286_v44 = vpop.f32.mrf.mxu3 }
 0x28c   : > { %10754 = vst [vmem:[#allocation16_spill] sm:$0xff] %v9273_v15  ;;  %v3461_v21 = vpack.c.bf16 %v9273_v15, %v9273_v15 }
 0x28d   : > { %v3268_v29 = vmul.f32 %v9230_v33, %v3235_v62 }
 0x28e   : > { %v3525_v31 = vunpack.c.l.b16 %v3461_v21  ;;  %v7127_v21 = vld [vmem:[#allocation2 + $0x128] sm:$0xf] }
 0x28f   : > { %v3301_v41 = vadd.f32 %v9235_v6, %v3268_v29  ;;  %v8105_v29 = vld [vmem:[#allocation2 + $0x130] sm:$0xf0] }
 0x290   : > { %v3160_v25 = vpop.f32.mrf.mxu0  ;;  %v3556_v1 = vpack.c.b16 %v3525_v31, %v3524_v55  ;;  %v3075_v31 = vadd.f32 %v9222_v49, %v9157_v35  ;;  %v9294_v55 = vpop.f32.mrf.mxu2 }
 0x291   : > { %v3161_v26 = vadd.f32 %v3160_v25, %v3072_v56  ;;  %vm3333_vm11 = vcmp.gt.f32.partialorder %v3301_v41, 0.0  ;;  %v3398_v9 = vmul.f32 0.1, %v3301_v41 }
 0x292   : > { %3780 = vrot.lane.b32.xlu0 %v3556_v1, %s8350_s29  ;;  %v3573_v32 = vshrl.u32 %v3556_v1, 16  ;;  %v3576_v62 = vshll.u32 %v3556_v1, 16  ;;  %vm3366_vm12 = vmor %vm3333_vm11, %vm3363_vm7 }
 0x293   : > { %v3236_v60 = vadd.f32 %v3161_v26, %v9001_v61  ;;  %v7128_v26 = vor.u32 %v8105_v29, %v7127_v21  ;;  %v9301_v58 = vsel %vm3366_vm12, %v3301_v41, %v3398_v9 }
 0x294   : > { %v3716_v22 = vrot.slane %v3576_v62, 1  ;;  %v3575_v59 = vrot.slane %v3573_v32, 7  ;;  %10755 = vst [vmem:[#allocation17_spill] sm:$0xff] %v9301_v58  ;;  %v3462_v41 = vpack.c.bf16 %v9301_v58, %v9301_v58 }
 0x295   : > { %v3269_v56 = vmul.f32 %v9230_v33, %v3236_v60 }
 0x296   : > { %v3717_v25 = vor.u32 %v3716_v22, %v3573_v32  ;;  %v9296_v1 = vor.u32 %v3576_v62, %v3575_v59  ;;  %v9305_v62 = vpop.f32.mrf.mxu3  ;;  %v9307_v22 = vpop.f32.mrf.mxu1 }
 0x297   : > { %v3302_v61 = vadd.f32 %v9235_v6, %v3269_v56 }
 0x298   : > { %v3764_v15 = vsel %vm8479_vm5, %v3717_v25, 0  ;;  %v3163_v28 = vpop.f32.mrf.mxu0 }
 0x299   : > { %v4022_v35 = vunpack.c.l.b16 %v3764_v15  ;;  %v4023_v49 = vunpack.c.h.b16 %v3764_v15  ;;  %v3164_v60 = vadd.f32 %v3163_v28, %v3075_v31  ;;  %vm3334_vm13 = vcmp.gt.f32.partialorder %v3302_v61, 0.0  ;;  %v8112_v15 = vld [vmem:[#allocation2 + $0x16c] sm:$0xf]  ;;  %v7157_v28 = vld [vmem:[#allocation2 + $0x174] sm:$0xf0] }
 0x29a   : > { %vm3367_vm15 = vmor %vm3334_vm13, %vm3363_vm7  ;;  %v3399_v32 = vmul.f32 0.1, %v3302_v61  ;;  %v7160_v31 = vor.u32 %v8112_v15, %v7157_v28 }
 0x29b   : > { %v4054_v21 = vpack.c.b16 %v4022_v35, %v4022_v35  ;;  %v4055_v29 = vpack.c.b16 %v4023_v49, %v4023_v49  ;;  %v3237_v59 = vadd.f32 %v3164_v60, %v9009_v5  ;;  %3202 = vmatmul.bf16.gmra.mxu0 %v7128_v26  ;;  %v8223_v5 = vld [vmem:[%s10724_s2 + $0x70] sm:$0xff]  ;;  %v3077_v26 = vadd.f32 %v9232_v51, %v9168_v14  ;;  %v9325_v60 = vpop.f32.mrf.mxu2 }
 0x29c   : > { %v9312_v9 = vsel %vm3367_vm15, %v3302_v61, %v3399_v32  ;;  %v3526_v35 = vunpack.c.l.b16 %v3462_v41  ;;  %3128 = vmatmul.bf16.gmra.mxu3 %v7160_v31  ;;  %4533 = vmatpush.bf16.msra.mxu1 %v8223_v5  ;;  %v8108_v41 = vld [vmem:[#allocation2 + $0x148] sm:$0xf0] }
 0x29d   : > { %10756 = vst [vmem:[#allocation18_spill] sm:$0xff] %v9312_v9  ;;  %v3270_v56 = vmul.f32 %v9230_v33, %v3237_v59  ;;  %v3463_v25 = vpack.c.bf16 %v9312_v9, %v9312_v9 }
 0x29e   : > { %4119 = vst.msk [vmem:[#allocation3 + $0x14] sm:$0xf] %vm4118_vm14, %v4054_v21  ;;  %v9327_v15 = vpop.f32.mrf.mxu3 }
 0x29f   : > { %4120 = vst.msk [vmem:[#allocation3 + $0x1c] sm:$0xf] %vm4118_vm14, %v4055_v29  ;;  %v3303_v61 = vadd.f32 %v9235_v6, %v3270_v56  ;;  %v3527_v49 = vunpack.c.l.b16 %v3463_v25  ;;  %v7139_v29 = vld [vmem:[#allocation2 + $0x140] sm:$0xf]  ;;  %v3080_v56 = vadd.f32 %v9248_v30, %v9175_v39  ;;  %v9335_v25 = vpop.f32.mrf.mxu1 }
 0x2a0   : > { %v3165_v32 = vpop.f32.mrf.mxu0 }
 0x2a1   : > { %v3166_v21 = vadd.f32 %v3165_v32, %v3077_v26  ;;  %v3557_v59 = vpack.c.b16 %v3527_v49, %v3526_v35  ;;  %vm3335_vm0 = vcmp.gt.f32.partialorder %v3303_v61, 0.0  ;;  %v3400_v28 = vmul.f32 0.1, %v3303_v61 }
 0x2a2   : > { %vm3368_vm1 = vmor %vm3335_vm0, %vm3363_vm7  ;;  %v7140_v32 = vor.u32 %v8108_v41, %v7139_v29  ;;  %v8115_v41 = vld [vmem:[#allocation2 + $0x184] sm:$0xf] }
 0x2a3   : > { %v3238_v9 = vadd.f32 %v3166_v21, %v9018_v7  ;;  %3782 = vrot.lane.b32.xlu0 %v3557_v59, %s8350_s29  ;;  %v3580_v14 = vshrl.u32 %v3557_v59, 16  ;;  %v3583_v51 = vshll.u32 %v3557_v59, 16  ;;  %v9339_v58 = vsel %vm3368_vm1, %v3303_v61, %v3400_v28  ;;  %v9346_v13 = vpop.f32.mrf.mxu2 }
 0x2a4   : > { %10757 = vst [vmem:[#allocation19_spill] sm:$0xff] %v9339_v58  ;;  %v3464_v61 = vpack.c.bf16 %v9339_v58, %v9339_v58 }
 0x2a5   : > { %v8189_v31 = vld [vmem:[#allocation3 + $0x14] sm:$0xf]  ;;  %v3271_v5 = vmul.f32 %v9230_v33, %v3238_v9  ;;  %v3718_v26 = vrot.slane %v3583_v51, 1  ;;  %v3582_v7 = vrot.slane %v3580_v14, 7 }
 0x2a6   : > { %v7313_v35 = vld [vmem:[#allocation3 + $0x18] sm:$0xf0]  ;;  %v9352_v28 = vpop.f32.mrf.mxu3 }
 0x2a7   : > { %v7316_v49 = vor.u32 %v8189_v31, %v7313_v35  ;;  %v3304_v21 = vadd.f32 %v9235_v6, %v3271_v5  ;;  %v3719_v59 = vor.u32 %v3718_v26, %v3580_v14  ;;  %v9341_v39 = vor.u32 %v3583_v51, %v3582_v7 }
 0x2a8   : > { %v3168_v30 = vpop.f32.mrf.mxu0 }
 0x2a9   : > { %7485 = vmatmul.msk.bf16.vlgmr.msra.gmra.mxu2 %vm3812_vm2, %v7316_v49  ;;  %v3765_v10 = vsel %vm8479_vm5, %v3719_v59, 0  ;;  %v3169_v9 = vadd.f32 %v3168_v30, %v3080_v56  ;;  %vm3336_vm3 = vcmp.gt.f32.partialorder %v3304_v21, 0.0  ;;  %v3401_v34 = vmul.f32 0.1, %v3304_v21  ;;  %v7169_v56 = vld [vmem:[#allocation2 + $0x18c] sm:$0xf0]  ;;  %v9361_v30 = vpop.f32.mrf.mxu1 }
 0x2aa   : > { %v4024_v31 = vunpack.c.l.b16 %v3765_v10  ;;  %v4025_v29 = vunpack.c.h.b16 %v3765_v10  ;;  %vm3369_vm6 = vmor %vm3336_vm3, %vm3363_vm7  ;;  %v7172_v35 = vor.u32 %v8115_v41, %v7169_v56  ;;  %v3528_v49 = vunpack.c.l.b16 %v3464_v61  ;;  %v7151_v41 = vld [vmem:[#allocation2 + $0x158] sm:$0xf] }
 0x2ab   : > { %v3239_v14 = vadd.f32 %v3169_v9, %v9023_v57  ;;  %3207 = vmatmul.bf16.gmra.mxu0 %v7140_v32  ;;  %v9355_v51 = vsel %vm3369_vm6, %v3304_v21, %v3401_v34  ;;  %v3082_v57 = vadd.f32 %v9270_v38, %v9180_v50  ;;  %v9371_v56 = vpop.f32.mrf.mxu2  ;;  %v8111_v38 = vld [vmem:[#allocation2 + $0x160] sm:$0xf0]  ;;  %vm235_vm3 = vcmask 1043456  }
 0x2ac   : > { %10758 = vst [vmem:[#allocation20_spill] sm:$0xff] %v9355_v51  ;;  %v4056_v5 = vpack.c.b16 %v4024_v31, %v4024_v31  ;;  %v4057_v26 = vpack.c.b16 %v4025_v29, %v4025_v29  ;;  %v3465_v10 = vpack.c.bf16 %v9355_v51, %v9355_v51  ;;  %3133 = vmatmul.bf16.gmra.mxu3 %v7172_v35  ;;  %vm236_vm6 = vcmask 523268  }
 0x2ad   : > { %v3272_v7 = vmul.f32 %v9230_v33, %v3239_v14 }
 0x2ae   : > { %4121 = vst.msk [vmem:[#allocation3 + $0x24] sm:$0xf] %vm4118_vm14, %v4056_v5  ;;  %v3529_v59 = vunpack.c.l.b16 %v3465_v10  ;;  %v9368_v61 = vpop.f32.mrf.mxu3  ;;  %v3085_v10 = vadd.f32 %v9286_v44, %v9185_v11 }
 0x2af   : > { %4122 = vst.msk [vmem:[#allocation3 + $0x2c] sm:$0xf] %vm4118_vm14, %v4057_v26  ;;  %v3305_v34 = vadd.f32 %v9235_v6, %v3272_v7 }
 0x2b0   : > { %v3170_v32 = vpop.f32.mrf.mxu0  ;;  %v3558_v21 = vpack.c.b16 %v3529_v59, %v3528_v49 }
 0x2b1   : > { %v3171_v9 = vadd.f32 %v3170_v32, %v3082_v57  ;;  %vm3337_vm8 = vcmp.gt.f32.partialorder %v3305_v34, 0.0  ;;  %v3402_v5 = vmul.f32 0.1, %v3305_v34  ;;  %v9387_v58 = vpop.f32.mrf.mxu1 }
 0x2b2   : > { %3784 = vrot.lane.b32.xlu1 %v3558_v21, %s8350_s29  ;;  %v3587_v31 = vshrl.u32 %v3558_v21, 16  ;;  %v3590_v29 = vshll.u32 %v3558_v21, 16  ;;  %vm3370_vm9 = vmor %vm3337_vm8, %vm3363_vm7  ;;  %v7152_v21 = vor.u32 %v8111_v38, %v7151_v41 }
 0x2b3   : > { %v3240_v14 = vadd.f32 %v3171_v9, %v9029_v52  ;;  %v2393_v9 = vadd.f32 %v9261_v0, %v9037_v20  ;;  %vm9476_vm8 = vmor %vm236_vm6, %vm235_vm3 }
 0x2b4   : > { %v3720_v50 = vrot.slane %v3590_v29, 1  ;;  %v3589_v26 = vrot.slane %v3587_v31, 7 }
 0x2b5   : > { %v3273_v35 = vmul.f32 %v9230_v33, %v3240_v14  ;;  %v8191_v7 = vld [vmem:[#allocation3 + $0x24] sm:$0xf]  ;;  %v9385_v14 = vsel %vm3370_vm9, %v3305_v34, %v3402_v5  ;;  %v8118_v5 = vld [vmem:[#allocation2 + $0x19c] sm:$0xf] }
 0x2b6   : > { %v3721_v49 = vor.u32 %v3720_v50, %v3587_v31  ;;  %v7321_v59 = vld [vmem:[#allocation3 + $0x28] sm:$0xf0]  ;;  %v9378_v57 = vor.u32 %v3590_v29, %v3589_v26  ;;  %v9392_v50 = vpop.f32.mrf.mxu3  ;;  %v3466_v34 = vpack.c.bf16 %v9385_v14, %v9385_v14  ;;  %v7181_v26 = vld [vmem:[#allocation2 + $0x1a4] sm:$0xf0] }
 0x2b7   : > { %v3306_v52 = vadd.f32 %v9235_v6, %v3273_v35  ;;  %v7324_v32 = vor.u32 %v8191_v7, %v7321_v59  ;;  %v7184_v7 = vor.u32 %v8118_v5, %v7181_v26  ;;  %v9402_v59 = vpop.f32.mrf.mxu2 }
 0x2b8   : > { %v3766_v11 = vsel %vm8479_vm5, %v3721_v49, 0  ;;  %v3173_v44 = vpop.f32.mrf.mxu0 }
 0x2b9   : > { %v4026_v51 = vunpack.c.l.b16 %v3766_v11  ;;  %v4027_v31 = vunpack.c.h.b16 %v3766_v11  ;;  %7486 = vmatmul.msk.bf16.gmra.mxu2 %vm3812_vm2, %v7324_v32  ;;  %v3174_v29 = vadd.f32 %v3173_v44, %v3085_v10  ;;  %vm3338_vm10 = vcmp.gt.f32.partialorder %v3306_v52, 0.0 }
 0x2ba   : > { %vm3371_vm11 = vmor %vm3338_vm10, %vm3363_vm7  ;;  %v3403_v41 = vmul.f32 0.1, %v3306_v52  ;;  %v2395_v44 = vadd.f32 %v9283_v46, %v9048_v63  ;;  %v3090_v63 = vadd.f32 %v9327_v15, %v9199_v12  ;;  %v2398_v12 = vadd.f32 %v9307_v22, %v9053_v18  ;;  %v8183_v18 = vld [vmem:[%s10724_s2 + $0x30] sm:$0xff] }
 0x2bb   : > { %v4058_v20 = vpack.c.b16 %v4026_v51, %v4026_v51  ;;  %v4059_v0 = vpack.c.b16 %v4027_v31, %v4027_v31  ;;  %v3241_v38 = vadd.f32 %v3174_v29, %v2393_v9  ;;  %3212 = vmatmul.bf16.gmra.mxu0 %v7152_v21  ;;  %v8222_v51 = vld [vmem:[%s10724_s2 + $0x68] sm:$0xff]  ;;  %v3530_v21 = vunpack.c.l.b16 %v3466_v34  ;;  %v8114_v34 = vld [vmem:[#allocation2 + $0x178] sm:$0xf0] }
 0x2bc   : > { %v9396_v35 = vsel %vm3371_vm11, %v3306_v52, %v3403_v41  ;;  %v3087_v52 = vadd.f32 %v9305_v62, %v9194_v48  ;;  %3138 = vmatmul.bf16.gmra.mxu3 %v7184_v7  ;;  %4534 = vmatpush.bf16.msra.mxu1 %v8222_v51  ;;  %v7163_v41 = vld [vmem:[#allocation2 + $0x170] sm:$0xf] }
 0x2bd   : > { %10759 = vst [vmem:[#allocation21_spill] sm:$0xff] %v9396_v35  ;;  %v3274_v10 = vmul.f32 %v9230_v33, %v3241_v38  ;;  %v3467_v49 = vpack.c.bf16 %v9396_v35, %v9396_v35 }
 0x2be   : > { %4123 = vst.msk [vmem:[#allocation3 + $0x34] sm:$0xf] %vm4118_vm14, %v4058_v20  ;;  %v9413_v20 = vpop.f32.mrf.mxu3 }
 0x2bf   : > { %4124 = vst.msk [vmem:[#allocation3 + $0x3c] sm:$0xf] %vm4118_vm14, %v4059_v0  ;;  %v3307_v32 = vadd.f32 %v9235_v6, %v3274_v10  ;;  %v3531_v9 = vunpack.c.l.b16 %v3467_v49  ;;  %v9415_v0 = vpop.f32.mrf.mxu1 }
 0x2c0   : > { %v3175_v11 = vpop.f32.mrf.mxu0 }
 0x2c1   : > { %v3176_v31 = vadd.f32 %v3175_v11, %v3087_v52  ;;  %v3559_v29 = vpack.c.b16 %v3531_v9, %v3530_v21  ;;  %vm3339_vm12 = vcmp.gt.f32.partialorder %v3307_v32, 0.0  ;;  %v3404_v38 = vmul.f32 0.1, %v3307_v32  ;;  %v8184_v21 = vld [vmem:[%s10724_s2 + $0x38] sm:$0xff] }
 0x2c2   : > { %vm3372_vm13 = vmor %vm3339_vm12, %vm3363_vm7  ;;  %v7164_v52 = vor.u32 %v8114_v34, %v7163_v41  ;;  %4970 = vmatpush.bf16.msra.mxu3 %v8184_v21 }
 0x2c3   : > { %v3242_v48 = vadd.f32 %v3176_v31, %v2395_v44  ;;  %v3594_v62 = vshrl.u32 %v3559_v29, 16  ;;  %v3597_v5 = vshll.u32 %v3559_v29, 16  ;;  %3786 = vrot.lane.b32.xlu1 %v3559_v29, %s8350_s29  ;;  %v9427_v44 = vsel %vm3372_vm13, %v3307_v32, %v3404_v38  ;;  %v9429_v31 = vpop.f32.mrf.mxu2 }
 0x2c4   : > { %10760 = vst [vmem:[#allocation22_spill] sm:$0xff] %v9427_v44  ;;  %v3468_v38 = vpack.c.bf16 %v9427_v44, %v9427_v44 }
 0x2c5   : > { %v8193_v26 = vld [vmem:[#allocation3 + $0x34] sm:$0xf]  ;;  %v3275_v46 = vmul.f32 %v9230_v33, %v3242_v48  ;;  %v3722_v7 = vrot.slane %v3597_v5, 1  ;;  %v3596_v49 = vrot.slane %v3594_v62, 7 }
 0x2c6   : > { %v7329_v10 = vld [vmem:[#allocation3 + $0x38] sm:$0xf0]  ;;  %4971 = vmatpush.bf16.msra.mxu3 %v8183_v18 }
 0x2c7   : > { %v7332_v51 = vor.u32 %v8193_v26, %v7329_v10  ;;  %v3308_v9 = vadd.f32 %v9235_v6, %v3275_v46  ;;  %v3723_v11 = vor.u32 %v3722_v7, %v3594_v62  ;;  %v9431_v29 = vor.u32 %v3597_v5, %v3596_v49  ;;  %v9447_v26 = vpop.f32.mrf.mxu3  ;;  %v9451_v10 = vpop.f32.mrf.mxu1 }
 0x2c8   : > { %v3178_v15 = vpop.f32.mrf.mxu0 }
 0x2c9   : > { %v3767_v41 = vsel %vm8479_vm5, %v3723_v11, 0  ;;  %7487 = vmatmul.msk.bf16.gmra.mxu2 %vm3812_vm2, %v7332_v51  ;;  %v3179_v48 = vadd.f32 %v3178_v15, %v3090_v63  ;;  %vm3340_vm15 = vcmp.gt.f32.partialorder %v3308_v9, 0.0  ;;  %v3405_v34 = vmul.f32 0.1, %v3308_v9  ;;  %v8188_v51 = vld [vmem:[%s10724_s2 + $0x58] sm:$0xff] }
 0x2ca   : > { %v4028_v62 = vunpack.c.l.b16 %v3767_v41  ;;  %v4029_v32 = vunpack.c.h.b16 %v3767_v41  ;;  %vm3373_vm0 = vmor %vm3340_vm15, %vm3363_vm7  ;;  %v3092_v11 = vadd.f32 %v9352_v28, %v9207_v37  ;;  %5063 = vmatpush.bf16.msrb.mxu0 %v8188_v51  ;;  %v3095_v51 = vadd.f32 %v9368_v61, %v9214_v19 }
 0x2cb   : > { %v3243_v22 = vadd.f32 %v3179_v48, %v2398_v12  ;;  %3217 = vmatmul.bf16.gmra.mxu0 %v7164_v52  ;;  %v9445_v5 = vsel %vm3373_vm0, %v3308_v9, %v3405_v34  ;;  %v3532_v52 = vunpack.c.l.b16 %v3468_v38  ;;  %v8182_v9 = vld [vmem:[%s10724_s2 + $0x28] sm:$0xff]  ;;  %v2400_v48 = vadd.f32 %v9335_v25, %v9061_v4  ;;  %v8181_v38 = vld [vmem:[%s10724_s2 + $0x20] sm:$0xff]  ;;  %v8117_v25 = vld [vmem:[#allocation2 + $0x190] sm:$0xf0] }
 0x2cc   : > { %10761 = vst [vmem:[#allocation23_spill] sm:$0xff] %v9445_v5  ;;  %v4060_v63 = vpack.c.b16 %v4028_v62, %v4028_v62  ;;  %v4061_v46 = vpack.c.b16 %v4029_v32, %v4029_v32  ;;  %v3469_v7 = vpack.c.bf16 %v9445_v5, %v9445_v5  ;;  %4972 = vmatpush.bf16.msra.mxu3 %v8182_v9  ;;  %v9467_v62 = vpop.f32.mrf.mxu2  ;;  %v8187_v32 = vld [vmem:[%s10724_s2 + $0x50] sm:$0xff]  ;;  %v7175_v4 = vld [vmem:[#allocation2 + $0x188] sm:$0xf] }
 0x2cd   : > { %v3276_v49 = vmul.f32 %v9230_v33, %v3243_v22 }
 0x2ce   : > { %4125 = vst.msk [vmem:[#allocation3 + $0x44] sm:$0xf] %vm4118_vm14, %v4060_v63  ;;  %v3533_v21 = vunpack.c.l.b16 %v3469_v7  ;;  %5064 = vmatpush.bf16.msrb.mxu0 %v8187_v32  ;;  %v8339_v7 = vld [vmem:[#allocation2] sm:$0xff] }
 0x2cf   : > { %4126 = vst.msk [vmem:[#allocation3 + $0x4c] sm:$0xf] %vm4118_vm14, %v4061_v46  ;;  %v3309_v12 = vadd.f32 %v9235_v6, %v3276_v49 }
 0x2d0   : > { %v3180_v15 = vpop.f32.mrf.mxu0  ;;  %v3560_v41 = vpack.c.b16 %v3533_v21, %v3532_v52  ;;  %4973 = vmatpush.bf16.msra.mxu3 %v8181_v38  ;;  %238 = vst.msk [vmem:[#allocation3] sm:$0xff] %vm9476_vm8, %v8339_v7 }
 0x2d1   : > { %v3181_v34 = vadd.f32 %v3180_v15, %v3092_v11  ;;  %vm3341_vm1 = vcmp.gt.f32.partialorder %v3309_v12, 0.0  ;;  %v3406_v63 = vmul.f32 0.1, %v3309_v12  ;;  %v9492_v11 = vpop.f32.mrf.mxu3  ;;  %v8186_v15 = vld [vmem:[%s10724_s2 + $0x48] sm:$0xff]  ;;  %239 = vst.msk [vmem:[#allocation3 + $0x8] sm:$0xff] %vm9476_vm8, %v8339_v7 }
 0x2d2   : > { %3788 = vrot.lane.b32.xlu2 %v3560_v41, %s8350_s29  ;;  %v3601_v37 = vshrl.u32 %v3560_v41, 16  ;;  %v3604_v28 = vshll.u32 %v3560_v41, 16  ;;  %vm9488_vm9 = vmor %vm3341_vm1, %vm3363_vm7  ;;  %v8180_v41 = vld [vmem:[%s10724_s2 + $0x18] sm:$0xff]  ;;  %241 = vst.msk [vmem:[#allocation3 + $0x110] sm:$0xff] %vm9476_vm8, %v8339_v7  ;;  %5065 = vmatpush.bf16.msrb.mxu0 %v8186_v15  ;;  %v8221_v15 = vld [vmem:[%s10724_s2 + $0x60] sm:$0xff] }
 0x2d3   : > { %v3244_v18 = vadd.f32 %v3181_v34, %v2400_v48  ;;  %v9506_v34 = vpop.f32.mrf.mxu1  ;;  %242 = vst.msk [vmem:[#allocation3 + $0x118] sm:$0xff] %vm9476_vm8, %v8339_v7  ;;  %4535 = vmatpush.bf16.msra.mxu1 %v8221_v15 }
 0x2d4   : > { %v3724_v46 = vrot.slane %v3604_v28, 1  ;;  %v3603_v49 = vrot.slane %v3601_v37, 7  ;;  %4974 = vmatpush.bf16.msra.mxu3 %v8180_v41  ;;  %v9530_v7 = vpop.f32.mrf.mxu2 }
 0x2d5   : > { %v3277_v52 = vmul.f32 %v9230_v33, %v3244_v18  ;;  %v8195_v21 = vld [vmem:[#allocation3 + $0x44] sm:$0xf]  ;;  %v7176_v18 = vor.u32 %v8117_v25, %v7175_v4  ;;  %v8185_v25 = vld [vmem:[%s10724_s2 + $0x40] sm:$0xff] }
 0x2d6   : > { %v3725_v19 = vor.u32 %v3724_v46, %v3601_v37  ;;  %v7337_v61 = vld [vmem:[#allocation3 + $0x48] sm:$0xf0]  ;;  %v9504_v48 = vor.u32 %v3604_v28, %v3603_v49  ;;  %v2403_v37 = vadd.f32 %v9361_v30, %v9066_v3  ;;  %v9517_v28 = vsel %vm9488_vm9, %v3309_v12, %v3406_v63  ;;  %v8179_v30 = vld [vmem:[%s10724_s2 + $0x10] sm:$0xff]  ;;  %5066 = vmatpush.bf16.msrb.mxu0 %v8185_v25  ;;  %v7187_v25 = vld [vmem:[#allocation2 + $0x1a0] sm:$0xf] }
 0x2d7   : > { %v3310_v32 = vadd.f32 %v9235_v6, %v3277_v52  ;;  %v7340_v38 = vor.u32 %v8195_v21, %v7337_v61  ;;  %10766 = vst [vmem:[#allocation24_spill] sm:$0xff] %v9517_v28  ;;  %v3097_v61 = vadd.f32 %v9392_v50, %v9225_v17  ;;  %v8177_v17 = vld [vmem:[%s10724_s2] sm:$0xff] }
 0x2d8   : > { %v3768_v46 = vsel %vm8479_vm5, %v3725_v19, 0  ;;  %v3183_v35 = vpop.f32.mrf.mxu0  ;;  %4975 = vmatpush.bf16.msra.mxu3 %v8179_v30  ;;  %v8178_v19 = vld [vmem:[%s10724_s2 + $0x8] sm:$0xff] }
 0x2d9   : > { %v4030_v49 = vunpack.c.l.b16 %v3768_v46  ;;  %v4031_v52 = vunpack.c.h.b16 %v3768_v46  ;;  %7488 = vmatmul.msk.bf16.gmra.mxu2 %vm3812_vm2, %v7340_v38  ;;  %v3184_v4 = vadd.f32 %v3183_v35, %v3095_v51  ;;  %vm3342_vm10 = vcmp.gt.f32.partialorder %v3310_v32, 0.0 }
 0x2da   : > { %vm3375_vm11 = vmor %vm3342_vm10, %vm3363_vm7  ;;  %v3407_v3 = vmul.f32 0.1, %v3310_v32  ;;  %v3470_v35 = vpack.c.bf16 %v9517_v28, %v9517_v28  ;;  %v2405_v46 = vadd.f32 %v9387_v58, %v9074_v16  ;;  %v3100_v58 = vadd.f32 %v9413_v20, %v9240_v42 }
 0x2db   : > { %v4062_v12 = vpack.c.b16 %v4030_v49, %v4030_v49  ;;  %v4063_v22 = vpack.c.b16 %v4031_v52, %v4031_v52  ;;  %v3245_v63 = vadd.f32 %v3184_v4, %v2403_v37  ;;  %3222 = vmatmul.bf16.gmra.mxu0 %v7176_v18  ;;  %v9548_v18 = vpop.f32.mrf.mxu3  ;;  %v9552_v49 = vpop.f32.mrf.mxu1 }
 0x2dc   : > { %v9532_v51 = vsel %vm3375_vm11, %v3310_v32, %v3407_v3  ;;  %v3534_v32 = vunpack.c.l.b16 %v3470_v35  ;;  %4976 = vmatpush.bf16.msra.mxu3 %v8178_v19  ;;  %v7503_v35 = vld [vmem:[#allocation3] sm:$0xf] }
 0x2dd   : > { %4127 = vst.msk [vmem:[#allocation3 + $0x54] sm:$0xf] %vm4118_vm14, %v4062_v12  ;;  %v3278_v21 = vmul.f32 %v9230_v33, %v3245_v63  ;;  %v3471_v9 = vpack.c.bf16 %v9532_v51, %v9532_v51 }
 0x2de   : > { %4128 = vst.msk [vmem:[#allocation3 + $0x5c] sm:$0xf] %vm4118_vm14, %v4063_v22  ;;  %v8120_v22 = vld [vmem:[#allocation2 + $0x1a8] sm:$0xf0] }
 0x2df   : > { %v3311_v41 = vadd.f32 %v9235_v6, %v3278_v21  ;;  %v3535_v38 = vunpack.c.l.b16 %v3471_v9  ;;  %v8146_v21 = vld [vmem:[#allocation3 + $0x4] sm:$0xf0] }
 0x2e0   : > { %v3185_v37 = vpop.f32.mrf.mxu0  ;;  %4977 = vmatpush.bf16.msra.mxu3 %v8177_v17  ;;  %v2408_v17 = vadd.f32 %v9415_v0, %v9079_v40 }
 0x2e1   : > { %v3186_v52 = vadd.f32 %v3185_v37, %v3097_v61  ;;  %v3561_v4 = vpack.c.b16 %v3535_v38, %v3534_v32  ;;  %vm3343_vm12 = vcmp.gt.f32.partialorder %v3311_v41, 0.0  ;;  %v3408_v50 = vmul.f32 0.1, %v3311_v41  ;;  %v9567_v61 = vpop.f32.mrf.mxu2 }
 0x2e2   : > { %vm9560_vm13 = vmor %vm3343_vm12, %vm3363_vm7  ;;  %v7504_v32 = vor.u32 %v8146_v21, %v7503_v35 }
 0x2e3   : > { %v3246_v3 = vadd.f32 %v3186_v52, %v2405_v46  ;;  %v3608_v30 = vshrl.u32 %v3561_v4, 16  ;;  %v3611_v12 = vshll.u32 %v3561_v4, 16  ;;  %3790 = vrot.lane.b32.xlu2 %v3561_v4, %s8350_s29  ;;  %v7188_v46 = vor.u32 %v8120_v22, %v7187_v25  ;;  %v9587_v40 = vpop.f32.mrf.mxu1 }
 0x2e4   : > { %v8197_v63 = vld [vmem:[#allocation3 + $0x54] sm:$0xf]  ;;  %v9572_v42 = vsel %vm9560_vm13, %v3311_v41, %v3408_v50  ;;  %4978 = vmatmul.bf16.vlgmr.msra.gmra.mxu3 %v7504_v32  ;;  %v3102_v32 = vadd.f32 %v9447_v26, %v9256_v43  ;;  %v8145_v26 = vld [vmem:[#allocation3 + $0x4] sm:$0xf] }
 0x2e5   : > { %v3279_v9 = vmul.f32 %v9230_v33, %v3246_v3  ;;  %v3726_v15 = vrot.slane %v3611_v12, 1  ;;  %v7345_v19 = vld [vmem:[#allocation3 + $0x58] sm:$0xf0]  ;;  %v3610_v38 = vrot.slane %v3608_v30, 7  ;;  %v3472_v50 = vpack.c.bf16 %v9572_v42, %v9572_v42 }
 0x2e6   : > { %v7348_v37 = vor.u32 %v8197_v63, %v7345_v19 }
 0x2e7   : > { %v3312_v52 = vadd.f32 %v9235_v6, %v3279_v9  ;;  %v3727_v4 = vor.u32 %v3726_v15, %v3608_v30  ;;  %v9574_v20 = vor.u32 %v3611_v12, %v3610_v38  ;;  %v9581_v30 = vpop.f32.mrf.mxu3  ;;  %v3536_v15 = vunpack.c.l.b16 %v3472_v50  ;;  %v7505_v50 = vld [vmem:[#allocation3 + $0x8] sm:$0xf0] }
 0x2e8   : > { %v3188_v3 = vpop.f32.mrf.mxu0 }
 0x2e9   : > { %v3769_v35 = vsel %vm8479_vm5, %v3727_v4, 0  ;;  %7489 = vmatmul.msk.bf16.gmra.mxu2 %vm3812_vm2, %v7348_v37  ;;  %v3189_v25 = vadd.f32 %v3188_v3, %v3100_v58  ;;  %vm3344_vm15 = vcmp.gt.f32.partialorder %v3312_v52, 0.0  ;;  %v3409_v22 = vmul.f32 0.1, %v3312_v52  ;;  %v9599_v37 = vpop.f32.mrf.mxu2  ;;  %v8276_v3 = vld [vmem:[%s10724_s2 + $0x118] sm:$0xff] }
 0x2ea   : > { %v4032_v16 = vunpack.c.l.b16 %v3769_v35  ;;  %v4033_v41 = vunpack.c.h.b16 %v3769_v35  ;;  %vm3377_vm0 = vmor %vm3344_vm15, %vm3363_vm7  ;;  %v2410_v4 = vadd.f32 %v9451_v10, %v9090_v8  ;;  %5563 = vmatpush.bf16.msrb.mxu2 %v8276_v3  ;;  %v3105_v10 = vadd.f32 %v9492_v11, %v9278_v2 }
 0x2eb   : > { %v3247_v0 = vadd.f32 %v3189_v25, %v2408_v17  ;;  %3227 = vmatmul.bf16.gmra.mxu0 %v7188_v46  ;;  %v9589_v12 = vsel %vm3377_vm0, %v3312_v52, %v3409_v22  ;;  %v9609_v8 = vpop.f32.mrf.mxu1 }
 0x2ec   : > { %v4064_v63 = vpack.c.b16 %v4032_v16, %v4032_v16  ;;  %v4065_v58 = vpack.c.b16 %v4033_v41, %v4033_v41  ;;  %v3473_v21 = vpack.c.bf16 %v9589_v12, %v9589_v12 }
 0x2ed   : > { %v3280_v9 = vmul.f32 %v9230_v33, %v3247_v0 }
 0x2ee   : > { %4129 = vst.msk [vmem:[#allocation3 + $0x64] sm:$0xf] %vm4118_vm14, %v4064_v63  ;;  %v3537_v19 = vunpack.c.l.b16 %v3473_v21 }
 0x2ef   : > { %4130 = vst.msk [vmem:[#allocation3 + $0x6c] sm:$0xf] %vm4118_vm14, %v4065_v58  ;;  %v3313_v38 = vadd.f32 %v9235_v6, %v3280_v9  ;;  %v9607_v22 = vpop.f32.mrf.mxu3 }
 0x2f0   : > { %v3190_v46 = vpop.f32.mrf.mxu0  ;;  %v3562_v52 = vpack.c.b16 %v3537_v19, %v3536_v15 }
 0x2f1   : > { %v3191_v17 = vadd.f32 %v3190_v46, %v3102_v32  ;;  %vm3345_vm1 = vcmp.gt.f32.partialorder %v3313_v38, 0.0  ;;  %v3410_v16 = vmul.f32 0.1, %v3313_v38  ;;  %v7508_v46 = vor.u32 %v8145_v26, %v7505_v50 }
 0x2f2   : > { %v3615_v35 = vshrl.u32 %v3562_v52, 16  ;;  %v3618_v25 = vshll.u32 %v3562_v52, 16  ;;  %3792 = vrot.lane.b32.xlu0 %v3562_v52, %s8350_s29  ;;  %vm3378_vm3 = vmor %vm3345_vm1, %vm3363_vm7  ;;  %v2413_v52 = vadd.f32 %v9506_v34, %v9098_v24 }
 0x2f3   : > { %v3248_v43 = vadd.f32 %v3191_v17, %v2410_v4  ;;  %v9623_v4 = vsel %vm3378_vm3, %v3313_v38, %v3410_v16 }
 0x2f4   : > { %v3728_v41 = vrot.slane %v3618_v25, 1  ;;  %v3617_v0 = vrot.slane %v3615_v35, 7  ;;  %v3474_v38 = vpack.c.bf16 %v9623_v4, %v9623_v4 }
 0x2f5   : > { %v3281_v63 = vmul.f32 %v9230_v33, %v3248_v43  ;;  %v8199_v58 = vld [vmem:[#allocation3 + $0x64] sm:$0xf] }
 0x2f6   : > { %v3729_v21 = vor.u32 %v3728_v41, %v3615_v35  ;;  %v7353_v9 = vld [vmem:[#allocation3 + $0x68] sm:$0xf0]  ;;  %v9616_v15 = vor.u32 %v3618_v25, %v3617_v0  ;;  %v9626_v25 = vpop.f32.mrf.mxu2 }
 0x2f7   : > { %v3314_v19 = vadd.f32 %v9235_v6, %v3281_v63  ;;  %v7356_v32 = vor.u32 %v8199_v58, %v7353_v9  ;;  %v9639_v0 = vpop.f32.mrf.mxu3  ;;  %v9645_v63 = vpop.f32.mrf.mxu1  ;;  %v3107_v58 = vadd.f32 %v9548_v18, %v9294_v55  ;;  %v3538_v9 = vunpack.c.l.b16 %v3474_v38 }
 0x2f8   : > { %v3770_v2 = vsel %vm8479_vm5, %v3729_v21, 0  ;;  %v3193_v11 = vpop.f32.mrf.mxu0  ;;  %v3110_v55 = vadd.f32 %v9581_v30, %v9325_v60 }
 0x2f9   : > { %v4034_v17 = vunpack.c.l.b16 %v3770_v2  ;;  %v4035_v3 = vunpack.c.h.b16 %v3770_v2  ;;  %7490 = vmatmul.msk.bf16.gmra.mxu2 %vm3812_vm2, %v7356_v32  ;;  %v3194_v35 = vadd.f32 %v3193_v11, %v3105_v10  ;;  %vm3346_vm6 = vcmp.gt.f32.partialorder %v3314_v19, 0.0  ;;  %v8272_v10 = vld [vmem:[%s10724_s2 + $0xf8] sm:$0xff] }
 0x2fa   : > { %vm3379_vm8 = vmor %vm3346_vm6, %vm3363_vm7  ;;  %v3411_v43 = vmul.f32 0.1, %v3314_v19  ;;  %5470 = vmatpush.bf16.msrb.mxu1 %v8272_v10 }
 0x2fb   : > { %v4066_v26 = vpack.c.b16 %v4034_v17, %v4034_v17  ;;  %v4067_v24 = vpack.c.b16 %v4035_v3, %v4035_v3  ;;  %v3249_v34 = vadd.f32 %v3194_v35, %v2413_v52  ;;  %7677 = vmatmul.msk.bf16.vlgmr.msrb.gmra.mxu0 %vm3812_vm2, %v7508_v46  ;;  %v2415_v46 = vadd.f32 %v9552_v49, %v9106_v47  ;;  %v8147_v49 = vld [vmem:[#allocation3 + $0x14] sm:$0xf] }
 0x2fc   : > { %v9633_v16 = vsel %vm3379_vm8, %v3314_v19, %v3411_v43 }
 0x2fd   : > { %4131 = vst.msk [vmem:[#allocation3 + $0x74] sm:$0xf] %vm4118_vm14, %v4066_v26  ;;  %v3282_v41 = vmul.f32 %v9230_v33, %v3249_v34  ;;  %v3475_v50 = vpack.c.bf16 %v9633_v16, %v9633_v16  ;;  %v3700_v26 = vsel %vm8470_vm4, 0, %v9296_v1 }
 0x2fe   : > { %4132 = vst.msk [vmem:[#allocation3 + $0x7c] sm:$0xf] %vm4118_vm14, %v4067_v24  ;;  %v9653_v43 = vpop.f32.mrf.mxu2 }
 0x2ff   : > { %v3315_v21 = vadd.f32 %v9235_v6, %v3282_v41  ;;  %v3539_v19 = vunpack.c.l.b16 %v3475_v50  ;;  %v7513_v50 = vld [vmem:[#allocation3 + $0x18] sm:$0xf0]  ;;  %v9673_v28 = vpop.f32.mrf.mxu1 }
 0x300   : > { %v3195_v32 = vpop.f32.mrf.mxu0 }
 0x301   : > { %v3196_v52 = vadd.f32 %v3195_v32, %v3107_v58  ;;  %v3563_v2 = vpack.c.b16 %v3539_v19, %v3538_v9  ;;  %vm3347_vm9 = vcmp.gt.f32.partialorder %v3315_v21, 0.0  ;;  %v3412_v11 = vmul.f32 0.1, %v3315_v21  ;;  %v9667_v32 = vpop.f32.mrf.mxu3 }
 0x302   : > { %vm3380_vm10 = vmor %vm3347_vm9, %vm3363_vm7 }
 0x303   : > { %v3250_v17 = vadd.f32 %v3196_v52, %v2415_v46  ;;  %v3622_v3 = vshrl.u32 %v3563_v2, 16  ;;  %v3625_v35 = vshll.u32 %v3563_v2, 16  ;;  %3794 = vrot.lane.b32.xlu1 %v3563_v2, %s8350_s29  ;;  %v9665_v1 = vsel %vm3380_vm10, %v3315_v21, %v3412_v11 }
 0x304   : > { %v3781_v18 = vpop.permute.xlu0 %3780  ;;  %v8201_v47 = vld [vmem:[#allocation3 + $0x74] sm:$0xf]  ;;  %v2418_v52 = vadd.f32 %v9587_v40, %v9113_v54  ;;  %v3476_v54 = vpack.c.bf16 %v9665_v1, %v9665_v1 }
 0x305   : > { %v3283_v24 = vmul.f32 %v9230_v33, %v3250_v17  ;;  %v3730_v34 = vrot.slane %v3625_v35, 1  ;;  %v3815_v38 = vsel %vm3812_vm2, %v3700_v26, %v3781_v18  ;;  %v7361_v41 = vld [vmem:[#allocation3 + $0x78] sm:$0xf0]  ;;  %v3624_v10 = vrot.slane %v3622_v3, 7 }
 0x306   : > { %v3877_v58 = vunpack.c.l.b16 %v3815_v38  ;;  %v3878_v60 = vunpack.c.h.b16 %v3815_v38  ;;  %v7364_v30 = vor.u32 %v8201_v47, %v7361_v41  ;;  %v7516_v26 = vor.u32 %v8147_v49, %v7513_v50  ;;  %v9688_v41 = vpop.f32.mrf.mxu2 }
 0x307   : > { %v3316_v9 = vadd.f32 %v9235_v6, %v3283_v24  ;;  %v3731_v19 = vor.u32 %v3730_v34, %v3622_v3  ;;  %v9669_v46 = vor.u32 %v3625_v35, %v3624_v10  ;;  %v3540_v50 = vunpack.c.l.b16 %v3476_v54 }
 0x308   : > { %v3909_v2 = vpack.c.b16 %v3877_v58, %v3877_v58  ;;  %v3910_v17 = vpack.c.b16 %v3878_v60, %v3878_v60  ;;  %v3198_v18 = vpop.f32.mrf.mxu0  ;;  %v3112_v58 = vadd.f32 %v9607_v22, %v9346_v13 }
 0x309   : > { %v3771_v47 = vsel %vm8479_vm5, %v3731_v19, 0  ;;  %7491 = vmatmul.msk.bf16.gmra.mxu2 %vm3812_vm2, %v7364_v30  ;;  %v3199_v21 = vadd.f32 %v3198_v18, %v3110_v55  ;;  %vm3348_vm11 = vcmp.gt.f32.partialorder %v3316_v9, 0.0  ;;  %v3413_v11 = vmul.f32 0.1, %v3316_v9  ;;  %v9697_v18 = vpop.f32.mrf.mxu3 }
 0x30a   : > { %v4036_v3 = vunpack.c.l.b16 %v3771_v47  ;;  %v4037_v35 = vunpack.c.h.b16 %v3771_v47  ;;  %3974 = vst [vmem:[#allocation3 + $0x10] sm:$0xf] %v3909_v2  ;;  %vm3381_vm12 = vmor %vm3348_vm11, %vm3363_vm7  ;;  %v2420_v19 = vadd.f32 %v9609_v8, %v9123_v45  ;;  %v8149_v45 = vld [vmem:[#allocation3 + $0x24] sm:$0xf] }
 0x30b   : > { %3975 = vst [vmem:[#allocation3 + $0x18] sm:$0xf] %v3910_v17  ;;  %v3251_v40 = vadd.f32 %v3199_v21, %v2418_v52  ;;  %7678 = vmatmul.msk.bf16.gmra.mxu0 %vm3812_vm2, %v7516_v26  ;;  %v9683_v49 = vsel %vm3381_vm12, %v3316_v9, %v3413_v11 }
 0x30c   : > { %v4068_v24 = vpack.c.b16 %v4036_v3, %v4036_v3  ;;  %v4069_v34 = vpack.c.b16 %v4037_v35, %v4037_v35  ;;  %v3477_v55 = vpack.c.bf16 %v9683_v49, %v9683_v49  ;;  %v9700_v3 = vpop.f32.mrf.mxu1 }
 0x30d   : > { %v3284_v38 = vmul.f32 %v9230_v33, %v3251_v40 }
 0x30e   : > { %4133 = vst.msk [vmem:[#allocation3 + $0x84] sm:$0xf] %vm4118_vm14, %v4068_v24  ;;  %v3541_v10 = vunpack.c.l.b16 %v3477_v55  ;;  %v3701_v55 = vsel %vm8470_vm4, 0, %v9341_v39  ;;  %v9714_v39 = vpop.f32.mrf.mxu2 }
 0x30f   : > { %4134 = vst.msk [vmem:[#allocation3 + $0x8c] sm:$0xf] %vm4118_vm14, %v4069_v34  ;;  %v3317_v60 = vadd.f32 %v9235_v6, %v3284_v38 }
 0x310   : > { %v3200_v30 = vpop.f32.mrf.mxu0  ;;  %v3564_v9 = vpack.c.b16 %v3541_v10, %v3540_v50  ;;  %v7521_v50 = vld [vmem:[#allocation3 + $0x28] sm:$0xf0]  ;;  %v3115_v10 = vadd.f32 %v9639_v0, %v9371_v56 }
 0x311   : > { %v3201_v52 = vadd.f32 %v3200_v30, %v3112_v58  ;;  %v7311_v2 = vld [vmem:[#allocation3 + $0x10] sm:$0xf]  ;;  %vm3349_vm13 = vcmp.gt.f32.partialorder %v3317_v60, 0.0  ;;  %v3414_v54 = vmul.f32 0.1, %v3317_v60 }
 0x312   : > { %v7511_v17 = vld [vmem:[#allocation3 + $0x10] sm:$0xf]  ;;  %v3629_v26 = vshrl.u32 %v3564_v9, 16  ;;  %v3632_v47 = vshll.u32 %v3564_v9, 16  ;;  %3796 = vrot.lane.b32.xlu2 %v3564_v9, %s8350_s29  ;;  %v8190_v21 = vld [vmem:[#allocation3 + $0x14] sm:$0xf0]  ;;  %vm3382_vm15 = vmor %vm3349_vm13, %vm3363_vm7 }
 0x313   : > { %v8148_v11 = vld [vmem:[#allocation3 + $0x14] sm:$0xf0]  ;;  %v3252_v13 = vadd.f32 %v3201_v52, %v2420_v19  ;;  %v7312_v22 = vor.u32 %v8190_v21, %v7311_v2 }
 0x314   : > { %v7512_v35 = vor.u32 %v8148_v11, %v7511_v17  ;;  %v3732_v40 = vrot.slane %v3632_v47, 1  ;;  %v3631_v8 = vrot.slane %v3629_v26, 7 }
 0x315   : > { %v3285_v24 = vmul.f32 %v9230_v33, %v3252_v13  ;;  %4536 = vmatmul.bf16.vlgmr.msra.gmra.mxu1 %v7312_v22  ;;  %v3783_v34 = vpop.permute.xlu0 %3782  ;;  %v8203_v38 = vld [vmem:[#allocation3 + $0x84] sm:$0xf]  ;;  %v7524_v22 = vor.u32 %v8149_v45, %v7521_v50 }
 0x316   : > { %4983 = vmatmul.bf16.gmra.mxu3 %v7512_v35  ;;  %v3733_v58 = vor.u32 %v3732_v40, %v3629_v26  ;;  %v3818_v30 = vsel %vm3812_vm2, %v3701_v55, %v3783_v34  ;;  %v7369_v9 = vld [vmem:[#allocation3 + $0x88] sm:$0xf0]  ;;  %v9711_v19 = vor.u32 %v3632_v47, %v3631_v8  ;;  %v9718_v35 = vsel %vm3382_vm15, %v3317_v60, %v3414_v54  ;;  %v9728_v54 = vpop.f32.mrf.mxu3 }
 0x317   : > { %v3318_v52 = vadd.f32 %v9235_v6, %v3285_v24  ;;  %v3879_v2 = vunpack.c.l.b16 %v3818_v30  ;;  %v3880_v17 = vunpack.c.h.b16 %v3818_v30  ;;  %v7372_v21 = vor.u32 %v8203_v38, %v7369_v9 }
 0x318   : > { %v3772_v11 = vsel %vm8479_vm5, %v3733_v58, 0  ;;  %v3203_v13 = vpop.f32.mrf.mxu0  ;;  %v2423_v47 = vadd.f32 %v9645_v63, %v9133_v53  ;;  %v3478_v60 = vpack.c.bf16 %v9718_v35, %v9718_v35  ;;  %v9732_v53 = vpop.f32.mrf.mxu1  ;;  %v3117_v58 = vadd.f32 %v9667_v32, %v9402_v59 }
 0x319   : > { %v4038_v56 = vunpack.c.l.b16 %v3772_v11  ;;  %v4039_v0 = vunpack.c.h.b16 %v3772_v11  ;;  %v3911_v26 = vpack.c.b16 %v3879_v2, %v3879_v2  ;;  %v3912_v40 = vpack.c.b16 %v3880_v17, %v3880_v17  ;;  %7492 = vmatmul.msk.bf16.gmra.mxu2 %vm3812_vm2, %v7372_v21  ;;  %v10769_v17 = vld [vmem:[#allocation4_spill] sm:$0xff] }
 0x31a   : > { %v3204_v8 = vadd.f32 %v3203_v13, %v3115_v10  ;;  %vm3350_vm0 = vcmp.gt.f32.partialorder %v3318_v52, 0.0  ;;  %v3415_v24 = vmul.f32 0.1, %v3318_v52  ;;  %v8271_v10 = vld [vmem:[%s10724_s2 + $0xf0] sm:$0xff]  ;;  %v3542_v30 = vunpack.c.l.b16 %v3478_v60  ;;  %v9747_v13 = vpop.f32.mrf.mxu2 }
 0x31b   : > { %v4070_v34 = vpack.c.b16 %v4038_v56, %v4038_v56  ;;  %v4071_v55 = vpack.c.b16 %v4039_v0, %v4039_v0  ;;  %3976 = vst [vmem:[#allocation3 + $0x20] sm:$0xf] %v3911_v26  ;;  %7679 = vmatmul.msk.bf16.gmra.mxu0 %vm3812_vm2, %v7524_v22  ;;  %vm3383_vm1 = vmor %vm3350_vm0, %vm3363_vm7  ;;  %5471 = vmatpush.bf16.msrb.mxu1 %v8271_v10  ;;  %v3702_v56 = vsel %vm8470_vm4, 0, %v9378_v57 }
 0x31c   : > { %3977 = vst [vmem:[#allocation3 + $0x28] sm:$0xf] %v3912_v40  ;;  %v3253_v45 = vadd.f32 %v3204_v8, %v2423_v47  ;;  %v9730_v38 = vsel %vm3383_vm1, %v3318_v52, %v3415_v24  ;;  %v2425_v21 = vadd.f32 %v9673_v28, %v10769_v17  ;;  %v3120_v28 = vadd.f32 %v9697_v18, %v9429_v31 }
 0x31d   : > { %4135 = vst.msk [vmem:[#allocation3 + $0x94] sm:$0xf] %vm4118_vm14, %v4070_v34  ;;  %v3479_v63 = vpack.c.bf16 %v9730_v38, %v9730_v38 }
 0x31e   : > { %4136 = vst.msk [vmem:[#allocation3 + $0x9c] sm:$0xf] %vm4118_vm14, %v4071_v55  ;;  %v3286_v50 = vmul.f32 %v9230_v33, %v3253_v45 }
 0x31f   : > { %v3543_v9 = vunpack.c.l.b16 %v3479_v63  ;;  %v8151_v63 = vld [vmem:[#allocation3 + $0x34] sm:$0xf] }
 0x320   : > { %v3319_v52 = vadd.f32 %v9235_v6, %v3286_v50  ;;  %v3205_v2 = vpop.f32.mrf.mxu0 }
 0x321   : > { %v3206_v11 = vadd.f32 %v3205_v2, %v3117_v58  ;;  %v3565_v22 = vpack.c.b16 %v3543_v9, %v3542_v30  ;;  %v7529_v30 = vld [vmem:[#allocation3 + $0x38] sm:$0xf0]  ;;  %v9757_v9 = vpop.f32.mrf.mxu3 }
 0x322   : > { %v3416_v0 = vmul.f32 0.1, %v3319_v52  ;;  %v7319_v26 = vld [vmem:[#allocation3 + $0x20] sm:$0xf]  ;;  %vm3351_vm3 = vcmp.gt.f32.partialorder %v3319_v52, 0.0 }
 0x323   : > { %v7519_v59 = vld [vmem:[#allocation3 + $0x20] sm:$0xf]  ;;  %v3254_v32 = vadd.f32 %v3206_v11, %v2425_v21  ;;  %v3636_v40 = vshrl.u32 %v3565_v22, 16  ;;  %v3639_v47 = vshll.u32 %v3565_v22, 16  ;;  %3798 = vrot.lane.b32.xlu0 %v3565_v22, %s8350_s29  ;;  %v8192_v8 = vld [vmem:[#allocation3 + $0x24] sm:$0xf0]  ;;  %vm3384_vm6 = vmor %vm3351_vm3, %vm3363_vm7  ;;  %v9763_v22 = vpop.f32.mrf.mxu1 }
 0x324   : > { %v8150_v24 = vld [vmem:[#allocation3 + $0x24] sm:$0xf0]  ;;  %v3785_v34 = vpop.permute.xlu1 %3784  ;;  %v7320_v55 = vor.u32 %v8192_v8, %v7319_v26  ;;  %v8205_v45 = vld [vmem:[#allocation3 + $0x94] sm:$0xf] }
 0x325   : > { %v7520_v60 = vor.u32 %v8150_v24, %v7519_v59  ;;  %v3287_v57 = vmul.f32 %v9230_v33, %v3254_v32  ;;  %v3734_v50 = vrot.slane %v3639_v47, 1  ;;  %v3821_v10 = vsel %vm3812_vm2, %v3702_v56, %v3785_v34  ;;  %v7377_v58 = vld [vmem:[#allocation3 + $0x98] sm:$0xf0]  ;;  %v10770_v21 = vld [vmem:[#allocation5_spill] sm:$0xff] }
 0x326   : > { %v3638_v2 = vrot.slane %v3636_v40, 7  ;;  %v3881_v31 = vunpack.c.l.b16 %v3821_v10  ;;  %v3882_v18 = vunpack.c.h.b16 %v3821_v10  ;;  %4541 = vmatmul.bf16.gmra.mxu1 %v7320_v55  ;;  %v7380_v17 = vor.u32 %v8205_v45, %v7377_v58 }
 0x327   : > { %4988 = vmatmul.bf16.gmra.mxu3 %v7520_v60  ;;  %v2428_v11 = vadd.f32 %v9700_v3, %v10770_v21  ;;  %v3320_v56 = vadd.f32 %v9235_v6, %v3287_v57  ;;  %v3735_v26 = vor.u32 %v3734_v50, %v3636_v40  ;;  %v9766_v59 = vsel %vm3384_vm6, %v3319_v52, %v3416_v0 }
 0x328   : > { %v3913_v32 = vpack.c.b16 %v3881_v31, %v3881_v31  ;;  %v3914_v8 = vpack.c.b16 %v3882_v18, %v3882_v18  ;;  %v3208_v24 = vpop.f32.mrf.mxu0  ;;  %v7532_v34 = vor.u32 %v8151_v63, %v7529_v30  ;;  %v9768_v5 = vor.u32 %v3639_v47, %v3638_v2 }
 0x329   : > { %v3773_v55 = vsel %vm8479_vm5, %v3735_v26, 0  ;;  %7493 = vmatmul.msk.bf16.gmra.mxu2 %vm3812_vm2, %v7380_v17  ;;  %v3209_v60 = vadd.f32 %v3208_v24, %v3120_v28  ;;  %vm3352_vm8 = vcmp.gt.f32.partialorder %v3320_v56, 0.0  ;;  %v3417_v3 = vmul.f32 0.1, %v3320_v56 }
 0x32a   : > { %v4040_v45 = vunpack.c.l.b16 %v3773_v55  ;;  %v4041_v10 = vunpack.c.h.b16 %v3773_v55  ;;  %3978 = vst [vmem:[#allocation3 + $0x30] sm:$0xf] %v3913_v32  ;;  %vm3385_vm9 = vmor %vm3352_vm8, %vm3363_vm7  ;;  %v3480_v52 = vpack.c.bf16 %v9766_v59, %v9766_v59  ;;  %v3704_v50 = vsel %vm8470_vm4, 0, %v9504_v48 }
 0x32b   : > { %3979 = vst [vmem:[#allocation3 + $0x38] sm:$0xf] %v3914_v8  ;;  %v3255_v0 = vadd.f32 %v3209_v60, %v2428_v11  ;;  %7680 = vmatmul.msk.bf16.gmra.mxu0 %vm3812_vm2, %v7532_v34  ;;  %v9780_v47 = vsel %vm3385_vm9, %v3320_v56, %v3417_v3  ;;  %v3122_v11 = vadd.f32 %v9728_v54, %v9467_v62  ;;  %v9794_v56 = vpop.f32.mrf.mxu3  ;;  %v10771_v34 = vld [vmem:[#allocation6_spill] sm:$0xff]  ;;  %v9798_v60 = vpop.f32.mrf.mxu1 }
 0x32c   : > { %v9777_v40 = vpop.f32.mrf.mxu2  ;;  %v4072_v28 = vpack.c.b16 %v4040_v45, %v4040_v45  ;;  %v4073_v63 = vpack.c.b16 %v4041_v10, %v4041_v10  ;;  %v3789_v57 = vpop.permute.xlu2 %3788  ;;  %v3481_v58 = vpack.c.bf16 %v9780_v47, %v9780_v47  ;;  %v3544_v17 = vunpack.c.l.b16 %v3480_v52 }
 0x32d   : > { %v3288_v30 = vmul.f32 %v9230_v33, %v3255_v0  ;;  %v3827_v2 = vsel %vm3812_vm2, %v3704_v50, %v3789_v57  ;;  %v2430_v55 = vadd.f32 %v9732_v53, %v10771_v34  ;;  %v8275_v53 = vld [vmem:[%s10724_s2 + $0x110] sm:$0xff] }
 0x32e   : > { %4137 = vst.msk [vmem:[#allocation3 + $0xa4] sm:$0xf] %vm4118_vm14, %v4072_v28  ;;  %v3885_v31 = vunpack.c.l.b16 %v3827_v2  ;;  %v3886_v18 = vunpack.c.h.b16 %v3827_v2  ;;  %v3545_v21 = vunpack.c.l.b16 %v3481_v58  ;;  %v8153_v2 = vld [vmem:[#allocation3 + $0x44] sm:$0xf]  ;;  %5564 = vmatpush.bf16.msrb.mxu2 %v8275_v53 }
 0x32f   : > { %4138 = vst.msk [vmem:[#allocation3 + $0xac] sm:$0xf] %vm4118_vm14, %v4073_v63  ;;  %v3321_v48 = vadd.f32 %v9235_v6, %v3288_v30 }
 0x330   : > { %v3917_v26 = vpack.c.b16 %v3885_v31, %v3885_v31  ;;  %v3918_v32 = vpack.c.b16 %v3886_v18, %v3886_v18  ;;  %v3210_v8 = vpop.f32.mrf.mxu0  ;;  %v3566_v24 = vpack.c.b16 %v3545_v21, %v3544_v17  ;;  %v3703_v17 = vsel %vm8470_vm4, 0, %v9431_v29 }
 0x331   : > { %v3211_v3 = vadd.f32 %v3210_v8, %v3122_v11  ;;  %v7327_v45 = vld [vmem:[#allocation3 + $0x30] sm:$0xf]  ;;  %vm3353_vm10 = vcmp.gt.f32.partialorder %v3321_v48, 0.0  ;;  %v3418_v50 = vmul.f32 0.1, %v3321_v48 }
 0x332   : > { %v7527_v10 = vld [vmem:[#allocation3 + $0x30] sm:$0xf]  ;;  %3982 = vst [vmem:[#allocation3 + $0x50] sm:$0xf] %v3917_v26  ;;  %v3643_v52 = vshrl.u32 %v3566_v24, 16  ;;  %v3646_v0 = vshll.u32 %v3566_v24, 16  ;;  %3800 = vrot.lane.b32.xlu1 %v3566_v24, %s8350_s29  ;;  %vm3386_vm11 = vmor %vm3353_vm10, %vm3363_vm7 }
 0x333   : > { %v8194_v62 = vld [vmem:[#allocation3 + $0x34] sm:$0xf0]  ;;  %3983 = vst [vmem:[#allocation3 + $0x58] sm:$0xf] %v3918_v32  ;;  %v3256_v54 = vadd.f32 %v3211_v3, %v2430_v55  ;;  %v7537_v26 = vld [vmem:[#allocation3 + $0x48] sm:$0xf0]  ;;  %v3125_v32 = vadd.f32 %v9757_v9, %v9530_v7 }
 0x334   : > { %v9801_v28 = vpop.f32.mrf.mxu2  ;;  %v7328_v63 = vor.u32 %v8194_v62, %v7327_v45  ;;  %v8152_v57 = vld [vmem:[#allocation3 + $0x34] sm:$0xf0]  ;;  %v3736_v58 = vrot.slane %v3646_v0, 1  ;;  %v3645_v31 = vrot.slane %v3643_v52, 7 }
 0x335   : > { %v7528_v30 = vor.u32 %v8152_v57, %v7527_v10  ;;  %v3289_v18 = vmul.f32 %v9230_v33, %v3256_v54  ;;  %v3787_v21 = vpop.permute.xlu1 %3786  ;;  %v8207_v11 = vld [vmem:[#allocation3 + $0xa4] sm:$0xf]  ;;  %v7540_v54 = vor.u32 %v8153_v2, %v7537_v26  ;;  %v9818_v57 = vsel %vm3386_vm11, %v3321_v48, %v3418_v50 }
 0x336   : > { %v3737_v8 = vor.u32 %v3736_v58, %v3643_v52  ;;  %v3824_v24 = vsel %vm3812_vm2, %v3703_v17, %v3787_v21  ;;  %4546 = vmatmul.bf16.gmra.mxu1 %v7328_v63  ;;  %v7385_v34 = vld [vmem:[#allocation3 + $0xa8] sm:$0xf0]  ;;  %v9820_v53 = vor.u32 %v3646_v0, %v3645_v31  ;;  %v3129_v58 = vpop.f32.mrf.mxu3  ;;  %v3482_v0 = vpack.c.bf16 %v9818_v57, %v9818_v57 }
 0x337   : > { %4993 = vmatmul.bf16.gmra.mxu3 %v7528_v30  ;;  %v3322_v55 = vadd.f32 %v9235_v6, %v3289_v18  ;;  %v3883_v3 = vunpack.c.l.b16 %v3824_v24  ;;  %v3884_v29 = vunpack.c.h.b16 %v3824_v24  ;;  %v7388_v45 = vor.u32 %v8207_v11, %v7385_v34  ;;  %v10772_v30 = vld [vmem:[#allocation7_spill] sm:$0xff]  ;;  %v9825_v11 = vpop.f32.mrf.mxu1 }
 0x338   : > { %v3774_v10 = vsel %vm8479_vm5, %v3737_v8, 0  ;;  %v3213_v62 = vpop.f32.mrf.mxu0  ;;  %v2433_v18 = vadd.f32 %v9763_v22, %v10772_v30  ;;  %v3705_v26 = vsel %vm8470_vm4, 0, %v9574_v20  ;;  %v3127_v24 = vadd.f32 %v9794_v56, %v9567_v61 }
 0x339   : > { %v4042_v7 = vunpack.c.l.b16 %v3774_v10  ;;  %v4043_v9 = vunpack.c.h.b16 %v3774_v10  ;;  %v3915_v52 = vpack.c.b16 %v3883_v3, %v3883_v3  ;;  %v3916_v63 = vpack.c.b16 %v3884_v29, %v3884_v29  ;;  %7494 = vmatmul.msk.bf16.gmra.mxu2 %vm3812_vm2, %v7388_v45  ;;  %v8270_v3 = vld [vmem:[%s10724_s2 + $0xe8] sm:$0xff] }
 0x33a   : > { %v3214_v17 = vadd.f32 %v3213_v62, %v3125_v32  ;;  %vm3354_vm12 = vcmp.gt.f32.partialorder %v3322_v55, 0.0  ;;  %v3419_v21 = vmul.f32 0.1, %v3322_v55  ;;  %v3546_v20 = vunpack.c.l.b16 %v3482_v0  ;;  %v10773_v62 = vld [vmem:[#allocation8_spill] sm:$0xff]  ;;  %5472 = vmatpush.bf16.msrb.mxu1 %v8270_v3 }
 0x33b   : > { %v4074_v2 = vpack.c.b16 %v4042_v7, %v4042_v7  ;;  %v4075_v48 = vpack.c.b16 %v4043_v9, %v4043_v9  ;;  %3980 = vst [vmem:[#allocation3 + $0x40] sm:$0xf] %v3915_v52  ;;  %7681 = vmatmul.msk.bf16.gmra.mxu0 %vm3812_vm2, %v7540_v54  ;;  %vm3387_vm13 = vmor %vm3354_vm12, %vm3363_vm7  ;;  %v2435_v54 = vadd.f32 %v9798_v60, %v10773_v62  ;;  %v8155_v60 = vld [vmem:[#allocation3 + $0x54] sm:$0xf] }
 0x33c   : > { %3981 = vst [vmem:[#allocation3 + $0x48] sm:$0xf] %v3916_v63  ;;  %v3257_v50 = vadd.f32 %v3214_v17, %v2433_v18  ;;  %v9832_v31 = vpop.f32.mrf.mxu2  ;;  %v9834_v22 = vsel %vm3387_vm13, %v3322_v55, %v3419_v21 }
 0x33d   : > { %4139 = vst.msk [vmem:[#allocation3 + $0xb4] sm:$0xf] %vm4118_vm14, %v4074_v2  ;;  %v3791_v32 = vpop.permute.xlu2 %3790  ;;  %v3483_v8 = vpack.c.bf16 %v9834_v22, %v9834_v22 }
 0x33e   : > { %4140 = vst.msk [vmem:[#allocation3 + $0xbc] sm:$0xf] %vm4118_vm14, %v4075_v48  ;;  %v3290_v34 = vmul.f32 %v9230_v33, %v3257_v50  ;;  %v3830_v55 = vsel %vm3812_vm2, %v3705_v26, %v3791_v32  ;;  %v3131_v50 = vpop.f32.mrf.mxu3  ;;  %v3130_v26 = vadd.f32 %v3129_v58, %v9599_v37 }
 0x33f   : > { %v3887_v29 = vunpack.c.l.b16 %v3830_v55  ;;  %v3888_v45 = vunpack.c.h.b16 %v3830_v55  ;;  %v3547_v10 = vunpack.c.l.b16 %v3483_v8  ;;  %v2439_v55 = vpop.f32.mrf.mxu1 }
 0x340   : > { %v3323_v7 = vadd.f32 %v9235_v6, %v3290_v34  ;;  %v3215_v9 = vpop.f32.mrf.mxu0 }
 0x341   : > { %v3919_v61 = vpack.c.b16 %v3887_v29, %v3887_v29  ;;  %v3920_v56 = vpack.c.b16 %v3888_v45, %v3888_v45  ;;  %v3216_v52 = vadd.f32 %v3215_v9, %v3127_v24  ;;  %v3567_v63 = vpack.c.b16 %v3547_v10, %v3546_v20  ;;  %v7545_v10 = vld [vmem:[#allocation3 + $0x58] sm:$0xf0] }
 0x342   : > { %v3420_v30 = vmul.f32 0.1, %v3323_v7  ;;  %v7335_v18 = vld [vmem:[#allocation3 + $0x40] sm:$0xf]  ;;  %vm3355_vm15 = vcmp.gt.f32.partialorder %v3323_v7, 0.0 }
 0x343   : > { %v7535_v17 = vld [vmem:[#allocation3 + $0x40] sm:$0xf]  ;;  %3984 = vst [vmem:[#allocation3 + $0x60] sm:$0xf] %v3919_v61  ;;  %v3258_v21 = vadd.f32 %v3216_v52, %v2435_v54  ;;  %v3650_v2 = vshrl.u32 %v3567_v63, 16  ;;  %v3653_v48 = vshll.u32 %v3567_v63, 16  ;;  %3802 = vrot.lane.b32.xlu2 %v3567_v63, %s8350_s29  ;;  %vm3388_vm0 = vmor %vm3355_vm15, %vm3363_vm7  ;;  %v7548_v63 = vor.u32 %v8155_v60, %v7545_v10 }
 0x344   : > { %v8196_v0 = vld [vmem:[#allocation3 + $0x44] sm:$0xf0]  ;;  %3985 = vst [vmem:[#allocation3 + $0x68] sm:$0xf] %v3920_v56  ;;  %v9855_v32 = vpop.f32.mrf.mxu2  ;;  %v8209_v34 = vld [vmem:[#allocation3 + $0xb4] sm:$0xf]  ;;  %v9861_v9 = vsel %vm3388_vm0, %v3323_v7, %v3420_v30  ;;  %v3132_v10 = vadd.f32 %v3131_v50, %v9626_v25 }
 0x345   : > { %v7336_v8 = vor.u32 %v8196_v0, %v7335_v18  ;;  %v8154_v24 = vld [vmem:[#allocation3 + $0x44] sm:$0xf0]  ;;  %v3291_v3 = vmul.f32 %v9230_v33, %v3258_v21  ;;  %v3738_v29 = vrot.slane %v3653_v48, 1  ;;  %v7393_v20 = vld [vmem:[#allocation3 + $0xb8] sm:$0xf0]  ;;  %v3652_v54 = vrot.slane %v3650_v2, 7 }
 0x346   : > { %v7536_v45 = vor.u32 %v8154_v24, %v7535_v17  ;;  %v7396_v62 = vor.u32 %v8209_v34, %v7393_v20  ;;  %v10774_v61 = vld [vmem:[#allocation9_spill] sm:$0xff] }
 0x347   : > { %4551 = vmatmul.bf16.gmra.mxu1 %v7336_v8  ;;  %v3324_v37 = vadd.f32 %v9235_v6, %v3291_v3  ;;  %v3739_v58 = vor.u32 %v3738_v29, %v3650_v2  ;;  %v2438_v56 = vadd.f32 %v9825_v11, %v10774_v61  ;;  %v9865_v18 = vor.u32 %v3653_v48, %v3652_v54  ;;  %v3134_v3 = vpop.f32.mrf.mxu3  ;;  %v2442_v20 = vpop.f32.mrf.mxu1 }
 0x348   : > { %4998 = vmatmul.bf16.gmra.mxu3 %v7536_v45  ;;  %v3218_v52 = vpop.f32.mrf.mxu0  ;;  %v3484_v11 = vpack.c.bf16 %v9861_v9, %v9861_v9 }
 0x349   : > { %v3775_v17 = vsel %vm8479_vm5, %v3739_v58, 0  ;;  %7495 = vmatmul.msk.bf16.gmra.mxu2 %vm3812_vm2, %v7396_v62  ;;  %v3219_v21 = vadd.f32 %v3218_v52, %v3130_v26  ;;  %vm3356_vm1 = vcmp.gt.f32.partialorder %v3324_v37, 0.0  ;;  %v3421_v0 = vmul.f32 0.1, %v3324_v37  ;;  %v10775_v58 = vld [vmem:[#allocation10_spill] sm:$0xff] }
 0x34a   : > { %v4044_v8 = vunpack.c.l.b16 %v3775_v17  ;;  %v4045_v2 = vunpack.c.h.b16 %v3775_v17  ;;  %vm3389_vm3 = vmor %vm3356_vm1, %vm3363_vm7  ;;  %v3548_v29 = vunpack.c.l.b16 %v3484_v11  ;;  %v2440_v61 = vadd.f32 %v2439_v55, %v10775_v58  ;;  %v7343_v52 = vld [vmem:[#allocation3 + $0x50] sm:$0xf] }
 0x34b   : > { %v3259_v7 = vadd.f32 %v3219_v21, %v2438_v56  ;;  %7682 = vmatmul.msk.bf16.gmra.mxu0 %vm3812_vm2, %v7548_v63  ;;  %v9875_v30 = vsel %vm3389_vm3, %v3324_v37, %v3421_v0  ;;  %v8198_v63 = vld [vmem:[#allocation3 + $0x54] sm:$0xf0]  ;;  %v7543_v17 = vld [vmem:[#allocation3 + $0x50] sm:$0xf]  ;;  %v3135_v55 = vadd.f32 %v3134_v3, %v9653_v43 }
 0x34c   : > { %v4076_v48 = vpack.c.b16 %v4044_v8, %v4044_v8  ;;  %v4077_v60 = vpack.c.b16 %v4045_v2, %v4045_v2  ;;  %v9877_v24 = vpop.f32.mrf.mxu2  ;;  %v3485_v26 = vpack.c.bf16 %v9875_v30, %v9875_v30  ;;  %v8156_v8 = vld [vmem:[#allocation3 + $0x54] sm:$0xf0]  ;;  %v7344_v50 = vor.u32 %v8198_v63, %v7343_v52 }
 0x34d   : > { %v3292_v34 = vmul.f32 %v9230_v33, %v3259_v7  ;;  %v10778_v52 = vld [vmem:[#allocation11_spill] sm:$0xff] }
 0x34e   : > { %4141 = vst.msk [vmem:[#allocation3 + $0xc4] sm:$0xf] %vm4118_vm14, %v4076_v48  ;;  %v3549_v45 = vunpack.c.l.b16 %v3485_v26  ;;  %v8157_v48 = vld [vmem:[#allocation3 + $0x64] sm:$0xf]  ;;  %v2443_v43 = vadd.f32 %v2442_v20, %v10778_v52  ;;  %v7351_v52 = vld [vmem:[#allocation3 + $0x60] sm:$0xf] }
 0x34f   : > { %4142 = vst.msk [vmem:[#allocation3 + $0xcc] sm:$0xf] %vm4118_vm14, %v4077_v60  ;;  %v3325_v62 = vadd.f32 %v9235_v6, %v3292_v34  ;;  %v7544_v34 = vor.u32 %v8156_v8, %v7543_v17 }
 0x350   : > { %v3220_v54 = vpop.f32.mrf.mxu0  ;;  %v3568_v37 = vpack.c.b16 %v3549_v45, %v3548_v29  ;;  %v7553_v45 = vld [vmem:[#allocation3 + $0x68] sm:$0xf0] }
 0x351   : > { %v3221_v56 = vadd.f32 %v3220_v54, %v3132_v10  ;;  %vm3357_vm6 = vcmp.gt.f32.partialorder %v3325_v62, 0.0  ;;  %v3422_v11 = vmul.f32 0.1, %v3325_v62  ;;  %v7556_v17 = vor.u32 %v8157_v48, %v7553_v45 }
 0x352   : > { %v3657_v21 = vshrl.u32 %v3568_v37, 16  ;;  %v3660_v0 = vshll.u32 %v3568_v37, 16  ;;  %3804 = vrot.lane.b32.xlu0 %v3568_v37, %s8350_s29  ;;  %vm3390_vm8 = vmor %vm3357_vm6, %vm3363_vm7 }
 0x353   : > { %v3260_v2 = vadd.f32 %v3221_v56, %v2440_v61  ;;  %v3136_v61 = vpop.f32.mrf.mxu3  ;;  %v9900_v8 = vsel %vm3390_vm8, %v3325_v62, %v3422_v11  ;;  %vm6034_vm8 = vcmask 1046528  }
 0x354   : > { %v3740_v7 = vrot.slane %v3660_v0, 1  ;;  %v9888_v25 = vpop.f32.mrf.mxu2  ;;  %v3659_v60 = vrot.slane %v3657_v21, 7  ;;  %v3486_v62 = vpack.c.bf16 %v9900_v8, %v9900_v8  ;;  %v3137_v45 = vadd.f32 %v3136_v61, %v9688_v41 }
 0x355   : > { %10776 = vst [vmem:[#allocation4_spill] sm:$0xff] %v9888_v25  ;;  %v3293_v26 = vmul.f32 %v9230_v33, %v3260_v2  ;;  %v8211_v29 = vld [vmem:[#allocation3 + $0xc4] sm:$0xf]  ;;  %v2444_v2 = vpop.f32.mrf.mxu1 }
 0x356   : > { %v3741_v10 = vor.u32 %v3740_v7, %v3657_v21  ;;  %v7401_v54 = vld [vmem:[#allocation3 + $0xc8] sm:$0xf0]  ;;  %v9894_v37 = vor.u32 %v3660_v0, %v3659_v60 }
 0x357   : > { %4556 = vmatmul.bf16.gmra.mxu1 %v7344_v50  ;;  %v3326_v58 = vadd.f32 %v9235_v6, %v3293_v26  ;;  %v7404_v56 = vor.u32 %v8211_v29, %v7401_v54  ;;  %v8269_v29 = vld [vmem:[%s10724_s2 + $0xe0] sm:$0xff]  ;;  %v3550_v54 = vunpack.c.l.b16 %v3486_v62 }
 0x358   : > { %10777 = vst [vmem:[#allocation5_spill] sm:$0xff] %v9894_v37  ;;  %5003 = vmatmul.bf16.gmra.mxu3 %v7544_v34  ;;  %v3776_v3 = vsel %vm8479_vm5, %v3741_v10, 0  ;;  %v3223_v63 = vpop.f32.mrf.mxu0  ;;  %5473 = vmatpush.bf16.msrb.mxu1 %v8269_v29  ;;  %v10782_v37 = vld [vmem:[#allocation13_spill] sm:$0xff] }
 0x359   : > { %v4046_v21 = vunpack.c.l.b16 %v3776_v3  ;;  %v4047_v7 = vunpack.c.h.b16 %v3776_v3  ;;  %7496 = vmatmul.msk.bf16.gmra.mxu2 %vm3812_vm2, %v7404_v56  ;;  %v3224_v0 = vadd.f32 %v3223_v63, %v3135_v55  ;;  %vm3358_vm9 = vcmp.gt.f32.partialorder %v3326_v58, 0.0  ;;  %v10780_v3 = vld [vmem:[#allocation12_spill] sm:$0xff] }
 0x35a   : > { %vm3391_vm10 = vmor %vm3358_vm9, %vm3363_vm7  ;;  %v3423_v50 = vmul.f32 0.1, %v3326_v58  ;;  %v2445_v63 = vadd.f32 %v2444_v2, %v10780_v3  ;;  %v3706_v2 = vsel %vm8470_vm4, 0, %v9616_v15 }
 0x35b   : > { %v4078_v60 = vpack.c.b16 %v4046_v21, %v4046_v21  ;;  %v4079_v20 = vpack.c.b16 %v4047_v7, %v4047_v7  ;;  %v3261_v26 = vadd.f32 %v3224_v0, %v2443_v43  ;;  %7683 = vmatmul.msk.bf16.gmra.mxu0 %vm3812_vm2, %v7556_v17  ;;  %v7551_v43 = vld [vmem:[#allocation3 + $0x60] sm:$0xf]  ;;  %v3139_v17 = vpop.f32.mrf.mxu3  ;;  %v8200_v0 = vld [vmem:[#allocation3 + $0x64] sm:$0xf0] }
 0x35c   : > { %v9908_v11 = vpop.f32.mrf.mxu2  ;;  %v9910_v48 = vsel %vm3391_vm10, %v3326_v58, %v3423_v50  ;;  %v8158_v50 = vld [vmem:[#allocation3 + $0x64] sm:$0xf0]  ;;  %v3140_v62 = vadd.f32 %v3139_v17, %v9714_v39  ;;  %v7352_v29 = vor.u32 %v8200_v0, %v7351_v52  ;;  %v7561_v17 = vld [vmem:[#allocation3 + $0x78] sm:$0xf0] }
 0x35d   : > { %10779 = vst [vmem:[#allocation6_spill] sm:$0xff] %v9908_v11  ;;  %v3294_v55 = vmul.f32 %v9230_v33, %v3261_v26  ;;  %v3487_v34 = vpack.c.bf16 %v9910_v48, %v9910_v48 }
 0x35e   : > { %4143 = vst.msk [vmem:[#allocation3 + $0xd4] sm:$0xf] %vm4118_vm14, %v4078_v60  ;;  %v2447_v60 = vpop.f32.mrf.mxu1 }
 0x35f   : > { %4144 = vst.msk [vmem:[#allocation3 + $0xdc] sm:$0xf] %vm4118_vm14, %v4079_v20  ;;  %v3327_v10 = vadd.f32 %v9235_v6, %v3294_v55  ;;  %v3551_v58 = vunpack.c.l.b16 %v3487_v34 }
 0x360   : > { %v3225_v56 = vpop.f32.mrf.mxu0 }
 0x361   : > { %v3226_v21 = vadd.f32 %v3225_v56, %v3137_v45  ;;  %v3569_v7 = vpack.c.b16 %v3551_v58, %v3550_v54  ;;  %vm3359_vm11 = vcmp.gt.f32.partialorder %v3327_v10, 0.0  ;;  %v3424_v20 = vmul.f32 0.1, %v3327_v10  ;;  %v8159_v58 = vld [vmem:[#allocation3 + $0x74] sm:$0xf] }
 0x362   : > { %v7552_v45 = vor.u32 %v8158_v50, %v7551_v43  ;;  %vm3392_vm12 = vmor %vm3359_vm11, %vm3363_vm7 }
 0x363   : > { %v3262_v26 = vadd.f32 %v3226_v21, %v2445_v63  ;;  %v3664_v41 = vshrl.u32 %v3569_v7, 16  ;;  %v3667_v61 = vshll.u32 %v3569_v7, 16  ;;  %3806 = vrot.lane.b32.xlu1 %v3569_v7, %s8350_s29  ;;  %v9936_v0 = vsel %vm3392_vm12, %v3327_v10, %v3424_v20  ;;  %v3141_v10 = vpop.f32.mrf.mxu3 }
 0x364   : > { %v9925_v55 = vpop.f32.mrf.mxu2  ;;  %v3793_v34 = vpop.permute.xlu0 %3792 }
 0x365   : > { %10781 = vst [vmem:[#allocation7_spill] sm:$0xff] %v9925_v55  ;;  %v8213_v54 = vld [vmem:[#allocation3 + $0xd4] sm:$0xf]  ;;  %v3295_v56 = vmul.f32 %v9230_v33, %v3262_v26  ;;  %v3742_v3 = vrot.slane %v3667_v61, 1  ;;  %v3833_v39 = vsel %vm3812_vm2, %v3706_v2, %v3793_v34  ;;  %v3666_v21 = vrot.slane %v3664_v41, 7 }
 0x366   : > { %v7409_v63 = vld [vmem:[#allocation3 + $0xd8] sm:$0xf0]  ;;  %v3889_v7 = vunpack.c.l.b16 %v3833_v39  ;;  %v3890_v55 = vunpack.c.h.b16 %v3833_v39  ;;  %v2448_v26 = vadd.f32 %v2447_v60, %v10782_v37  ;;  %v7564_v34 = vor.u32 %v8159_v58, %v7561_v17 }
 0x367   : > { %4561 = vmatmul.bf16.gmra.mxu1 %v7352_v29  ;;  %v7412_v15 = vor.u32 %v8213_v54, %v7409_v63  ;;  %v3743_v52 = vor.u32 %v3742_v3, %v3664_v41  ;;  %v3328_v43 = vadd.f32 %v9235_v6, %v3295_v56  ;;  %v9938_v50 = vor.u32 %v3667_v61, %v3666_v21  ;;  %v2449_v3 = vpop.f32.mrf.mxu1 }
 0x368   : > { %5008 = vmatmul.bf16.gmra.mxu3 %v7552_v45  ;;  %v3921_v11 = vpack.c.b16 %v3889_v7, %v3889_v7  ;;  %v3922_v25 = vpack.c.b16 %v3890_v55, %v3890_v55  ;;  %v3228_v2 = vpop.f32.mrf.mxu0  ;;  %v3488_v37 = vpack.c.bf16 %v9936_v0, %v9936_v0  ;;  %v3142_v7 = vadd.f32 %v3141_v10, %v9747_v13 }
 0x369   : > { %v3777_v44 = vsel %vm8479_vm5, %v3743_v52, 0  ;;  %7497 = vmatmul.msk.bf16.gmra.mxu2 %vm3812_vm2, %v7412_v15  ;;  %v3229_v29 = vadd.f32 %v3228_v2, %v3140_v62  ;;  %vm3360_vm13 = vcmp.gt.f32.partialorder %v3328_v43, 0.0  ;;  %v3425_v41 = vmul.f32 0.1, %v3328_v43  ;;  %v8274_v15 = vld [vmem:[%s10724_s2 + $0x108] sm:$0xff] }
 0x36a   : > { %v4048_v45 = vunpack.c.l.b16 %v3777_v44  ;;  %v4049_v54 = vunpack.c.h.b16 %v3777_v44  ;;  %3986 = vst [vmem:[#allocation3 + $0x70] sm:$0xf] %v3921_v11  ;;  %vm3393_vm15 = vmor %vm3360_vm13, %vm3363_vm7  ;;  %v3708_v44 = vsel %vm8470_vm4, 0, %v9711_v19  ;;  %v3552_v21 = vunpack.c.l.b16 %v3488_v37  ;;  %5565 = vmatpush.bf16.msrb.mxu2 %v8274_v15 }
 0x36b   : > { %3987 = vst [vmem:[#allocation3 + $0x78] sm:$0xf] %v3922_v25  ;;  %v3263_v60 = vadd.f32 %v3229_v29, %v2448_v26  ;;  %7684 = vmatmul.msk.bf16.gmra.mxu0 %vm3812_vm2, %v7564_v34  ;;  %v3457_v20 = vsel %vm3393_vm15, %v3328_v43, %v3425_v41  ;;  %v10783_v34 = vld [vmem:[#allocation14_spill] sm:$0xff] }
 0x36c   : > { %v4080_v61 = vpack.c.b16 %v4048_v45, %v4048_v45  ;;  %v4081_v55 = vpack.c.b16 %v4049_v54, %v4049_v54  ;;  %v9949_v62 = vpop.f32.mrf.mxu2  ;;  %v3797_v11 = vpop.permute.xlu2 %3796  ;;  %v3489_v58 = vpack.c.bf16 %v3457_v20, %v3457_v20  ;;  %5836 = vrot.lane.b32.xlu1 %v3457_v20, %s8350_s29  ;;  %v2450_v29 = vadd.f32 %v2449_v3, %v10783_v34 }
 0x36d   : > { %v3296_v56 = vmul.f32 %v9230_v33, %v3263_v60  ;;  %v3839_v25 = vsel %vm3812_vm2, %v3708_v44, %v3797_v11 }
 0x36e   : > { %4145 = vst.msk [vmem:[#allocation3 + $0xe4] sm:$0xf] %vm4118_vm14, %v4080_v61  ;;  %v3893_v39 = vunpack.c.l.b16 %v3839_v25  ;;  %v3894_v63 = vunpack.c.h.b16 %v3839_v25  ;;  %v3553_v17 = vunpack.c.l.b16 %v3489_v58  ;;  %v8161_v25 = vld [vmem:[#allocation3 + $0x84] sm:$0xf] }
 0x36f   : > { %4146 = vst.msk [vmem:[#allocation3 + $0xec] sm:$0xf] %vm4118_vm14, %v4081_v55  ;;  %v3329_v19 = vadd.f32 %v9235_v6, %v3296_v56 }
 0x370   : > { %v3925_v52 = vpack.c.b16 %v3893_v39, %v3893_v39  ;;  %v3926_v43 = vpack.c.b16 %v3894_v63, %v3894_v63  ;;  %v3230_v26 = vpop.f32.mrf.mxu0  ;;  %v3570_v2 = vpack.c.b16 %v3553_v17, %v3552_v21  ;;  %v3707_v63 = vsel %vm8470_vm4, 0, %v9669_v46 }
 0x371   : > { %v3231_v41 = vadd.f32 %v3230_v26, %v3142_v7  ;;  %vm3361_vm0 = vcmp.gt.f32.partialorder %v3329_v19, 0.0  ;;  %v3426_v45 = vmul.f32 0.1, %v3329_v19  ;;  %v7359_v54 = vld [vmem:[#allocation3 + $0x70] sm:$0xf] }
 0x372   : > { %3990 = vst [vmem:[#allocation3 + $0x90] sm:$0xf] %v3925_v52  ;;  %v3671_v37 = vshrl.u32 %v3570_v2, 16  ;;  %v3674_v13 = vshll.u32 %v3570_v2, 16  ;;  %3808 = vrot.lane.b32.xlu2 %v3570_v2, %s8350_s29  ;;  %vm3394_vm1 = vmor %vm3361_vm0, %vm3363_vm7  ;;  %v8202_v10 = vld [vmem:[#allocation3 + $0x74] sm:$0xf0] }
 0x373   : > { %3991 = vst [vmem:[#allocation3 + $0x98] sm:$0xf] %v3926_v43  ;;  %v3264_v60 = vadd.f32 %v3231_v41, %v2450_v29  ;;  %v3458_v20 = vsel %vm3394_vm1, %v3329_v19, %v3426_v45  ;;  %v7360_v61 = vor.u32 %v8202_v10, %v7359_v54  ;;  %v7559_v55 = vld [vmem:[#allocation3 + $0x70] sm:$0xf]  ;;  %v8160_v44 = vld [vmem:[#allocation3 + $0x74] sm:$0xf0] }
 0x374   : > { %v3744_v11 = vrot.slane %v3674_v13, 1  ;;  %v9968_v58 = vpop.f32.mrf.mxu2  ;;  %5838 = vrot.lane.b32.xlu1 %v3458_v20, %s8350_s29  ;;  %v7560_v56 = vor.u32 %v8160_v44, %v7559_v55  ;;  %v3673_v3 = vrot.slane %v3671_v37, 7  ;;  %v7569_v7 = vld [vmem:[#allocation3 + $0x88] sm:$0xf0]  ;;  %v3490_v44 = vpack.c.bf16 %v3458_v20, %v3458_v20 }
 0x375   : > { %v3297_v39 = vmul.f32 %v9230_v33, %v3264_v60  ;;  %v3795_v17 = vpop.permute.xlu1 %3794  ;;  %v8215_v21 = vld [vmem:[#allocation3 + $0xe4] sm:$0xf]  ;;  %v8268_v19 = vld [vmem:[%s10724_s2 + $0xd8] sm:$0xff]  ;;  %v7572_v45 = vor.u32 %v8161_v25, %v7569_v7 }
 0x376   : > { %v3745_v15 = vor.u32 %v3744_v11, %v3671_v37  ;;  %v3836_v52 = vsel %vm3812_vm2, %v3707_v63, %v3795_v17  ;;  %v7417_v43 = vld [vmem:[#allocation3 + $0xe8] sm:$0xf0]  ;;  %v9979_v26 = vor.u32 %v3674_v13, %v3673_v3  ;;  %5474 = vmatpush.bf16.msrb.mxu1 %v8268_v19  ;;  %v3554_v20 = vunpack.c.l.b16 %v3490_v44 }
 0x377   : > { %4566 = vmatmul.bf16.gmra.mxu1 %v7360_v61  ;;  %v3891_v2 = vunpack.c.l.b16 %v3836_v52  ;;  %v3892_v33 = vunpack.c.h.b16 %v3836_v52  ;;  %v7420_v34 = vor.u32 %v8215_v21, %v7417_v43  ;;  %v3330_v46 = vadd.f32 %v9235_v6, %v3297_v39 }
 0x378   : > { %5013 = vmatmul.bf16.gmra.mxu3 %v7560_v56  ;;  %v3778_v29 = vsel %vm8479_vm5, %v3745_v15, 0  ;;  %v9984_v41 = vpop.f32.mrf.mxu0 }
 0x379   : > { %v4050_v54 = vunpack.c.l.b16 %v3778_v29  ;;  %v4051_v37 = vunpack.c.h.b16 %v3778_v29  ;;  %v3923_v10 = vpack.c.b16 %v3891_v2, %v3891_v2  ;;  %v3924_v60 = vpack.c.b16 %v3892_v33, %v3892_v33  ;;  %7498 = vmatmul.msk.bf16.gmra.mxu2 %vm3812_vm2, %v7420_v34  ;;  %v4979_v2 = vpop.f32.mrf.mxu3 }
 0x37a   : > { %vm3362_vm3 = vcmp.gt.f32.partialorder %v3330_v46, 0.0  ;;  %v3427_v13 = vmul.f32 0.1, %v3330_v46 }
 0x37b   : > { %v4082_v61 = vpack.c.b16 %v4050_v54, %v4050_v54  ;;  %v4083_v55 = vpack.c.b16 %v4051_v37, %v4051_v37  ;;  %3988 = vst [vmem:[#allocation3 + $0x80] sm:$0xf] %v3923_v10  ;;  %7685 = vmatmul.msk.bf16.gmra.mxu0 %vm3812_vm2, %v7572_v45  ;;  %vm3395_vm6 = vmor %vm3362_vm3, %vm3363_vm7  ;;  %v8163_v45 = vld [vmem:[#allocation3 + $0x94] sm:$0xf]  ;;  %v7577_v54 = vld [vmem:[#allocation3 + $0x98] sm:$0xf0] }
 0x37c   : > { %3989 = vst [vmem:[#allocation3 + $0x88] sm:$0xf] %v3924_v60  ;;  %v9990_v6 = vpop.f32.mrf.mxu2  ;;  %v3459_v11 = vsel %vm3395_vm6, %v3330_v46, %v3427_v13  ;;  %5826 = vrot.lane.b32.xlu1 %v9861_v9, %s8350_s29  ;;  %v8273_v37 = vld [vmem:[%s10724_s2 + $0x100] sm:$0xff]  ;;  %v7580_v13 = vor.u32 %v8163_v45, %v7577_v54 }
 0x37d   : > { %4147 = vst.msk [vmem:[#allocation3 + $0xf4] sm:$0xf] %vm4118_vm14, %v4082_v61  ;;  %v3491_v56 = vpack.c.bf16 %v3459_v11, %v3459_v11  ;;  %5840 = vrot.lane.b32.xlu2 %v3459_v11, %s8350_s29  ;;  %5566 = vmatpush.bf16.msrb.mxu2 %v8273_v37 }
 0x37e   : > { %4148 = vst.msk [vmem:[#allocation3 + $0xfc] sm:$0xf] %vm4118_vm14, %v4083_v55 }
 0x37f   : > { %v3555_v25 = vunpack.c.l.b16 %v3491_v56 }
 0x380   : > { %v9997_v3 = vpop.f32.mrf.mxu0 }
 0x381   : > { %v3571_v36 = vpack.c.b16 %v3555_v25, %v3554_v20  ;;  %v4981_v27 = vpop.f32.mrf.mxu3  ;;  %v8206_v25 = vld [vmem:[#allocation3 + $0x94] sm:$0xf0] }
 0x382   : > { %v7367_v39 = vld [vmem:[#allocation3 + $0x80] sm:$0xf] }
 0x383   : > { %v7567_v63 = vld [vmem:[#allocation3 + $0x80] sm:$0xf]  ;;  %v3678_v17 = vshrl.u32 %v3571_v36, 16  ;;  %v3681_v21 = vshll.u32 %v3571_v36, 16  ;;  %3810 = vrot.lane.b32.xlu0 %v3571_v36, %s8350_s29  ;;  %v8204_v7 = vld [vmem:[#allocation3 + $0x84] sm:$0xf0] }
 0x384   : > { %v8162_v9 = vld [vmem:[#allocation3 + $0x84] sm:$0xf0]  ;;  %v10000_v19 = vpop.f32.mrf.mxu2  ;;  %5824 = vrot.lane.b32.xlu1 %v9834_v22, %s8350_s29  ;;  %v7368_v15 = vor.u32 %v8204_v7, %v7367_v39  ;;  %v8217_v43 = vld [vmem:[#allocation3 + $0xf4] sm:$0xf]  ;;  %v7575_v39 = vld [vmem:[#allocation3 + $0x90] sm:$0xf] }
 0x385   : > { %v7568_v52 = vor.u32 %v8162_v9, %v7567_v63  ;;  %v3746_v33 = vrot.slane %v3681_v21, 1  ;;  %5828 = vrot.lane.b32.xlu2 %v9875_v30, %s8350_s29  ;;  %v7425_v34 = vld [vmem:[#allocation3 + $0xf8] sm:$0xf0]  ;;  %v3680_v46 = vrot.slane %v3678_v17, 7  ;;  %v8164_v63 = vld [vmem:[#allocation3 + $0x94] sm:$0xf0] }
 0x386   : > { %v7428_v29 = vor.u32 %v8217_v43, %v7425_v34  ;;  %v7576_v9 = vor.u32 %v8164_v63, %v7575_v39  ;;  %v7585_v43 = vld [vmem:[#allocation3 + $0xa8] sm:$0xf0]  ;;  %v8233_v39 = vld [vmem:[#allocation3 + $0x24] sm:$0xf] }
 0x387   : > { %4571 = vmatmul.bf16.gmra.mxu1 %v7368_v15  ;;  %v3747_v10 = vor.u32 %v3746_v33, %v3678_v17  ;;  %v10009_v22 = vor.u32 %v3681_v21, %v3680_v46  ;;  %v3709_v21 = vsel %vm8470_vm4, 0, %v9768_v5 }
 0x388   : > { %5018 = vmatmul.bf16.gmra.mxu3 %v7568_v52  ;;  %v10011_v60 = vpop.f32.mrf.mxu0  ;;  %v8165_v52 = vld [vmem:[#allocation3 + $0xa4] sm:$0xf] }
 0x389   : > { %v3779_v30 = vsel %vm8479_vm5, %v3747_v10, 0  ;;  %7499 = vmatmul.msk.bf16.gmra.mxu2 %vm3812_vm2, %v7428_v29  ;;  %v7588_v37 = vor.u32 %v8165_v52, %v7585_v43 }
 0x38a   : > { %v4052_v61 = vunpack.c.l.b16 %v3779_v30  ;;  %v4053_v55 = vunpack.c.h.b16 %v3779_v30 }
 0x38b   : > { %5834 = vrot.lane.b32.xlu0 %v9936_v0, %s8350_s29  ;;  %7686 = vmatmul.msk.bf16.gmra.mxu0 %vm3812_vm2, %v7580_v13  ;;  %v7375_v0 = vld [vmem:[#allocation3 + $0x90] sm:$0xf]  ;;  %v3711_v13 = vsel %vm8470_vm4, 0, %v9865_v18 }
 0x38c   : > { %v4084_v44 = vpack.c.b16 %v4052_v61, %v4052_v61  ;;  %v4085_v11 = vpack.c.b16 %v4053_v55, %v4053_v55  ;;  %5812 = vrot.lane.b32.xlu1 %v9683_v49, %s8350_s29  ;;  %v10021_v56 = vpop.f32.mrf.mxu2  ;;  %v7376_v49 = vor.u32 %v8206_v25, %v7375_v0 }
 0x38d   : > { %5830 = vrot.lane.b32.xlu2 %v9900_v8, %s8350_s29 }
 0x38e   : > { %4149 = vst.msk [vmem:[#allocation3 + $0x104] sm:$0xf] %vm4118_vm14, %v4084_v44 }
 0x38f   : > { %4150 = vst.msk [vmem:[#allocation3 + $0x10c] sm:$0xf] %vm4118_vm14, %v4085_v11 }
 0x390   : > { %v10027_v20 = vpop.f32.mrf.mxu0 }
 0x392   : > { %v4537_v36 = vpop.f32.mrf.mxu1 }
 0x393   : > { %v4627_v17 = vadd.f32 %v9777_v40, %v4537_v36  ;;  %5832 = vrot.lane.b32.xlu0 %v9910_v48, %s8350_s29 }
 0x394   : > { %5814 = vrot.lane.b32.xlu1 %v9718_v35, %s8350_s29  ;;  %v8267_v35 = vld [vmem:[%s10724_s2 + $0xd0] sm:$0xff] }
 0x395   : > { %v4980_v8 = vadd.f32 %v4979_v2, %v4627_v17  ;;  %5818 = vrot.lane.b32.xlu2 %v9766_v59, %s8350_s29  ;;  %v3799_v7 = vpop.permute.xlu0 %3798  ;;  %v8219_v15 = vld [vmem:[#allocation3 + $0x104] sm:$0xf]  ;;  %v10043_v2 = vpop.f32.mrf.mxu2  ;;  %5475 = vmatpush.bf16.msrb.mxu1 %v8267_v35 }
 0x396   : > { %v3842_v40 = vsel %vm3812_vm2, %v3709_v21, %v3799_v7  ;;  %v7433_v48 = vld [vmem:[#allocation3 + $0x108] sm:$0xf0] }
 0x397   : > { %4576 = vmatmul.bf16.gmra.mxu1 %v7376_v49  ;;  %v3895_v59 = vunpack.c.l.b16 %v3842_v40  ;;  %v3896_v33 = vunpack.c.h.b16 %v3842_v40  ;;  %v7436_v34 = vor.u32 %v8219_v15, %v7433_v48  ;;  %v10048_v29 = vadd.f32 %v9984_v41, %v4980_v8  ;;  %v7593_v48 = vld [vmem:[#allocation3 + $0xb8] sm:$0xf0] }
 0x398   : > { %5023 = vmatmul.bf16.gmra.mxu3 %v7576_v9  ;;  %v10045_v46 = vpop.f32.mrf.mxu0  ;;  %v3710_v49 = vsel %vm8470_vm4, 0, %v9820_v53  ;;  %v7721_v9 = vld [vmem:[#allocation3 + $0x28] sm:$0xf0] }
 0x399   : > { %v4984_v5 = vpop.f32.mrf.mxu3  ;;  %v3927_v45 = vpack.c.b16 %v3895_v59, %v3895_v59  ;;  %v3928_v54 = vpack.c.b16 %v3896_v33, %v3896_v33  ;;  %7500 = vmatmul.msk.bf16.gmra.mxu2 %vm3812_vm2, %v7436_v34 }
 0x39a   : > { %v4539_v10 = vpop.f32.mrf.mxu1 }
 0x39b   : > { %3992 = vst [vmem:[#allocation3 + $0xa0] sm:$0xf] %v3927_v45  ;;  %v4629_v30 = vadd.f32 %v9801_v28, %v4539_v10  ;;  %5820 = vrot.lane.b32.xlu0 %v9780_v47, %s8350_s29  ;;  %7687 = vmatmul.msk.bf16.gmra.mxu0 %vm3812_vm2, %v7588_v37 }
 0x39c   : > { %3993 = vst [vmem:[#allocation3 + $0xa8] sm:$0xf] %v3928_v54  ;;  %5802 = vrot.lane.b32.xlu1 %v9572_v42, %s8350_s29  ;;  %v10784_v54 = vld [vmem:[#allocation20_spill] sm:$0xff] }
 0x39d   : > { %v4982_v41 = vadd.f32 %v4981_v27, %v4629_v30  ;;  %5816 = vrot.lane.b32.xlu2 %v9730_v38, %s8350_s29  ;;  %v3803_v61 = vpop.permute.xlu2 %3802  ;;  %v10068_v25 = vpop.f32.mrf.mxu2 }
 0x39e   : > { %v3848_v28 = vsel %vm3812_vm2, %v3711_v13, %v3803_v61 }
 0x39f   : > { %v3899_v55 = vunpack.c.l.b16 %v3848_v28  ;;  %v3900_v44 = vunpack.c.h.b16 %v3848_v28  ;;  %v10064_v47 = vadd.f32 %v9997_v3, %v4982_v41 }
 0x3a0   : > { %v10066_v0 = vpop.f32.mrf.mxu0 }
 0x3a1   : > { %v4986_v11 = vpop.f32.mrf.mxu3  ;;  %v3931_v42 = vpack.c.b16 %v3899_v55, %v3899_v55  ;;  %v3932_v27 = vpack.c.b16 %v3900_v44, %v3900_v44 }
 0x3a2   : > { %v7383_v38 = vld [vmem:[#allocation3 + $0xa0] sm:$0xf] }
 0x3a3   : > { %v7583_v36 = vld [vmem:[#allocation3 + $0xa0] sm:$0xf]  ;;  %3996 = vst [vmem:[#allocation3 + $0xc0] sm:$0xf] %v3931_v42  ;;  %v4542_v18 = vpop.f32.mrf.mxu1  ;;  %5822 = vrot.lane.b32.xlu0 %v9818_v57, %s8350_s29  ;;  %v8208_v63 = vld [vmem:[#allocation3 + $0xa4] sm:$0xf0] }
 0x3a4   : > { %v8166_v17 = vld [vmem:[#allocation3 + $0xa4] sm:$0xf0]  ;;  %3997 = vst [vmem:[#allocation3 + $0xc8] sm:$0xf] %v3932_v27  ;;  %v4632_v3 = vadd.f32 %v9832_v31, %v4542_v18  ;;  %5800 = vrot.lane.b32.xlu1 %v9532_v51, %s8350_s29  ;;  %v3801_v8 = vpop.permute.xlu1 %3800  ;;  %v7384_v21 = vor.u32 %v8208_v63, %v7383_v38  ;;  %v8167_v31 = vld [vmem:[#allocation3 + $0xb4] sm:$0xf]  ;;  %v7724_v51 = vor.u32 %v8233_v39, %v7721_v9 }
 0x3a5   : > { %v7584_v7 = vor.u32 %v8166_v17, %v7583_v36  ;;  %5804 = vrot.lane.b32.xlu2 %v9589_v12, %s8350_s29  ;;  %v3845_v57 = vsel %vm3812_vm2, %v3710_v49, %v3801_v8  ;;  %v7596_v12 = vor.u32 %v8167_v31, %v7593_v48  ;;  %v8169_v38 = vld [vmem:[#allocation3 + $0xc4] sm:$0xf]  ;;  %v7601_v36 = vld [vmem:[#allocation3 + $0xc8] sm:$0xf0] }
 0x3a6   : > { %v4985_v15 = vadd.f32 %v4984_v5, %v4632_v3  ;;  %v3897_v52 = vunpack.c.l.b16 %v3845_v57  ;;  %v3898_v40 = vunpack.c.h.b16 %v3845_v57  ;;  %v10090_v5 = vpop.f32.mrf.mxu2  ;;  %v7604_v63 = vor.u32 %v8169_v38, %v7601_v36  ;;  %v10786_v3 = vld [vmem:[#allocation23_spill] sm:$0xff]  ;;  %v10787_v49 = vld [vmem:[#allocation4_spill] sm:$0xff] }
 0x3a7   : > { %4581 = vmatmul.bf16.gmra.mxu1 %v7384_v21  ;;  %v10788_v21 = vld [vmem:[#allocation15_spill] sm:$0xff] }
 0x3a8   : > { %5028 = vmatmul.bf16.gmra.mxu3 %v7584_v7  ;;  %v3929_v43 = vpack.c.b16 %v3897_v52, %v3897_v52  ;;  %v3930_v35 = vpack.c.b16 %v3898_v40, %v3898_v40  ;;  %v10081_v53 = vpop.f32.mrf.mxu0  ;;  %v10084_v59 = vadd.f32 %v10011_v60, %v4985_v15 }
 0x3a9   : > { %7893 = vmatmul.msk.bf16.vlgmr.msrb.gmra.mxu2 %vm3812_vm2, %v7724_v51 }
 0x3aa   : > { %v4989_v33 = vpop.f32.mrf.mxu3  ;;  %3994 = vst [vmem:[#allocation3 + $0xb0] sm:$0xf] %v3929_v43  ;;  %v7399_v52 = vld [vmem:[#allocation3 + $0xc0] sm:$0xf] }
 0x3ab   : > { %3995 = vst [vmem:[#allocation3 + $0xb8] sm:$0xf] %v3930_v35  ;;  %v4544_v34 = vpop.f32.mrf.mxu1  ;;  %5810 = vrot.lane.b32.xlu0 %v9665_v1, %s8350_s29  ;;  %7688 = vmatmul.msk.bf16.gmra.mxu0 %vm3812_vm2, %v7596_v12  ;;  %v8212_v40 = vld [vmem:[#allocation3 + $0xc4] sm:$0xf0]  ;;  %v7599_v31 = vld [vmem:[#allocation3 + $0xc0] sm:$0xf] }
 0x3ac   : > { %v4634_v45 = vadd.f32 %v9855_v32, %v4544_v34  ;;  %5788 = vrot.lane.b32.xlu1 %v10784_v54, %s8350_s29  ;;  %v8170_v48 = vld [vmem:[#allocation3 + $0xc4] sm:$0xf0]  ;;  %v10790_v35 = vld [vmem:[#allocation24_spill] sm:$0xff] }
 0x3ad   : > { %5806 = vrot.lane.b32.xlu2 %v9623_v4, %s8350_s29  ;;  %v8235_v4 = vld [vmem:[#allocation3 + $0x34] sm:$0xf]  ;;  %v10792_v34 = vld [vmem:[#allocation5_spill] sm:$0xff] }
 0x3ae   : > { %v4987_v60 = vadd.f32 %v4986_v11, %v4634_v45  ;;  %v7729_v11 = vld [vmem:[#allocation3 + $0x38] sm:$0xf0]  ;;  %v10109_v42 = vpop.f32.mrf.mxu2  ;;  %v3712_v45 = vsel %vm8470_vm4, 0, %v10792_v34 }
 0x3b0   : > { %v10097_v37 = vpop.f32.mrf.mxu0  ;;  %v10100_v10 = vadd.f32 %v10027_v20, %v4987_v60  ;;  %v10785_v20 = vld [vmem:[#allocation22_spill] sm:$0xff]  ;;  %v8237_v60 = vld [vmem:[#allocation3 + $0x44] sm:$0xf] }
 0x3b1   : > { %v7391_v1 = vld [vmem:[#allocation3 + $0xb0] sm:$0xf] }
 0x3b2   : > { %v4991_v30 = vpop.f32.mrf.mxu3  ;;  %v7591_v41 = vld [vmem:[#allocation3 + $0xb0] sm:$0xf]  ;;  %v8210_v13 = vld [vmem:[#allocation3 + $0xb4] sm:$0xf0] }
 0x3b3   : > { %v8168_v61 = vld [vmem:[#allocation3 + $0xb4] sm:$0xf0]  ;;  %v4547_v28 = vpop.f32.mrf.mxu1  ;;  %5808 = vrot.lane.b32.xlu0 %v9633_v16, %s8350_s29  ;;  %v7392_v32 = vor.u32 %v8210_v13, %v7391_v1  ;;  %v10793_v1 = vld [vmem:[#allocation16_spill] sm:$0xff]  ;;  %v7600_v13 = vor.u32 %v8170_v48, %v7599_v31 }
 0x3b4   : > { %v7592_v55 = vor.u32 %v8168_v61, %v7591_v41  ;;  %v4637_v44 = vadd.f32 %v9877_v24, %v4547_v28  ;;  %5790 = vrot.lane.b32.xlu1 %v9385_v14, %s8350_s29  ;;  %v8266_v16 = vld [vmem:[%s10724_s2 + $0xc8] sm:$0xff]  ;;  %v7732_v24 = vor.u32 %v8235_v4, %v7729_v11 }
 0x3b5   : > { %5794 = vrot.lane.b32.xlu2 %v10785_v20, %s8350_s29  ;;  %5476 = vmatpush.bf16.msrb.mxu1 %v8266_v16 }
 0x3b6   : > { %v4990_v27 = vadd.f32 %v4989_v33, %v4637_v44  ;;  %v10128_v9 = vpop.f32.mrf.mxu2  ;;  %v10791_v33 = vld [vmem:[#allocation6_spill] sm:$0xff]  ;;  %v7609_v44 = vld [vmem:[#allocation3 + $0xd8] sm:$0xf0] }
 0x3b7   : > { %4586 = vmatmul.bf16.gmra.mxu1 %v7392_v32 }
 0x3b8   : > { %5033 = vmatmul.bf16.gmra.mxu3 %v7592_v55  ;;  %v10115_v14 = vadd.f32 %v10045_v46, %v4990_v27  ;;  %v10118_v18 = vpop.f32.mrf.mxu0  ;;  %v10789_v46 = vld [vmem:[#allocation21_spill] sm:$0xff]  ;;  %v8171_v55 = vld [vmem:[#allocation3 + $0xd4] sm:$0xf] }
 0x3b9   : > { %7894 = vmatmul.msk.bf16.gmra.mxu2 %vm3812_vm2, %v7732_v24  ;;  %v7612_v38 = vor.u32 %v8171_v55, %v7609_v44  ;;  %v8265_v55 = vld [vmem:[%s10724_s2 + $0xc0] sm:$0xff] }
 0x3ba   : > { %v4994_v39 = vpop.f32.mrf.mxu3  ;;  %5477 = vmatpush.bf16.msrb.mxu1 %v8265_v55 }
 0x3bb   : > { %v4549_v17 = vpop.f32.mrf.mxu1  ;;  %5796 = vrot.lane.b32.xlu0 %v10786_v3, %s8350_s29  ;;  %7689 = vmatmul.msk.bf16.gmra.mxu0 %vm3812_vm2, %v7604_v63  ;;  %v10795_v63 = vld [vmem:[#allocation7_spill] sm:$0xff] }
 0x3bc   : > { %v4639_v8 = vadd.f32 %v10787_v49, %v4549_v17  ;;  %5778 = vrot.lane.b32.xlu1 %v10788_v21, %s8350_s29  ;;  %v10796_v21 = vld [vmem:[#allocation17_spill] sm:$0xff] }
 0x3bd   : > { %5792 = vrot.lane.b32.xlu2 %v10789_v46, %s8350_s29 }
 0x3be   : > { %v4992_v7 = vadd.f32 %v4991_v30, %v4639_v8  ;;  %v7737_v30 = vld [vmem:[#allocation3 + $0x48] sm:$0xf0]  ;;  %v10148_v36 = vpop.f32.mrf.mxu2 }
 0x3bf   : > { %v7740_v4 = vor.u32 %v8237_v60, %v7737_v30  ;;  %v8239_v30 = vld [vmem:[#allocation3 + $0x54] sm:$0xf] }
 0x3c0   : > { %v10131_v57 = vadd.f32 %v10066_v0, %v4992_v7  ;;  %v10133_v51 = vpop.f32.mrf.mxu0  ;;  %v7400_v0 = vor.u32 %v8212_v40, %v7399_v52 }
 0x3c2   : > { %v4996_v15 = vpop.f32.mrf.mxu3 }
 0x3c3   : > { %5798 = vrot.lane.b32.xlu0 %v10790_v35, %s8350_s29 }
 0x3c4   : > { %v4552_v43 = vpop.f32.mrf.mxu1  ;;  %v3805_v54 = vpop.permute.xlu0 %3804 }
 0x3c5   : > { %v4642_v12 = vadd.f32 %v10791_v33, %v4552_v43  ;;  %5780 = vrot.lane.b32.xlu2 %v10793_v1, %s8350_s29  ;;  %v3851_v41 = vsel %vm3812_vm2, %v3712_v45, %v3805_v54  ;;  %v10797_v45 = vld [vmem:[#allocation18_spill] sm:$0xff]  ;;  %v3713_v1 = vsel %vm8470_vm4, 0, %v9938_v50 }
 0x3c6   : > { %v3901_v28 = vunpack.c.l.b16 %v3851_v41  ;;  %v3902_v32 = vunpack.c.h.b16 %v3851_v41 }
 0x3c7   : > { %v4995_v61 = vadd.f32 %v4994_v39, %v4642_v12  ;;  %4591 = vmatmul.bf16.gmra.mxu1 %v7400_v0  ;;  %v10794_v39 = vld [vmem:[#allocation19_spill] sm:$0xff]  ;;  %v10167_v0 = vpop.f32.mrf.mxu2 }
 0x3c8   : > { %5038 = vmatmul.bf16.gmra.mxu3 %v7600_v13  ;;  %v3933_v11 = vpack.c.b16 %v3901_v28, %v3901_v28  ;;  %v3934_v20 = vpack.c.b16 %v3902_v32, %v3902_v32  ;;  %v10157_v49 = vpop.f32.mrf.mxu0  ;;  %v8173_v28 = vld [vmem:[#allocation3 + $0xe4] sm:$0xf]  ;;  %v7617_v32 = vld [vmem:[#allocation3 + $0xe8] sm:$0xf0] }
 0x3c9   : > { %v10145_v27 = vadd.f32 %v10081_v53, %v4995_v61  ;;  %7895 = vmatmul.msk.bf16.gmra.mxu2 %vm3812_vm2, %v7740_v4  ;;  %v3714_v53 = vsel %vm8470_vm4, 0, %v9979_v26 }
 0x3ca   : > { %3998 = vst [vmem:[#allocation3 + $0xd0] sm:$0xf] %v3933_v11 }
 0x3cb   : > { %v4999_v16 = vpop.f32.mrf.mxu3  ;;  %3999 = vst [vmem:[#allocation3 + $0xd8] sm:$0xf] %v3934_v20  ;;  %5786 = vrot.lane.b32.xlu0 %v10794_v39, %s8350_s29  ;;  %7690 = vmatmul.msk.bf16.gmra.mxu0 %vm3812_vm2, %v7612_v38 }
 0x3cc   : > { %v4554_v24 = vpop.f32.mrf.mxu1  ;;  %v3809_v3 = vpop.permute.xlu2 %3808 }
 0x3cd   : > { %v4644_v17 = vadd.f32 %v10795_v63, %v4554_v24  ;;  %v3857_v8 = vsel %vm3812_vm2, %v3714_v53, %v3809_v3  ;;  %5782 = vrot.lane.b32.xlu2 %v10796_v21, %s8350_s29 }
 0x3ce   : > { %v3905_v7 = vunpack.c.l.b16 %v3857_v8  ;;  %v3906_v52 = vunpack.c.h.b16 %v3857_v8 }
 0x3cf   : > { %v4997_v46 = vadd.f32 %v4996_v15, %v4644_v17  ;;  %v10183_v17 = vpop.f32.mrf.mxu2 }
 0x3d0   : > { %v3937_v40 = vpack.c.b16 %v3905_v7, %v3905_v7  ;;  %v3938_v31 = vpack.c.b16 %v3906_v52, %v3906_v52  ;;  %v5095_v44 = vpop.f32.mrf.mxu0 }
 0x3d1   : > { %v10163_v48 = vadd.f32 %v10097_v37, %v4997_v46  ;;  %v7407_v43 = vld [vmem:[#allocation3 + $0xd0] sm:$0xf]  ;;  %v7745_v37 = vld [vmem:[#allocation3 + $0x58] sm:$0xf0] }
 0x3d2   : > { %v7607_v35 = vld [vmem:[#allocation3 + $0xd0] sm:$0xf]  ;;  %4002 = vst [vmem:[#allocation3 + $0xf0] sm:$0xf] %v3937_v40  ;;  %v8214_v33 = vld [vmem:[#allocation3 + $0xd4] sm:$0xf0]  ;;  %v7748_v11 = vor.u32 %v8239_v30, %v7745_v37 }
 0x3d3   : > { %v5001_v26 = vpop.f32.mrf.mxu3  ;;  %v8172_v12 = vld [vmem:[#allocation3 + $0xd4] sm:$0xf0]  ;;  %4003 = vst [vmem:[#allocation3 + $0xf8] sm:$0xf] %v3938_v31  ;;  %5784 = vrot.lane.b32.xlu0 %v10797_v45, %s8350_s29  ;;  %v7408_v54 = vor.u32 %v8214_v33, %v7407_v43  ;;  %v8241_v33 = vld [vmem:[#allocation3 + $0x64] sm:$0xf] }
 0x3d4   : > { %v4557_v34 = vpop.f32.mrf.mxu1  ;;  %v7608_v15 = vor.u32 %v8172_v12, %v7607_v35  ;;  %v7753_v12 = vld [vmem:[#allocation3 + $0x68] sm:$0xf0] }
 0x3d5   : > { %v4647_v60 = vadd.f32 %v9949_v62, %v4557_v34  ;;  %v3807_v41 = vpop.permute.xlu1 %3806  ;;  %v8175_v34 = vld [vmem:[#allocation3 + $0xf4] sm:$0xf] }
 0x3d6   : > { %v3854_v61 = vsel %vm3812_vm2, %v3713_v1, %v3807_v41 }
 0x3d7   : > { %v5000_v13 = vadd.f32 %v4999_v16, %v4647_v60  ;;  %4596 = vmatmul.bf16.gmra.mxu1 %v7408_v54  ;;  %v3903_v4 = vunpack.c.l.b16 %v3854_v61  ;;  %v3904_v62 = vunpack.c.h.b16 %v3854_v61  ;;  %v7620_v16 = vor.u32 %v8173_v28, %v7617_v32  ;;  %v10189_v45 = vpop.f32.mrf.mxu2 }
 0x3d8   : > { %5043 = vmatmul.bf16.gmra.mxu3 %v7608_v15 }
 0x3d9   : > { %v10178_v20 = vadd.f32 %v10118_v18, %v5000_v13  ;;  %v3935_v50 = vpack.c.b16 %v3903_v4, %v3903_v4  ;;  %v3936_v38 = vpack.c.b16 %v3904_v62, %v3904_v62  ;;  %7896 = vmatmul.msk.bf16.gmra.mxu2 %vm3812_vm2, %v7748_v11  ;;  %v5098_v18 = vpop.f32.mrf.mxu0  ;;  %v7423_v13 = vld [vmem:[#allocation3 + $0xf0] sm:$0xf] }
 0x3da   : > { %v8218_v61 = vld [vmem:[#allocation3 + $0xf4] sm:$0xf0] }
 0x3db   : > { %v5004_v24 = vpop.f32.mrf.mxu3  ;;  %4000 = vst [vmem:[#allocation3 + $0xe0] sm:$0xf] %v3935_v50  ;;  %7691 = vmatmul.msk.bf16.gmra.mxu0 %vm3812_vm2, %v7620_v16  ;;  %v8176_v55 = vld [vmem:[#allocation3 + $0xf4] sm:$0xf0]  ;;  %v7424_v11 = vor.u32 %v8218_v61, %v7423_v13  ;;  %v8243_v50 = vld [vmem:[#allocation3 + $0x74] sm:$0xf] }
 0x3dc   : > { %v4559_v39 = vpop.f32.mrf.mxu1  ;;  %4001 = vst [vmem:[#allocation3 + $0xe8] sm:$0xf] %v3936_v38  ;;  %v7761_v38 = vld [vmem:[#allocation3 + $0x78] sm:$0xf0] }
 0x3dd   : > { %v4649_v63 = vadd.f32 %v9968_v58, %v4559_v39 }
 0x3df   : > { %v5002_v53 = vadd.f32 %v5001_v26, %v4649_v63  ;;  %v7625_v26 = vld [vmem:[#allocation3 + $0xf8] sm:$0xf0]  ;;  %v10199_v28 = vpop.f32.mrf.mxu2 }
 0x3e0   : > { %v7628_v15 = vor.u32 %v8175_v34, %v7625_v26 }
 0x3e1   : > { %v10186_v3 = vadd.f32 %v10133_v51, %v5002_v53  ;;  %v7756_v51 = vor.u32 %v8241_v33, %v7753_v12 }
 0x3e2   : > { %v7415_v21 = vld [vmem:[#allocation3 + $0xe0] sm:$0xf] }
 0x3e3   : > { %v5006_v8 = vpop.f32.mrf.mxu3  ;;  %v7615_v46 = vld [vmem:[#allocation3 + $0xe0] sm:$0xf]  ;;  %v8216_v52 = vld [vmem:[#allocation3 + $0xe4] sm:$0xf0] }
 0x3e4   : > { %v4562_v7 = vpop.f32.mrf.mxu1  ;;  %v8174_v40 = vld [vmem:[#allocation3 + $0xe4] sm:$0xf0]  ;;  %v7416_v43 = vor.u32 %v8216_v52, %v7415_v21  ;;  %v7764_v21 = vor.u32 %v8243_v50, %v7761_v38 }
 0x3e5   : > { %v4652_v31 = vadd.f32 %v9990_v6, %v4562_v7  ;;  %v7616_v35 = vor.u32 %v8174_v40, %v7615_v46  ;;  %v5100_v6 = vpop.f32.mrf.mxu0 }
 0x3e7   : > { %v5005_v58 = vadd.f32 %v5004_v24, %v4652_v31  ;;  %4601 = vmatmul.bf16.gmra.mxu1 %v7416_v43 }
 0x3e8   : > { %5048 = vmatmul.bf16.gmra.mxu3 %v7616_v35 }
 0x3e9   : > { %v10192_v54 = vadd.f32 %v10157_v49, %v5005_v58  ;;  %7897 = vmatmul.msk.bf16.gmra.mxu2 %vm3812_vm2, %v7756_v51  ;;  %v7623_v49 = vld [vmem:[#allocation3 + $0xf0] sm:$0xf]  ;;  %v8245_v51 = vld [vmem:[#allocation3 + $0x84] sm:$0xf] }
 0x3ea   : > { %v7624_v24 = vor.u32 %v8176_v55, %v7623_v49  ;;  %v7719_v55 = vld [vmem:[#allocation3 + $0x20] sm:$0xf] }
 0x3eb   : > { %v5009_v60 = vpop.f32.mrf.mxu3  ;;  %7692 = vmatmul.msk.bf16.gmra.mxu0 %vm3812_vm2, %v7628_v15  ;;  %v7769_v15 = vld [vmem:[#allocation3 + $0x88] sm:$0xf0] }
 0x3ec   : > { %v4564_v30 = vpop.f32.mrf.mxu1 }
 0x3ed   : > { %v4654_v37 = vadd.f32 %v10000_v19, %v4564_v30  ;;  %v5103_v16 = vpop.f32.mrf.mxu0  ;;  %v3715_v19 = vsel %vm8470_vm4, 0, %v10009_v22  ;;  %v10209_v22 = vpop.f32.mrf.mxu2 }
 0x3ef   : > { %v5007_v1 = vadd.f32 %v5006_v8, %v4654_v37  ;;  %v7772_v37 = vor.u32 %v8245_v51, %v7769_v15 }
 0x3f1   : > { %v10197_v41 = vadd.f32 %v5095_v44, %v5007_v1 }
 0x3f3   : > { %v5011_v32 = vpop.f32.mrf.mxu3 }
 0x3f4   : > { %v4567_v4 = vpop.f32.mrf.mxu1 }
 0x3f5   : > { %v4657_v62 = vadd.f32 %v10021_v56, %v4567_v4  ;;  %v3811_v44 = vpop.permute.xlu0 %3810  ;;  %v5105_v43 = vpop.f32.mrf.mxu0  ;;  %v8234_v4 = vld [vmem:[#allocation3 + $0x24] sm:$0xf0] }
 0x3f6   : > { %v3860_v63 = vsel %vm3812_vm2, %v3715_v19, %v3811_v44  ;;  %v8247_v19 = vld [vmem:[#allocation3 + $0x94] sm:$0xf]  ;;  %v7777_v44 = vld [vmem:[#allocation3 + $0x98] sm:$0xf0] }
 0x3f7   : > { %v5010_v39 = vadd.f32 %v5009_v60, %v4657_v62  ;;  %4606 = vmatmul.bf16.gmra.mxu1 %v7424_v11  ;;  %v3907_v53 = vunpack.c.l.b16 %v3860_v63  ;;  %v3908_v8 = vunpack.c.h.b16 %v3860_v63  ;;  %v10215_v60 = vpop.f32.mrf.mxu2 }
 0x3f8   : > { %5053 = vmatmul.bf16.gmra.mxu3 %v7624_v24  ;;  %10798 = vst [vmem:[#allocation8_spill] sm:$0xff] %v10215_v60 }
 0x3f9   : > { %v10206_v46 = vadd.f32 %v5098_v18, %v5010_v39  ;;  %v3939_v56 = vpack.c.b16 %v3907_v53, %v3907_v53  ;;  %v3940_v7 = vpack.c.b16 %v3908_v8, %v3908_v8  ;;  %7898 = vmatmul.msk.bf16.gmra.mxu2 %vm3812_vm2, %v7764_v21  ;;  %v7780_v39 = vor.u32 %v8247_v19, %v7777_v44 }
 0x3fb   : > { %v5014_v52 = vpop.f32.mrf.mxu3  ;;  %4004 = vst [vmem:[#allocation3 + $0x100] sm:$0xf] %v3939_v56 }
 0x3fc   : > { %v4569_v23 = vpop.f32.mrf.mxu1  ;;  %4005 = vst [vmem:[#allocation3 + $0x108] sm:$0xf] %v3940_v7 }
 0x3fd   : > { %v4659_v40 = vadd.f32 %v10043_v2, %v4569_v23  ;;  %v5108_v2 = vpop.f32.mrf.mxu0  ;;  %v8236_v23 = vld [vmem:[#allocation3 + $0x34] sm:$0xf0] }
 0x3ff   : > { %v5012_v31 = vadd.f32 %v5011_v32, %v4659_v40  ;;  %v10221_v49 = vpop.f32.mrf.mxu2 }
 0x400   : > { %10799 = vst [vmem:[#allocation9_spill] sm:$0xff] %v10221_v49 }
 0x401   : > { %v10212_v35 = vadd.f32 %v5100_v6, %v5012_v31 }
 0x402   : > { %v7431_v12 = vld [vmem:[#allocation3 + $0x100] sm:$0xf] }
 0x403   : > { %v5016_v33 = vpop.f32.mrf.mxu3  ;;  %v8220_v58 = vld [vmem:[#allocation3 + $0x104] sm:$0xf0] }
 0x404   : > { %v4572_v18 = vpop.f32.mrf.mxu1  ;;  %v7432_v26 = vor.u32 %v8220_v58, %v7431_v12  ;;  %v8249_v12 = vld [vmem:[#allocation3 + $0xa4] sm:$0xf] }
 0x405   : > { %v4662_v34 = vadd.f32 %v10068_v25, %v4572_v18  ;;  %v5110_v11 = vpop.f32.mrf.mxu0  ;;  %v7785_v18 = vld [vmem:[#allocation3 + $0xa8] sm:$0xf0] }
 0x406   : > { %v7788_v51 = vor.u32 %v8249_v12, %v7785_v18  ;;  %v8253_v12 = vld [vmem:[#allocation3 + $0xc4] sm:$0xf]  ;;  %v7801_v18 = vld [vmem:[#allocation3 + $0xc8] sm:$0xf0] }
 0x407   : > { %v5015_v30 = vadd.f32 %v5014_v52, %v4662_v34  ;;  %4611 = vmatmul.bf16.gmra.mxu1 %v7432_v26 }
 0x409   : > { %v10217_v1 = vadd.f32 %v5103_v16, %v5015_v30  ;;  %7899 = vmatmul.msk.bf16.gmra.mxu2 %vm3812_vm2, %v7772_v37  ;;  %v7720_v16 = vor.u32 %v8234_v4, %v7719_v55 }
 0x40b   : > { %v5019_v6 = vpop.f32.mrf.mxu3 }
 0x40c   : > { %v4574_v13 = vpop.f32.mrf.mxu1 }
 0x40d   : > { %v4664_v61 = vadd.f32 %v10090_v5, %v4574_v13  ;;  %v10229_v5 = vpop.f32.mrf.mxu2  ;;  %v5113_v56 = vpop.f32.mrf.mxu0 }
 0x40e   : > { %10800 = vst [vmem:[#allocation10_spill] sm:$0xff] %v10229_v5 }
 0x40f   : > { %v5017_v32 = vadd.f32 %v5016_v33, %v4664_v61  ;;  %v7735_v61 = vld [vmem:[#allocation3 + $0x40] sm:$0xf] }
 0x411   : > { %v10223_v25 = vadd.f32 %v5105_v43, %v5017_v32  ;;  %v8238_v32 = vld [vmem:[#allocation3 + $0x44] sm:$0xf0] }
 0x413   : > { %v5021_v62 = vpop.f32.mrf.mxu3 }
 0x414   : > { %v4577_v50 = vpop.f32.mrf.mxu1 }
 0x415   : > { %v4667_v38 = vadd.f32 %v10109_v42, %v4577_v50  ;;  %v7727_v42 = vld [vmem:[#allocation3 + $0x30] sm:$0xf]  ;;  %v10234_v31 = vpop.f32.mrf.mxu2  ;;  %v5115_v26 = vpop.f32.mrf.mxu0  ;;  %v7793_v50 = vld [vmem:[#allocation3 + $0xb8] sm:$0xf0] }
 0x416   : > { %10801 = vst [vmem:[#allocation11_spill] sm:$0xff] %v10234_v31  ;;  %v7728_v33 = vor.u32 %v8236_v23, %v7727_v42 }
 0x417   : > { %v5020_v24 = vadd.f32 %v5019_v6, %v4667_v38  ;;  %5478 = vmatmul.bf16.vlgmr.msrb.gmra.mxu1 %v7720_v16 }
 0x419   : > { %v10226_v63 = vadd.f32 %v5108_v2, %v5020_v24  ;;  %7900 = vmatmul.msk.bf16.gmra.mxu2 %vm3812_vm2, %v7780_v39 }
 0x41b   : > { %v5024_v53 = vpop.f32.mrf.mxu3 }
 0x41c   : > { %v4579_v8 = vpop.f32.mrf.mxu1 }
 0x41d   : > { %v4669_v21 = vadd.f32 %v10128_v9, %v4579_v8  ;;  %v10241_v37 = vpop.f32.mrf.mxu2  ;;  %v5118_v13 = vpop.f32.mrf.mxu0 }
 0x41e   : > { %10802 = vst [vmem:[#allocation12_spill] sm:$0xff] %v10241_v37 }
 0x41f   : > { %v5022_v7 = vadd.f32 %v5021_v62, %v4669_v21  ;;  %v7736_v62 = vor.u32 %v8238_v32, %v7735_v61 }
 0x421   : > { %v10232_v52 = vadd.f32 %v5110_v11, %v5022_v7  ;;  %v8251_v11 = vld [vmem:[#allocation3 + $0xb4] sm:$0xf]  ;;  %v10254_v7 = vpop.permute.xlu1 %5836 }
 0x422   : > { %v7796_v16 = vor.u32 %v8251_v11, %v7793_v50  ;;  %10804 = vst [vmem:[#allocation14_spill] sm:$0xff] %v10254_v7 }
 0x423   : > { %v5026_v58 = vpop.f32.mrf.mxu3 }
 0x424   : > { %v4582_v40 = vpop.f32.mrf.mxu1 }
 0x425   : > { %v4672_v43 = vadd.f32 %v10148_v36, %v4582_v40  ;;  %v10246_v19 = vpop.f32.mrf.mxu2  ;;  %v5120_v24 = vpop.f32.mrf.mxu0 }
 0x426   : > { %10803 = vst [vmem:[#allocation13_spill] sm:$0xff] %v10246_v19 }
 0x427   : > { %v5025_v34 = vadd.f32 %v5024_v53, %v4672_v43  ;;  %5483 = vmatmul.bf16.gmra.mxu1 %v7728_v33 }
 0x429   : > { %v10237_v9 = vadd.f32 %v5113_v56, %v5025_v34  ;;  %7901 = vmatmul.msk.bf16.gmra.mxu2 %vm3812_vm2, %v7788_v51  ;;  %v8240_v56 = vld [vmem:[#allocation3 + $0x54] sm:$0xf0] }
 0x42b   : > { %v5029_v6 = vpop.f32.mrf.mxu3 }
 0x42c   : > { %v4584_v15 = vpop.f32.mrf.mxu1 }
 0x42d   : > { %v4674_v30 = vadd.f32 %v10167_v0, %v4584_v15  ;;  %v10256_v42 = vpop.f32.mrf.mxu2 }
 0x42e   : > { %10805 = vst [vmem:[#allocation20_spill] sm:$0xff] %v10256_v42 }
 0x42f   : > { %v5027_v2 = vadd.f32 %v5026_v58, %v4674_v30  ;;  %v5123_v58 = vpop.f32.mrf.mxu0  ;;  %v10264_v30 = vpop.permute.xlu1 %5838 }
 0x430   : > { %10807 = vst [vmem:[#allocation23_spill] sm:$0xff] %v10264_v30 }
 0x431   : > { %v10243_v36 = vadd.f32 %v5115_v26, %v5027_v2  ;;  %v7804_v26 = vor.u32 %v8253_v12, %v7801_v18  ;;  %v8257_v18 = vld [vmem:[#allocation3 + $0xe4] sm:$0xf] }
 0x433   : > { %v5031_v44 = vpop.f32.mrf.mxu3 }
 0x434   : > { %v4587_v55 = vpop.f32.mrf.mxu1 }
 0x435   : > { %v4677_v4 = vadd.f32 %v10183_v17, %v4587_v55  ;;  %v7743_v17 = vld [vmem:[#allocation3 + $0x50] sm:$0xf] }
 0x436   : > { %v7744_v33 = vor.u32 %v8240_v56, %v7743_v17 }
 0x437   : > { %v5030_v38 = vadd.f32 %v5029_v6, %v4677_v4  ;;  %5488 = vmatmul.bf16.gmra.mxu1 %v7736_v62  ;;  %v10267_v6 = vpop.f32.mrf.mxu2  ;;  %v5125_v61 = vpop.f32.mrf.mxu0  ;;  %v7751_v4 = vld [vmem:[#allocation3 + $0x60] sm:$0xf]  ;;  %v8242_v62 = vld [vmem:[#allocation3 + $0x64] sm:$0xf0] }
 0x438   : > { %10808 = vst [vmem:[#allocation4_spill] sm:$0xff] %v10267_v6  ;;  %v7752_v50 = vor.u32 %v8242_v62, %v7751_v4  ;;  %v7767_v4 = vld [vmem:[#allocation3 + $0x80] sm:$0xf]  ;;  %v8246_v62 = vld [vmem:[#allocation3 + $0x84] sm:$0xf0] }
 0x439   : > { %v10248_v0 = vadd.f32 %v5118_v13, %v5030_v38  ;;  %7902 = vmatmul.msk.bf16.gmra.mxu2 %vm3812_vm2, %v7796_v16  ;;  %v8255_v38 = vld [vmem:[#allocation3 + $0xd4] sm:$0xf]  ;;  %v7809_v16 = vld [vmem:[#allocation3 + $0xd8] sm:$0xf0] }
 0x43b   : > { %v5034_v23 = vpop.f32.mrf.mxu3 }
 0x43c   : > { %v4589_v39 = vpop.f32.mrf.mxu1 }
 0x43d   : > { %v4679_v53 = vadd.f32 %v10189_v45, %v4589_v39  ;;  %v10259_v45 = vpop.permute.xlu2 %5840  ;;  %v10277_v39 = vpop.permute.xlu0 %5834 }
 0x43e   : > { %10806 = vst [vmem:[#allocation22_spill] sm:$0xff] %v10259_v45 }
 0x43f   : > { %v5032_v8 = vadd.f32 %v5031_v44, %v4679_v53  ;;  %v10275_v44 = vpop.permute.xlu1 %5826  ;;  %10813 = vst [vmem:[#allocation5_spill] sm:$0xff] %v10277_v39 }
 0x440   : > { %10812 = vst [vmem:[#allocation6_spill] sm:$0xff] %v10275_v44 }
 0x441   : > { %v10252_v21 = vadd.f32 %v5120_v24, %v5032_v8  ;;  %v7812_v24 = vor.u32 %v8255_v38, %v7809_v16  ;;  %v7768_v16 = vor.u32 %v8246_v62, %v7767_v4  ;;  %v7775_v4 = vld [vmem:[#allocation3 + $0x90] sm:$0xf]  ;;  %v8248_v62 = vld [vmem:[#allocation3 + $0x94] sm:$0xf0] }
 0x442   : > { %v7776_v6 = vor.u32 %v8248_v62, %v7775_v4 }
 0x444   : > { %v4592_v40 = vpop.f32.mrf.mxu1 }
 0x445   : > { %v4682_v43 = vadd.f32 %v10199_v28, %v4592_v40  ;;  %v5036_v28 = vpop.f32.mrf.mxu3  ;;  %v10271_v55 = vpop.permute.xlu2 %5828  ;;  %v8244_v40 = vld [vmem:[#allocation3 + $0x74] sm:$0xf0] }
 0x446   : > { %10810 = vst [vmem:[#allocation21_spill] sm:$0xff] %v10271_v55  ;;  %v8250_v55 = vld [vmem:[#allocation3 + $0xa4] sm:$0xf0] }
 0x447   : > { %v5035_v34 = vadd.f32 %v5034_v23, %v4682_v43  ;;  %5493 = vmatmul.bf16.gmra.mxu1 %v7744_v33  ;;  %v10284_v17 = vpop.permute.xlu1 %5824  ;;  %v7759_v23 = vld [vmem:[#allocation3 + $0x70] sm:$0xf]  ;;  %v10288_v43 = vpop.permute.xlu0 %5832 }
 0x448   : > { %10816 = vst [vmem:[#allocation7_spill] sm:$0xff] %v10284_v17  ;;  %v7760_v12 = vor.u32 %v8244_v40, %v7759_v23  ;;  %v7825_v23 = vld [vmem:[#allocation3 + $0xf8] sm:$0xf0] }
 0x449   : > { %v10261_v51 = vadd.f32 %v5123_v58, %v5035_v34  ;;  %7903 = vmatmul.msk.bf16.gmra.mxu2 %vm3812_vm2, %v7804_v26  ;;  %10817 = vst [vmem:[#allocation17_spill] sm:$0xff] %v10288_v43  ;;  %v7817_v58 = vld [vmem:[#allocation3 + $0xe8] sm:$0xf0] }
 0x44a   : > { %v7820_v26 = vor.u32 %v8257_v18, %v7817_v58 }
 0x44c   : > { %v4594_v15 = vpop.f32.mrf.mxu1 }
 0x44d   : > { %v4684_v2 = vadd.f32 %v10209_v22, %v4594_v15  ;;  %v5568_v22 = vpop.f32.mrf.mxu2  ;;  %v10280_v53 = vpop.permute.xlu2 %5830 }
 0x44e   : > { %10814 = vst [vmem:[#allocation16_spill] sm:$0xff] %v10280_v53 }
 0x44f   : > { %v5037_v13 = vadd.f32 %v5036_v28, %v4684_v2  ;;  %v10295_v15 = vpop.permute.xlu1 %5812 }
 0x451   : > { %v10269_v32 = vadd.f32 %v5125_v61, %v5037_v13  ;;  %v10299_v13 = vpop.permute.xlu0 %5820 }
 0x452   : > { %10821 = vst [vmem:[#allocation27_spill] sm:$0xff] %v10299_v13 }
 0x453   : > { %10809 = vst [vmem:[#allocation15_spill] sm:$0xff] %v10269_v32 }
 0x454   : > { %v10273_v11 = vpop.f32.mrf.mxu1 }
 0x455   : > { %10811 = vst [vmem:[#allocation24_spill] sm:$0xff] %v10273_v11  ;;  %v10286_v56 = vpop.f32.mrf.mxu2  ;;  %v10292_v34 = vpop.permute.xlu2 %5818 }
 0x456   : > { %10819 = vst [vmem:[#allocation25_spill] sm:$0xff] %v10292_v34 }
 0x457   : > { %5498 = vmatmul.bf16.gmra.mxu1 %v7752_v50  ;;  %v10305_v38 = vpop.permute.xlu1 %5814 }
 0x459   : > { %7904 = vmatmul.msk.bf16.gmra.mxu2 %vm3812_vm2, %v7812_v24  ;;  %v8259_v24 = vld [vmem:[#allocation3 + $0xf4] sm:$0xf] }
 0x45a   : > { %v7828_v18 = vor.u32 %v8259_v24, %v7825_v23  ;;  %v8261_v24 = vld [vmem:[#allocation3 + $0x104] sm:$0xf]  ;;  %v7833_v23 = vld [vmem:[#allocation3 + $0x108] sm:$0xf0] }
 0x45b   : > { %v7836_v42 = vor.u32 %v8261_v24, %v7833_v23 }
 0x45c   : > { %v10282_v8 = vpop.f32.mrf.mxu1 }
 0x45d   : > { %10815 = vst [vmem:[#allocation19_spill] sm:$0xff] %v10282_v8  ;;  %v5573_v2 = vpop.f32.mrf.mxu2  ;;  %v10301_v61 = vpop.permute.xlu2 %5816 }
 0x45f   : > { %v10316_v45 = vpop.permute.xlu1 %5802 }
 0x464   : > { %v10290_v33 = vpop.f32.mrf.mxu1 }
 0x465   : > { %10818 = vst [vmem:[#allocation18_spill] sm:$0xff] %v10290_v33  ;;  %v10307_v40 = vpop.f32.mrf.mxu2  ;;  %v10311_v58 = vpop.permute.xlu2 %5804  ;;  %v8252_v33 = vld [vmem:[#allocation3 + $0xb4] sm:$0xf0] }
 0x467   : > { %5503 = vmatmul.bf16.gmra.mxu1 %v7760_v12  ;;  %v10309_v12 = vpop.permute.xlu0 %5822 }
 0x468   : > { %10823 = vst [vmem:[#allocation29_spill] sm:$0xff] %v10309_v12 }
 0x469   : > { %7905 = vmatmul.msk.bf16.gmra.mxu2 %vm3812_vm2, %v7820_v26 }
 0x46c   : > { %v10297_v28 = vpop.f32.mrf.mxu1 }
 0x46d   : > { %10820 = vst [vmem:[#allocation26_spill] sm:$0xff] %v10297_v28  ;;  %v10318_v7 = vpop.f32.mrf.mxu2  ;;  %v10322_v39 = vpop.permute.xlu2 %5806 }
 0x46f   : > { %v10320_v30 = vpop.permute.xlu0 %5810 }
 0x474   : > { %v10303_v50 = vpop.f32.mrf.mxu1 }
 0x475   : > { %10822 = vst [vmem:[#allocation28_spill] sm:$0xff] %v10303_v50  ;;  %v10328_v19 = vpop.f32.mrf.mxu2  ;;  %v10335_v37 = vpop.permute.xlu2 %5794  ;;  %v7783_v50 = vld [vmem:[#allocation3 + $0xa0] sm:$0xf] }
 0x476   : > { %v7784_v24 = vor.u32 %v8250_v55, %v7783_v50 }
 0x477   : > { %5508 = vmatmul.bf16.gmra.mxu1 %v7768_v16 }
 0x479   : > { %7906 = vmatmul.msk.bf16.gmra.mxu2 %vm3812_vm2, %v7828_v18  ;;  %v10326_v18 = vpop.permute.xlu1 %5800 }
 0x47c   : > { %v10314_v26 = vpop.f32.mrf.mxu1 }
 0x47d   : > { %10824 = vst [vmem:[#allocation30_spill] sm:$0xff] %v10314_v26  ;;  %v10331_v26 = vpop.permute.xlu0 %5808  ;;  %v10339_v4 = vpop.f32.mrf.mxu2 }
 0x484   : > { %v10324_v16 = vpop.f32.mrf.mxu1 }
 0x485   : > { %10825 = vst [vmem:[#allocation31_spill] sm:$0xff] %v10324_v16  ;;  %v10337_v16 = vpop.permute.xlu1 %5788  ;;  %v10341_v23 = vpop.permute.xlu0 %5796 }
 0x487   : > { %5513 = vmatmul.bf16.gmra.mxu1 %v7776_v6 }
 0x489   : > { %7907 = vmatmul.msk.bf16.gmra.mxu2 %vm3812_vm2, %v7836_v42  ;;  %v10344_v42 = vpop.permute.xlu2 %5792 }
 0x48c   : > { %v10333_v43 = vpop.f32.mrf.mxu1 }
 0x48d   : > { %10826 = vst [vmem:[#allocation32_spill] sm:$0xff] %v10333_v43  ;;  %v8340_v43 = vld [vmem:[%s10725_s3] sm:$0xff]  ;;  %v10352_v5 = vpop.permute.xlu1 %5790  ;;  %v10357_v50 = vpop.permute.xlu0 %5798 }
 0x48e   : > { %v10349_v31 = vperm.slane %v8340_v43, 2 }
 0x494   : > { %v5479_v6 = vpop.f32.mrf.mxu1 }
 0x495   : > { %v5569_v62 = vadd.f32 %v5568_v22, %v5479_v6  ;;  %v10354_v22 = vpop.f32.mrf.mxu2  ;;  %v10360_v6 = vperm.slane %v8340_v43, 3  ;;  %v5779_v60 = vpop.permute.xlu1 %5778 }
 0x496   : > { %v5787_v43 = vpop.permute.xlu0 %5786 }
 0x497   : > { %v5648_v53 = vadd.f32 %v5569_v62, %v10048_v29  ;;  %5518 = vmatmul.bf16.gmra.mxu1 %v7784_v24  ;;  %v5781_v62 = vpop.permute.xlu2 %5780  ;;  %v7791_v24 = vld [vmem:[#allocation3 + $0xb0] sm:$0xf] }
 0x499   : > { %v5681_v29 = vmul.f32 %v10349_v31, %v5648_v53 }
 0x49b   : > { %v5714_v8 = vadd.f32 %v10360_v6, %v5681_v29 }
 0x49c   : > { %v5481_v44 = vpop.f32.mrf.mxu1 }
 0x49d   : > { %v5571_v28 = vadd.f32 %v10286_v56, %v5481_v44  ;;  %v7792_v44 = vor.u32 %v8252_v33, %v7791_v24  ;;  %v10364_v11 = vpop.f32.mrf.mxu2 }
 0x49f   : > { %v5649_v55 = vadd.f32 %v5571_v28, %v10064_v47  ;;  %v5874_v47 = vadd.f32 %v5779_v60, %v5714_v8  ;;  %v5783_v32 = vpop.permute.xlu2 %5782 }
 0x4a1   : > { %v5682_v28 = vmul.f32 %v10349_v31, %v5649_v55  ;;  %vm5906_vm4 = vcmp.gt.f32.partialorder %v5874_v47, 0.0 }
 0x4a3   : > { %v5715_v29 = vadd.f32 %v10360_v6, %v5682_v28 }
 0x4a4   : > { %v5484_v49 = vpop.f32.mrf.mxu1 }
 0x4a5   : > { %v5574_v17 = vadd.f32 %v5573_v2, %v5484_v49  ;;  %v5875_v8 = vadd.f32 %v5781_v62, %v5715_v29 }
 0x4a7   : > { %v5650_v56 = vadd.f32 %v5574_v17, %v10084_v59  ;;  %5523 = vmatmul.bf16.gmra.mxu1 %v7792_v44  ;;  %v5938_v59 = vmul.f32 0.1, %v5874_v47  ;;  %v10373_v44 = vpop.f32.mrf.mxu2  ;;  %vm5907_vm7 = vcmp.gt.f32.partialorder %v5875_v8, 0.0 }
 0x4a9   : > { %v5683_v53 = vmul.f32 %v10349_v31, %v5650_v56  ;;  %v5970_v55 = vsel %vm5906_vm4, %v5874_v47, %v5938_v59  ;;  %v7799_v56 = vld [vmem:[#allocation3 + $0xc0] sm:$0xf] }
 0x4ab   : > { %v5716_v13 = vadd.f32 %v10360_v6, %v5683_v53  ;;  %v8254_v53 = vld [vmem:[#allocation3 + $0xc4] sm:$0xf0] }
 0x4ac   : > { %v5486_v12 = vpop.f32.mrf.mxu1  ;;  %v7800_v28 = vor.u32 %v8254_v53, %v7799_v56  ;;  %v7807_v53 = vld [vmem:[#allocation3 + $0xd0] sm:$0xf] }
 0x4ad   : > { %v5876_v49 = vadd.f32 %v5783_v32, %v5716_v13  ;;  %v5576_v33 = vadd.f32 %v10307_v40, %v5486_v12  ;;  %v5785_v13 = vpop.permute.xlu0 %5784 }
 0x4af   : > { %v5651_v17 = vadd.f32 %v5576_v33, %v10100_v10  ;;  %vm5908_vm5 = vcmp.gt.f32.partialorder %v5876_v49, 0.0  ;;  %v5940_v60 = vmul.f32 0.1, %v5876_v49  ;;  %v5939_v33 = vmul.f32 0.1, %v5875_v8 }
 0x4b1   : > { %v5684_v2 = vmul.f32 %v10349_v31, %v5651_v17  ;;  %v5972_v24 = vsel %vm5908_vm5, %v5876_v49, %v5940_v60  ;;  %v5971_v29 = vsel %vm5907_vm7, %v5875_v8, %v5939_v33  ;;  %v10382_v17 = vpop.f32.mrf.mxu2 }
 0x4b2   : > { %v10375_v34 = vmax.f32 %v5970_v55, %v5972_v24 }
 0x4b3   : > { %v5717_v32 = vadd.f32 %v10360_v6, %v5684_v2 }
 0x4b4   : > { %v5489_v40 = vpop.f32.mrf.mxu1 }
 0x4b5   : > { %v5877_v12 = vadd.f32 %v5785_v13, %v5717_v32  ;;  %v5579_v10 = vadd.f32 %v10318_v7, %v5489_v40  ;;  %v6035_v7 = vrot.slane %v10375_v34, 1  ;;  %v8256_v32 = vld [vmem:[#allocation3 + $0xd4] sm:$0xf0] }
 0x4b7   : > { %v5652_v62 = vadd.f32 %v5579_v10, %v10115_v14  ;;  %5528 = vmatmul.bf16.gmra.mxu1 %v7800_v28  ;;  %vm5909_vm14 = vcmp.gt.f32.partialorder %v5877_v12, 0.0  ;;  %v5941_v47 = vmul.f32 0.1, %v5877_v12  ;;  %v6114_v10 = vld [vmem:[%s10726_s4 + $0x78] sm:$0xff] }
 0x4b8   : > { %6147 = vmatpush.msra.mxu3 %v6114_v10 }
 0x4b9   : > { %v5973_v49 = vsel %vm5909_vm14, %v5877_v12, %v5941_v47  ;;  %v5685_v56 = vmul.f32 %v10349_v31, %v5652_v62  ;;  %v10401_v28 = vpop.f32.mrf.mxu2 }
 0x4ba   : > { %v10380_v59 = vmax.f32 %v5971_v29, %v5973_v49 }
 0x4bb   : > { %v5718_v40 = vadd.f32 %v10360_v6, %v5685_v56 }
 0x4bc   : > { %v5491_v60 = vpop.f32.mrf.mxu1  ;;  %v6036_v2 = vrot.slane %v10380_v59, 1 }
 0x4bd   : > { %v5581_v55 = vadd.f32 %v10328_v19, %v5491_v60  ;;  %v7808_v19 = vor.u32 %v8256_v32, %v7807_v53  ;;  %v5878_v33 = vadd.f32 %v5787_v43, %v5718_v40  ;;  %v7815_v40 = vld [vmem:[#allocation3 + $0xe0] sm:$0xf] }
 0x4be   : > { %v10390_v14 = vsel %vm6034_vm8, %v6035_v7, %v6036_v2 }
 0x4bf   : > { %v5653_v8 = vadd.f32 %v5581_v55, %v10131_v57  ;;  %v6083_v24 = vmax.f32 %v10375_v34, %v10390_v14  ;;  %v5942_v55 = vmul.f32 0.1, %v5878_v33  ;;  %vm5910_vm9 = vcmp.gt.f32.partialorder %v5878_v33, 0.0 }
 0x4c1   : > { %v5686_v62 = vmul.f32 %v10349_v31, %v5653_v8  ;;  %v10411_v43 = vpop.f32.mrf.mxu2  ;;  %v5974_v32 = vsel %vm5910_vm9, %v5878_v33, %v5942_v55 }
 0x4c4   : > { %v5494_v13 = vpop.f32.mrf.mxu1 }
 0x4c5   : > { %v5584_v12 = vadd.f32 %v10339_v4, %v5494_v13  ;;  %v5719_v4 = vadd.f32 %v10360_v6, %v5686_v62 }
 0x4c7   : > { %v5654_v57 = vadd.f32 %v5584_v12, %v10145_v27  ;;  %5533 = vmatmul.bf16.gmra.mxu1 %v7808_v19  ;;  %v5879_v8 = vadd.f32 %v10337_v16, %v5719_v4  ;;  %v8258_v12 = vld [vmem:[#allocation3 + $0xe4] sm:$0xf0]  ;;  %v6113_v16 = vld [vmem:[%s10726_s4 + $0x70] sm:$0xff] }
 0x4c8   : > { %6148 = vmatpush.msra.mxu3 %v6113_v16 }
 0x4c9   : > { %v5687_v47 = vmul.f32 %v10349_v31, %v5654_v57  ;;  %v7816_v57 = vor.u32 %v8258_v12, %v7815_v40  ;;  %v5943_v62 = vmul.f32 0.1, %v5879_v8  ;;  %vm5911_vm11 = vcmp.gt.f32.partialorder %v5879_v8, 0.0  ;;  %v10424_v4 = vpop.f32.mrf.mxu2  ;;  %v7823_v40 = vld [vmem:[#allocation3 + $0xf0] sm:$0xf] }
 0x4ca   : > { %v8260_v12 = vld [vmem:[#allocation3 + $0xf4] sm:$0xf0] }
 0x4cb   : > { %v5720_v29 = vadd.f32 %v10360_v6, %v5687_v47 }
 0x4cc   : > { %v5496_v49 = vpop.f32.mrf.mxu1 }
 0x4cd   : > { %v5880_v60 = vadd.f32 %v10352_v5, %v5720_v29  ;;  %v5586_v7 = vadd.f32 %v10354_v22, %v5496_v49  ;;  %v5975_v29 = vsel %vm5911_vm11, %v5879_v8, %v5943_v62 }
 0x4cf   : > { %v5655_v56 = vadd.f32 %v5586_v7, %v10163_v48  ;;  %vm5912_vm10 = vcmp.gt.f32.partialorder %v5880_v60, 0.0  ;;  %v5944_v27 = vmul.f32 0.1, %v5880_v60  ;;  %v7841_v7 = vld [vmem:[#allocation3 + $0x118] sm:$0xf0] }
 0x4d1   : > { %v5688_v53 = vmul.f32 %v10349_v31, %v5655_v56  ;;  %v5976_v13 = vsel %vm5912_vm10, %v5880_v60, %v5944_v27  ;;  %v8263_v60 = vld [vmem:[#allocation3 + $0x114] sm:$0xf] }
 0x4d2   : > { %v10415_v19 = vmax.f32 %v5974_v32, %v5976_v13 }
 0x4d3   : > { %v5721_v5 = vadd.f32 %v10360_v6, %v5688_v53  ;;  %v7844_v53 = vor.u32 %v8263_v60, %v7841_v7 }
 0x4d4   : > { %v5499_v22 = vpop.f32.mrf.mxu1  ;;  %v6038_v56 = vrot.slane %v10415_v19, 1 }
 0x4d5   : > { %v5881_v10 = vadd.f32 %v10344_v42, %v5721_v5  ;;  %v5589_v48 = vadd.f32 %v10364_v11, %v5499_v22  ;;  %7908 = vmatmul.msk.bf16.gmra.mxu2 %vm3812_vm2, %v7844_v53  ;;  %v5603_v5 = vpop.f32.mrf.mxu2 }
 0x4d7   : > { %v5656_v33 = vadd.f32 %v5589_v48, %v10178_v20  ;;  %5538 = vmatmul.bf16.gmra.mxu1 %v7816_v57  ;;  %vm5913_vm12 = vcmp.gt.f32.partialorder %v5881_v10, 0.0  ;;  %v5945_v47 = vmul.f32 0.1, %v5881_v10  ;;  %v7824_v48 = vor.u32 %v8260_v12, %v7823_v40  ;;  %v8262_v40 = vld [vmem:[#allocation3 + $0x104] sm:$0xf0] }
 0x4d9   : > { %v5977_v49 = vsel %vm5913_vm12, %v5881_v10, %v5945_v47  ;;  %v5689_v13 = vmul.f32 %v10349_v31, %v5656_v33 }
 0x4da   : > { %v10426_v42 = vmax.f32 %v5975_v29, %v5977_v49 }
 0x4dc   : > { %v5501_v11 = vpop.f32.mrf.mxu1  ;;  %v6039_v55 = vrot.slane %v10426_v42, 1 }
 0x4dd   : > { %v5591_v27 = vadd.f32 %v10373_v44, %v5501_v11  ;;  %v5722_v44 = vadd.f32 %v10360_v6, %v5689_v13  ;;  %v5605_v7 = vpop.f32.mrf.mxu2  ;;  %v7831_v13 = vld [vmem:[#allocation3 + $0x100] sm:$0xf] }
 0x4de   : > { %v10434_v20 = vsel %vm6034_vm8, %v6038_v56, %v6039_v55 }
 0x4df   : > { %v5657_v8 = vadd.f32 %v5591_v27, %v10186_v3  ;;  %v6085_v32 = vmax.f32 %v10415_v19, %v10434_v20  ;;  %v6112_v3 = vld [vmem:[%s10726_s4 + $0x68] sm:$0xff]  ;;  %v5882_v16 = vadd.f32 %v10335_v37, %v5722_v44 }
 0x4e0   : > { %6149 = vmatpush.msra.mxu3 %v6112_v3 }
 0x4e1   : > { %v5690_v62 = vmul.f32 %v10349_v31, %v5657_v8  ;;  %v5946_v60 = vmul.f32 0.1, %v5882_v16  ;;  %vm5914_vm2 = vcmp.gt.f32.partialorder %v5882_v16, 0.0 }
 0x4e3   : > { %v5978_v53 = vsel %vm5914_vm2, %v5882_v16, %v5946_v60 }
 0x4e4   : > { %v5504_v22 = vpop.f32.mrf.mxu1 }
 0x4e5   : > { %v5594_v10 = vadd.f32 %v10382_v17, %v5504_v22  ;;  %v5723_v17 = vadd.f32 %v10360_v6, %v5690_v62 }
 0x4e7   : > { %v5658_v57 = vadd.f32 %v5594_v10, %v10192_v54  ;;  %5543 = vmatmul.bf16.gmra.mxu1 %v7824_v48  ;;  %v5883_v56 = vadd.f32 %v10341_v23, %v5723_v17  ;;  %v6111_v23 = vld [vmem:[%s10726_s4 + $0x60] sm:$0xff] }
 0x4e8   : > { %6150 = vmatpush.msra.mxu3 %v6111_v23 }
 0x4e9   : > { %v5691_v33 = vmul.f32 %v10349_v31, %v5658_v57  ;;  %v5947_v10 = vmul.f32 0.1, %v5883_v56  ;;  %vm5915_vm15 = vcmp.gt.f32.partialorder %v5883_v56, 0.0  ;;  %v5608_v57 = vpop.f32.mrf.mxu2 }
 0x4eb   : > { %v5724_v47 = vadd.f32 %v10360_v6, %v5691_v33  ;;  %v5979_v16 = vsel %vm5915_vm15, %v5883_v56, %v5947_v10 }
 0x4ec   : > { %v5506_v29 = vpop.f32.mrf.mxu1 }
 0x4ed   : > { %v5884_v49 = vadd.f32 %v10357_v50, %v5724_v47  ;;  %v5596_v11 = vadd.f32 %v10401_v28, %v5506_v29 }
 0x4ef   : > { %v5659_v54 = vadd.f32 %v5596_v11, %v10197_v41  ;;  %vm5916_vm13 = vcmp.gt.f32.partialorder %v5884_v49, 0.0  ;;  %v5948_v37 = vmul.f32 0.1, %v5884_v49  ;;  %v7832_v41 = vor.u32 %v8262_v40, %v7831_v13  ;;  %v8264_v11 = vld [vmem:[#allocation3 + $0x114] sm:$0xf0] }
 0x4f1   : > { %v5692_v27 = vmul.f32 %v10349_v31, %v5659_v54  ;;  %v5980_v8 = vsel %vm5916_vm13, %v5884_v49, %v5948_v37  ;;  %v7839_v49 = vld [vmem:[#allocation3 + $0x110] sm:$0xf]  ;;  %v5610_v37 = vpop.f32.mrf.mxu2 }
 0x4f2   : > { %v10457_v12 = vmax.f32 %v5978_v53, %v5980_v8  ;;  %v7840_v56 = vor.u32 %v8264_v11, %v7839_v49  ;;  %v6110_v8 = vld [vmem:[%s10726_s4 + $0x58] sm:$0xff] }
 0x4f3   : > { %v5725_v50 = vadd.f32 %v10360_v6, %v5692_v27  ;;  %6151 = vmatpush.msra.mxu3 %v6110_v8 }
 0x4f4   : > { %v5509_v28 = vpop.f32.mrf.mxu1  ;;  %v6041_v47 = vrot.slane %v10457_v12, 1 }
 0x4f5   : > { %v5885_v22 = vadd.f32 %v10326_v18, %v5725_v50  ;;  %v5599_v44 = vadd.f32 %v10411_v43, %v5509_v28 }
 0x4f7   : > { %v5660_v48 = vadd.f32 %v5599_v44, %v10206_v46  ;;  %5548 = vmatmul.bf16.gmra.mxu1 %v7832_v41  ;;  %vm5917_vm0 = vcmp.gt.f32.partialorder %v5885_v22, 0.0  ;;  %v5949_v3 = vmul.f32 0.1, %v5885_v22 }
 0x4f9   : > { %v5981_v62 = vsel %vm5917_vm0, %v5885_v22, %v5949_v3  ;;  %v5693_v54 = vmul.f32 %v10349_v31, %v5660_v48  ;;  %v5613_v22 = vpop.f32.mrf.mxu2 }
 0x4fa   : > { %v10466_v33 = vmax.f32 %v5979_v16, %v5981_v62 }
 0x4fb   : > { %v5726_v53 = vadd.f32 %v10360_v6, %v5693_v54 }
 0x4fc   : > { %v5511_v18 = vpop.f32.mrf.mxu1  ;;  %v6042_v43 = vrot.slane %v10466_v33, 1 }
 0x4fd   : > { %v5601_v29 = vadd.f32 %v10424_v4, %v5511_v18  ;;  %v5886_v13 = vadd.f32 %v10316_v45, %v5726_v53 }
 0x4fe   : > { %v10474_v17 = vsel %vm6034_vm8, %v6041_v47, %v6042_v43 }
 0x4ff   : > { %v5661_v46 = vadd.f32 %v5601_v29, %v10212_v35  ;;  %v6087_v60 = vmax.f32 %v10457_v12, %v10474_v17  ;;  %v5950_v10 = vmul.f32 0.1, %v5886_v13  ;;  %vm5918_vm1 = vcmp.gt.f32.partialorder %v5886_v13, 0.0 }
 0x501   : > { %v5694_v40 = vmul.f32 %v10349_v31, %v5661_v46  ;;  %v5982_v16 = vsel %vm5918_vm1, %v5886_v13, %v5950_v10  ;;  %v5615_v49 = vpop.f32.mrf.mxu2 }
 0x504   : > { %v5514_v27 = vpop.f32.mrf.mxu1 }
 0x505   : > { %v5604_v4 = vadd.f32 %v5603_v5, %v5514_v27  ;;  %v5727_v5 = vadd.f32 %v10360_v6, %v5694_v40 }
 0x507   : > { %v5662_v35 = vadd.f32 %v5604_v4, %v10217_v1  ;;  %5553 = vmatmul.bf16.gmra.mxu1 %v7840_v56  ;;  %v5887_v45 = vadd.f32 %v10311_v58, %v5727_v5 }
 0x509   : > { %v5695_v50 = vmul.f32 %v10349_v31, %v5662_v35  ;;  %v5951_v46 = vmul.f32 0.1, %v5887_v45  ;;  %vm5919_vm6 = vcmp.gt.f32.partialorder %v5887_v45, 0.0 }
 0x50b   : > { %v5728_v28 = vadd.f32 %v10360_v6, %v5695_v50  ;;  %v5983_v54 = vsel %vm5919_vm6, %v5887_v45, %v5951_v46 }
 0x50c   : > { %v5516_v44 = vpop.f32.mrf.mxu1 }
 0x50d   : > { %v5888_v41 = vadd.f32 %v10322_v39, %v5728_v28  ;;  %v5606_v23 = vadd.f32 %v5605_v7, %v5516_v44 }
 0x50f   : > { %v5663_v1 = vadd.f32 %v5606_v23, %v10223_v25  ;;  %vm5920_vm3 = vcmp.gt.f32.partialorder %v5888_v41, 0.0  ;;  %v5952_v48 = vmul.f32 0.1, %v5888_v41  ;;  %v6109_v25 = vld [vmem:[%s10726_s4 + $0x50] sm:$0xff] }
 0x510   : > { %6152 = vmatpush.msra.mxu3 %v6109_v25 }
 0x511   : > { %v5696_v3 = vmul.f32 %v10349_v31, %v5663_v1  ;;  %v5984_v62 = vsel %vm5920_vm3, %v5888_v41, %v5952_v48 }
 0x512   : > { %v10494_v18 = vmax.f32 %v5982_v16, %v5984_v62 }
 0x513   : > { %v5729_v47 = vadd.f32 %v10360_v6, %v5696_v3 }
 0x514   : > { %v5519_v29 = vpop.f32.mrf.mxu1 }
 0x515   : > { %v5889_v39 = vadd.f32 %v10331_v26, %v5729_v47  ;;  %v5609_v7 = vadd.f32 %v5608_v57, %v5519_v29  ;;  %v6044_v57 = vrot.slane %v10494_v18, 1 }
 0x517   : > { %v5664_v58 = vadd.f32 %v5609_v7, %v10226_v63  ;;  %vm5921_vm4 = vcmp.gt.f32.partialorder %v5889_v39, 0.0  ;;  %v5953_v11 = vmul.f32 0.1, %v5889_v39  ;;  %v5618_v63 = vpop.f32.mrf.mxu2 }
 0x519   : > { %v5985_v56 = vsel %vm5921_vm4, %v5889_v39, %v5953_v11  ;;  %v5697_v40 = vmul.f32 %v10349_v31, %v5664_v58 }
 0x51a   : > { %v10502_v27 = vmax.f32 %v5983_v54, %v5985_v56 }
 0x51b   : > { %v5730_v28 = vadd.f32 %v10360_v6, %v5697_v40 }
 0x51c   : > { %v5521_v53 = vpop.f32.mrf.mxu1  ;;  %v6045_v26 = vrot.slane %v10502_v27, 1 }
 0x51d   : > { %v5611_v4 = vadd.f32 %v5610_v37, %v5521_v53  ;;  %v6108_v37 = vld [vmem:[%s10726_s4 + $0x48] sm:$0xff]  ;;  %v5890_v41 = vadd.f32 %v10320_v30, %v5730_v28 }
 0x51e   : > { %v10509_v8 = vsel %vm6034_vm8, %v6044_v57, %v6045_v26  ;;  %6153 = vmatpush.msra.mxu3 %v6108_v37 }
 0x51f   : > { %v5665_v35 = vadd.f32 %v5611_v4, %v10232_v52  ;;  %v6089_v13 = vmax.f32 %v10494_v18, %v10509_v8  ;;  %v5620_v10 = vpop.f32.mrf.mxu2  ;;  %v5954_v16 = vmul.f32 0.1, %v5890_v41  ;;  %vm5922_vm5 = vcmp.gt.f32.partialorder %v5890_v41, 0.0 }
 0x521   : > { %v5698_v52 = vmul.f32 %v10349_v31, %v5665_v35  ;;  %v5986_v29 = vsel %vm5922_vm5, %v5890_v41, %v5954_v16  ;;  %v5128_v41 = vpop.f32.mrf.mxu0 }
 0x523   : > { %v5731_v45 = vadd.f32 %v10360_v6, %v5698_v52 }
 0x524   : > { %v5524_v50 = vpop.f32.mrf.mxu1 }
 0x525   : > { %v5614_v44 = vadd.f32 %v5613_v22, %v5524_v50  ;;  %v5891_v30 = vadd.f32 %v10295_v15, %v5731_v45 }
 0x527   : > { %v5666_v5 = vadd.f32 %v5614_v44, %v10237_v9  ;;  %v5623_v46 = vpop.f32.mrf.mxu2  ;;  %v5955_v11 = vmul.f32 0.1, %v5891_v30  ;;  %vm5923_vm14 = vcmp.gt.f32.partialorder %v5891_v30, 0.0  ;;  %v5039_v44 = vpop.f32.mrf.mxu3 }
 0x529   : > { %v5699_v23 = vmul.f32 %v10349_v31, %v5666_v5  ;;  %v5987_v56 = vsel %vm5923_vm14, %v5891_v30, %v5955_v11 }
 0x52b   : > { %v5732_v1 = vadd.f32 %v10360_v6, %v5699_v23 }
 0x52c   : > { %v5526_v48 = vpop.f32.mrf.mxu1 }
 0x52d   : > { %v5892_v22 = vadd.f32 %v10305_v38, %v5732_v1  ;;  %v5616_v3 = vadd.f32 %v5615_v49, %v5526_v48 }
 0x52f   : > { %v5667_v62 = vadd.f32 %v5616_v3, %v10243_v36  ;;  %vm5924_vm7 = vcmp.gt.f32.partialorder %v5892_v22, 0.0  ;;  %v5956_v9 = vmul.f32 0.1, %v5892_v22  ;;  %v6107_v36 = vld [vmem:[%s10726_s4 + $0x40] sm:$0xff]  ;;  %v5625_v40 = vpop.f32.mrf.mxu2  ;;  %v5041_v16 = vpop.f32.mrf.mxu3 }
 0x530   : > { %6154 = vmatpush.msra.mxu3 %v6107_v36 }
 0x531   : > { %v5700_v47 = vmul.f32 %v10349_v31, %v5667_v62  ;;  %v5988_v39 = vsel %vm5924_vm7, %v5892_v22, %v5956_v9 }
 0x532   : > { %v10529_v7 = vmax.f32 %v5986_v29, %v5988_v39 }
 0x533   : > { %v5733_v25 = vadd.f32 %v10360_v6, %v5700_v47  ;;  %v10828_v47 = vld [vmem:[#allocation29_spill] sm:$0xff] }
 0x534   : > { %v5529_v58 = vpop.f32.mrf.mxu1 }
 0x535   : > { %v5893_v38 = vadd.f32 %v10301_v61, %v5733_v25  ;;  %v5619_v49 = vadd.f32 %v5618_v63, %v5529_v58  ;;  %v6047_v61 = vrot.slane %v10529_v7, 1 }
 0x537   : > { %v5668_v15 = vadd.f32 %v5619_v49, %v10248_v0  ;;  %vm5925_vm9 = vcmp.gt.f32.partialorder %v5893_v38, 0.0  ;;  %v5957_v54 = vmul.f32 0.1, %v5893_v38  ;;  %v5628_v48 = vpop.f32.mrf.mxu2  ;;  %v10830_v49 = vld [vmem:[#allocation27_spill] sm:$0xff] }
 0x539   : > { %v5989_v53 = vsel %vm5925_vm9, %v5893_v38, %v5957_v54  ;;  %v5701_v37 = vmul.f32 %v10349_v31, %v5668_v15 }
 0x53a   : > { %v10537_v57 = vmax.f32 %v5987_v56, %v5989_v53 }
 0x53b   : > { %v5734_v52 = vadd.f32 %v10360_v6, %v5701_v37  ;;  %v5044_v37 = vpop.f32.mrf.mxu3 }
 0x53c   : > { %v5531_v4 = vpop.f32.mrf.mxu1  ;;  %v6048_v35 = vrot.slane %v10537_v57, 1 }
 0x53d   : > { %v5621_v63 = vadd.f32 %v5620_v10, %v5531_v4  ;;  %v6106_v10 = vld [vmem:[%s10726_s4 + $0x38] sm:$0xff]  ;;  %v10831_v4 = vld [vmem:[#allocation24_spill] sm:$0xff] }
 0x53e   : > { %v10544_v50 = vsel %vm6034_vm8, %v6047_v61, %v6048_v35  ;;  %6155 = vmatpush.msra.mxu3 %v6106_v10  ;;  %v10832_v61 = vld [vmem:[#allocation8_spill] sm:$0xff] }
 0x53f   : > { %v5669_v0 = vadd.f32 %v5621_v63, %v10252_v21  ;;  %v6091_v28 = vmax.f32 %v10529_v7, %v10544_v50  ;;  %v10827_v21 = vld [vmem:[#allocation25_spill] sm:$0xff]  ;;  %v5630_v56 = vpop.f32.mrf.mxu2  ;;  %v4687_v63 = vadd.f32 %v10832_v61, %v10831_v4 }
 0x540   : > { %v5894_v45 = vadd.f32 %v10827_v21, %v5734_v52 }
 0x541   : > { %v5702_v22 = vmul.f32 %v10349_v31, %v5669_v0 }
 0x542   : > { %v5958_v25 = vmul.f32 0.1, %v5894_v45  ;;  %vm5926_vm10 = vcmp.gt.f32.partialorder %v5894_v45, 0.0 }
 0x543   : > { %v5735_v30 = vadd.f32 %v10360_v6, %v5702_v22 }
 0x544   : > { %v5534_v5 = vpop.f32.mrf.mxu1  ;;  %v5990_v15 = vsel %vm5926_vm10, %v5894_v45, %v5958_v25 }
 0x545   : > { %v5624_v23 = vadd.f32 %v5623_v46, %v5534_v5  ;;  %v5130_v46 = vpop.f32.mrf.mxu0  ;;  %v5895_v36 = vadd.f32 %v10830_v49, %v5735_v30  ;;  %v10833_v5 = vld [vmem:[#allocation7_spill] sm:$0xff]  ;;  %v10836_v49 = vld [vmem:[#allocation18_spill] sm:$0xff] }
 0x546   : > { %v10834_v30 = vld [vmem:[#allocation19_spill] sm:$0xff] }
 0x547   : > { %v5670_v1 = vadd.f32 %v5624_v23, %v10261_v51  ;;  %v10829_v51 = vld [vmem:[#allocation15_spill] sm:$0xff]  ;;  %v6105_v23 = vld [vmem:[%s10726_s4 + $0x30] sm:$0xff]  ;;  %v5959_v10 = vmul.f32 0.1, %v5895_v36  ;;  %vm5927_vm12 = vcmp.gt.f32.partialorder %v5895_v36, 0.0  ;;  %v5633_v25 = vpop.f32.mrf.mxu2 }
 0x548   : > { %6156 = vmatpush.msra.mxu3 %v6105_v23 }
 0x549   : > { %v5703_v3 = vmul.f32 %v10349_v31, %v5670_v1  ;;  %v5040_v1 = vadd.f32 %v5039_v44, %v4687_v63  ;;  %v10837_v44 = vld [vmem:[#allocation10_spill] sm:$0xff] }
 0x54b   : > { %v5736_v62 = vadd.f32 %v10360_v6, %v5703_v3  ;;  %v5991_v3 = vsel %vm5927_vm12, %v5895_v36, %v5959_v10 }
 0x54c   : > { %v5536_v9 = vpop.f32.mrf.mxu1 }
 0x54d   : > { %v5896_v29 = vadd.f32 %v10828_v47, %v5736_v62  ;;  %v5626_v39 = vadd.f32 %v5625_v40, %v5536_v9  ;;  %v5133_v45 = vpop.f32.mrf.mxu0  ;;  %v10835_v47 = vld [vmem:[#allocation9_spill] sm:$0xff] }
 0x54f   : > { %v5671_v58 = vadd.f32 %v5626_v39, %v10829_v51  ;;  %vm5928_vm11 = vcmp.gt.f32.partialorder %v5896_v29, 0.0  ;;  %v5960_v38 = vmul.f32 0.1, %v5896_v29  ;;  %v5129_v39 = vadd.f32 %v5128_v41, %v5040_v1 }
 0x551   : > { %v5704_v11 = vmul.f32 %v10349_v31, %v5671_v58  ;;  %v5992_v54 = vsel %vm5928_vm11, %v5896_v29, %v5960_v38  ;;  %v4689_v29 = vadd.f32 %v10835_v47, %v10834_v30  ;;  %v10840_v47 = vld [vmem:[#allocation6_spill] sm:$0xff] }
 0x552   : > { %v10564_v53 = vmax.f32 %v5990_v15, %v5992_v54  ;;  %v5046_v54 = vpop.f32.mrf.mxu3 }
 0x553   : > { %v5737_v40 = vadd.f32 %v10360_v6, %v5704_v11  ;;  %v4692_v11 = vadd.f32 %v10837_v44, %v10836_v49  ;;  %v5042_v36 = vadd.f32 %v5041_v16, %v4689_v29  ;;  %v6104_v16 = vld [vmem:[%s10726_s4 + $0x28] sm:$0xff]  ;;  %v10841_v44 = vld [vmem:[#allocation16_spill] sm:$0xff] }
 0x554   : > { %v5539_v0 = vpop.f32.mrf.mxu1  ;;  %v6050_v38 = vrot.slane %v10564_v53, 1  ;;  %6157 = vmatpush.msra.mxu3 %v6104_v16 }
 0x555   : > { %v5897_v52 = vadd.f32 %v10833_v5, %v5737_v40  ;;  %v5629_v22 = vadd.f32 %v5628_v48, %v5539_v0  ;;  %v5045_v4 = vadd.f32 %v5044_v37, %v4692_v11  ;;  %v5135_v40 = vpop.f32.mrf.mxu0  ;;  %v5131_v0 = vadd.f32 %v5130_v46, %v5042_v36  ;;  %v10838_v5 = vld [vmem:[#allocation26_spill] sm:$0xff] }
 0x557   : > { %vm5929_vm2 = vcmp.gt.f32.partialorder %v5897_v52, 0.0  ;;  %v5961_v21 = vmul.f32 0.1, %v5897_v52  ;;  %v5672_v15 = vadd.f32 %v5629_v22, %v5129_v39  ;;  %v5134_v22 = vadd.f32 %v5133_v45, %v5045_v4 }
 0x559   : > { %v5993_v62 = vsel %vm5929_vm2, %v5897_v52, %v5961_v21  ;;  %v5705_v61 = vmul.f32 %v10349_v31, %v5672_v15  ;;  %v10839_v52 = vld [vmem:[#allocation11_spill] sm:$0xff] }
 0x55a   : > { %v10573_v9 = vmax.f32 %v5991_v3, %v5993_v62  ;;  %v4694_v23 = vadd.f32 %v10839_v52, %v10838_v5  ;;  %v5635_v62 = vpop.f32.mrf.mxu2 }
 0x55b   : > { %v5738_v1 = vadd.f32 %v10360_v6, %v5705_v61 }
 0x55c   : > { %v5541_v51 = vpop.f32.mrf.mxu1  ;;  %v6051_v58 = vrot.slane %v10573_v9, 1  ;;  %v5047_v30 = vadd.f32 %v5046_v54, %v4694_v23 }
 0x55d   : > { %v5631_v63 = vadd.f32 %v5630_v56, %v5541_v51  ;;  %v5049_v56 = vpop.f32.mrf.mxu3  ;;  %v5898_v46 = vadd.f32 %v10840_v47, %v5738_v1  ;;  %v10843_v1 = vld [vmem:[#allocation28_spill] sm:$0xff]  ;;  %v6102_v47 = vld [vmem:[%s10726_s4 + $0x18] sm:$0xff] }
 0x55e   : > { %v10584_v48 = vsel %vm6034_vm8, %v6050_v38, %v6051_v58  ;;  %v5136_v38 = vadd.f32 %v5135_v40, %v5047_v30  ;;  %v6103_v30 = vld [vmem:[%s10726_s4 + $0x20] sm:$0xff] }
 0x55f   : > { %v6093_v41 = vmax.f32 %v10564_v53, %v10584_v48  ;;  %v5673_v21 = vadd.f32 %v5631_v63, %v5131_v0  ;;  %v5962_v36 = vmul.f32 0.1, %v5898_v46  ;;  %vm5930_vm13 = vcmp.gt.f32.partialorder %v5898_v46, 0.0  ;;  %v10842_v63 = vld [vmem:[#allocation21_spill] sm:$0xff]  ;;  %6158 = vmatpush.msra.mxu3 %v6103_v30 }
 0x561   : > { %v5706_v29 = vmul.f32 %v10349_v31, %v5673_v21  ;;  %v5994_v52 = vsel %vm5930_vm13, %v5898_v46, %v5962_v36  ;;  %v10844_v21 = vld [vmem:[#allocation12_spill] sm:$0xff]  ;;  %6159 = vmatpush.msra.mxu3 %v6102_v47  ;;  %v10847_v36 = vld [vmem:[#allocation13_spill] sm:$0xff] }
 0x562   : > { %v5638_v61 = vpop.f32.mrf.mxu2 }
 0x563   : > { %v5739_v49 = vadd.f32 %v10360_v6, %v5706_v29 }
 0x564   : > { %v5544_v10 = vpop.f32.mrf.mxu1 }
 0x565   : > { %v5634_v3 = vadd.f32 %v5633_v25, %v5544_v10  ;;  %v5138_v25 = vpop.f32.mrf.mxu0  ;;  %v5899_v0 = vadd.f32 %v10842_v63, %v5739_v49  ;;  %v5051_v10 = vpop.f32.mrf.mxu3 }
 0x567   : > { %v5674_v37 = vadd.f32 %v5634_v3, %v5134_v22  ;;  %v4697_v22 = vadd.f32 %v10844_v21, %v10843_v1  ;;  %v5963_v46 = vmul.f32 0.1, %v5899_v0  ;;  %vm5931_vm0 = vcmp.gt.f32.partialorder %v5899_v0, 0.0  ;;  %v10849_v1 = vld [vmem:[#allocation20_spill] sm:$0xff] }
 0x569   : > { %v5707_v39 = vmul.f32 %v10349_v31, %v5674_v37 }
 0x56b   : > { %v5740_v51 = vadd.f32 %v10360_v6, %v5707_v39  ;;  %v5050_v39 = vadd.f32 %v5049_v56, %v4697_v22  ;;  %v10848_v56 = vld [vmem:[#allocation31_spill] sm:$0xff] }
 0x56c   : > { %v5546_v45 = vpop.f32.mrf.mxu1  ;;  %v4702_v21 = vadd.f32 %v10849_v1, %v10848_v56 }
 0x56d   : > { %v5900_v11 = vadd.f32 %v10841_v44, %v5740_v51  ;;  %v5636_v15 = vadd.f32 %v5635_v62, %v5546_v45  ;;  %v10845_v62 = vld [vmem:[#allocation17_spill] sm:$0xff]  ;;  %v5140_v29 = vpop.f32.mrf.mxu0  ;;  %v5995_v45 = vsel %vm5931_vm0, %v5899_v0, %v5963_v46  ;;  %v5640_v44 = vpop.f32.mrf.mxu2  ;;  %v10850_v46 = vld [vmem:[#allocation32_spill] sm:$0xff] }
 0x56f   : > { %v5675_v54 = vadd.f32 %v5636_v15, %v5136_v38  ;;  %vm5932_vm15 = vcmp.gt.f32.partialorder %v5900_v11, 0.0  ;;  %v5964_v4 = vmul.f32 0.1, %v5900_v11  ;;  %v10846_v15 = vld [vmem:[#allocation30_spill] sm:$0xff] }
 0x571   : > { %v5708_v5 = vmul.f32 %v10349_v31, %v5675_v54  ;;  %v5996_v23 = vsel %vm5932_vm15, %v5900_v11, %v5964_v4  ;;  %v4699_v54 = vadd.f32 %v10847_v36, %v10846_v15  ;;  %v5139_v4 = vadd.f32 %v5138_v25, %v5050_v39  ;;  %v10851_v39 = vld [vmem:[#allocation4_spill] sm:$0xff] }
 0x572   : > { %v10603_v40 = vmax.f32 %v5994_v52, %v5996_v23  ;;  %v5054_v23 = vpop.f32.mrf.mxu3 }
 0x573   : > { %v5741_v3 = vadd.f32 %v10360_v6, %v5708_v5  ;;  %v5052_v0 = vadd.f32 %v5051_v10, %v4699_v54 }
 0x574   : > { %v5549_v16 = vpop.f32.mrf.mxu1  ;;  %v6053_v52 = vrot.slane %v10603_v40, 1 }
 0x575   : > { %v5901_v37 = vadd.f32 %v10845_v62, %v5741_v3  ;;  %v5639_v38 = vadd.f32 %v5638_v61, %v5549_v16  ;;  %v5143_v16 = vpop.f32.mrf.mxu0  ;;  %v5055_v62 = vadd.f32 %v5054_v23, %v4702_v21  ;;  %v5643_v30 = vpop.f32.mrf.mxu2  ;;  %v5141_v47 = vadd.f32 %v5140_v29, %v5052_v0 }
 0x577   : > { %vm5933_vm1 = vcmp.gt.f32.partialorder %v5901_v37, 0.0  ;;  %v5965_v51 = vmul.f32 0.1, %v5901_v37  ;;  %v5676_v22 = vadd.f32 %v5639_v38, %v5139_v4  ;;  %v5144_v15 = vadd.f32 %v5143_v16, %v5055_v62 }
 0x579   : > { %v5997_v49 = vsel %vm5933_vm1, %v5901_v37, %v5965_v51  ;;  %v5709_v25 = vmul.f32 %v10349_v31, %v5676_v22  ;;  %v4704_v51 = vadd.f32 %v10851_v39, %v10850_v46  ;;  %v6101_v46 = vld [vmem:[%s10726_s4 + $0x10] sm:$0xff]  ;;  %v10854_v39 = vld [vmem:[#allocation14_spill] sm:$0xff] }
 0x57a   : > { %v10615_v11 = vmax.f32 %v5995_v45, %v5997_v49  ;;  %v5056_v10 = vpop.f32.mrf.mxu3  ;;  %6160 = vmatpush.msra.mxu3 %v6101_v46 }
 0x57b   : > { %v5742_v38 = vadd.f32 %v10360_v6, %v5709_v25  ;;  %v5057_v4 = vadd.f32 %v5056_v10, %v4704_v51  ;;  %v10853_v25 = vld [vmem:[#allocation23_spill] sm:$0xff]  ;;  %v10855_v10 = vld [vmem:[#allocation22_spill] sm:$0xff] }
 0x57c   : > { %v5551_v63 = vpop.f32.mrf.mxu1  ;;  %v6054_v5 = vrot.slane %v10615_v11, 1 }
 0x57d   : > { %v5641_v37 = vadd.f32 %v5640_v44, %v5551_v63  ;;  %v5145_v63 = vpop.f32.mrf.mxu0  ;;  %v5645_v1 = vpop.f32.mrf.mxu2 }
 0x57e   : > { %v10624_v61 = vsel %vm6034_vm8, %v6053_v52, %v6054_v5  ;;  %v10852_v52 = vld [vmem:[#allocation5_spill] sm:$0xff]  ;;  %v5146_v21 = vadd.f32 %v5145_v63, %v5057_v4 }
 0x57f   : > { %v6095_v3 = vmax.f32 %v10603_v40, %v10624_v61  ;;  %v5677_v49 = vadd.f32 %v5641_v37, %v5141_v47  ;;  %v5902_v56 = vadd.f32 %v10852_v52, %v5742_v38  ;;  %v6078_v40 = vsel %vm6034_vm8, %v6045_v26, %v10502_v27 }
 0x580   : > { %v6076_v26 = vsel %vm6034_vm8, %v6039_v55, %v10426_v42 }
 0x581   : > { %v5710_v23 = vmul.f32 %v10349_v31, %v5677_v49  ;;  %v5966_v37 = vmul.f32 0.1, %v5902_v56  ;;  %vm5934_vm3 = vcmp.gt.f32.partialorder %v5902_v56, 0.0 }
 0x583   : > { %v5743_v0 = vadd.f32 %v10360_v6, %v5710_v23  ;;  %v5998_v38 = vsel %vm5934_vm3, %v5902_v56, %v5966_v37  ;;  %v6079_v37 = vsel %vm6034_vm8, %v6048_v35, %v10537_v57  ;;  %v6077_v35 = vsel %vm6034_vm8, %v6042_v43, %v10466_v33 }
 0x584   : > { %v5554_v45 = vpop.f32.mrf.mxu1  ;;  %v6075_v43 = vsel %vm6034_vm8, %v6036_v2, %v10380_v59 }
 0x585   : > { %v5644_v36 = vadd.f32 %v5643_v30, %v5554_v45  ;;  %v5903_v51 = vadd.f32 %v10854_v39, %v5743_v0  ;;  %v6100_v0 = vld [vmem:[%s10726_s4 + $0x8] sm:$0xff]  ;;  %v6084_v55 = vmax.f32 %v10380_v59, %v6075_v43 }
 0x587   : > { %v5678_v54 = vadd.f32 %v5644_v36, %v5144_v15  ;;  %v5967_v4 = vmul.f32 0.1, %v5903_v51  ;;  %vm5935_vm4 = vcmp.gt.f32.partialorder %v5903_v51, 0.0 }
 0x589   : > { %v5711_v44 = vmul.f32 %v10349_v31, %v5678_v54  ;;  %v5999_v23 = vsel %vm5935_vm4, %v5903_v51, %v5967_v4 }
 0x58b   : > { %v5744_v29 = vadd.f32 %v10360_v6, %v5711_v44 }
 0x58c   : > { %v5556_v22 = vpop.f32.mrf.mxu1 }
 0x58d   : > { %v5904_v16 = vadd.f32 %v10853_v25, %v5744_v29  ;;  %v5646_v62 = vadd.f32 %v5645_v1, %v5556_v22  ;;  %v6099_v25 = vld [vmem:[%s10726_s4] sm:$0xff] }
 0x58f   : > { %v5679_v30 = vadd.f32 %v5646_v62, %v5146_v21  ;;  %vm5936_vm6 = vcmp.gt.f32.partialorder %v5904_v16, 0.0  ;;  %v5968_v47 = vmul.f32 0.1, %v5904_v16  ;;  %v6080_v62 = vsel %vm6034_vm8, %v6051_v58, %v10573_v9 }
 0x590   : > { %v6092_v58 = vmax.f32 %v10537_v57, %v6079_v37  ;;  %v6088_v57 = vmax.f32 %v10466_v33, %v6077_v35 }
 0x591   : > { %v5712_v45 = vmul.f32 %v10349_v31, %v5679_v30  ;;  %v6000_v49 = vsel %vm5936_vm6, %v5904_v16, %v5968_v47 }
 0x592   : > { %v6016_v15 = vmax.f32 %v5998_v38, %v6000_v49 }
 0x593   : > { %v5745_v36 = vadd.f32 %v10360_v6, %v5712_v45  ;;  %v6081_v6 = vsel %vm6034_vm8, %v6054_v5, %v10615_v11  ;;  %v6094_v5 = vmax.f32 %v10573_v9, %v6080_v62  ;;  %v6090_v9 = vmax.f32 %v10502_v27, %v6078_v40 }
 0x594   : > { %v6056_v1 = vrot.slane %v6016_v15, 1  ;;  %v6096_v16 = vmax.f32 %v10615_v11, %v6081_v6  ;;  %v6086_v27 = vmax.f32 %v10426_v42, %v6076_v26 }
 0x595   : > { %v5905_v54 = vadd.f32 %v10855_v10, %v5745_v36 }
 0x597   : > { %vm5937_vm5 = vcmp.gt.f32.partialorder %v5905_v54, 0.0  ;;  %v5969_v52 = vmul.f32 0.1, %v5905_v54 }
 0x599   : > { %v6001_v44 = vsel %vm5937_vm5, %v5905_v54, %v5969_v52 }
 0x59a   : > { %v6017_v63 = vmax.f32 %v5999_v23, %v6001_v44 }
 0x59c   : > { %v6057_v29 = vrot.slane %v6017_v63, 1 }
 0x59e   : > { %v6082_v21 = vsel %vm6034_vm8, %v6057_v29, %v6017_v63  ;;  %v6058_v31 = vsel %vm6034_vm8, %v6056_v1, %v6057_v29  ;;  %vm6188_vm8 = vcmask 64512  }
 0x59f   : > { %v6098_v56 = vmax.f32 %v6017_v63, %v6082_v21  ;;  %v6097_v22 = vmax.f32 %v6016_v15, %v6058_v31 }
 0x5a1   : > { %8304 = vmatpush.lsf.msrb.mxu3 %v6098_v56 }
 0x5a3   : > { %6161 = vmatpush.msra.mxu3 %v6100_v0 }
 0x5a5   : > { %8305 = vmatpush.lsf.msrb.mxu3 %v6097_v22 }
 0x5a7   : > { %6162 = vmatpush.msra.mxu3 %v6099_v25 }
 0x5a9   : > { %8306 = vmatpush.lsf.msrb.mxu3 %v6096_v16 }
 0x5ab   : > { %8307 = vmatpush.lsf.msrb.mxu3 %v6095_v3 }
 0x5ad   : > { %8308 = vmatpush.lsf.msrb.mxu3 %v6094_v5 }
 0x5af   : > { %8309 = vmatpush.lsf.msrb.mxu3 %v6093_v41 }
 0x5b1   : > { %8310 = vmatpush.lsf.msrb.mxu3 %v6092_v58 }
 0x5b3   : > { %8311 = vmatpush.lsf.msrb.mxu3 %v6091_v28 }
 0x5b5   : > { %8312 = vmatpush.lsf.msrb.mxu3 %v6090_v9 }
 0x5b7   : > { %8313 = vmatpush.lsf.msrb.mxu3 %v6089_v13 }
 0x5b9   : > { %8314 = vmatpush.lsf.msrb.mxu3 %v6088_v57 }
 0x5bb   : > { %8315 = vmatpush.lsf.msrb.mxu3 %v6087_v60 }
 0x5bd   : > { %8316 = vmatpush.lsf.msrb.mxu3 %v6086_v27 }
 0x5bf   : > { %8317 = vmatpush.lsf.msrb.mxu3 %v6085_v32 }
 0x5c1   : > { %8318 = vmatpush.lsf.msrb.mxu3 %v6084_v55 }
 0x5c3   : > { %8319 = vmatpush.lsf.msrb.mxu3 %v6083_v24 }
 0x5c4   : > { %8320 = vllmr.8.mxu3 }
 0x5e5   : > { %8321 = vmatmul.lmr.bf16.vlgmr.msra.gmra.8.mxu3 }
 0x5ed   : > { %8322 = vmatmul.lmr.bf16.gmra.8.mxu3 }
 0x5f5   : > { %8323 = vmatmul.lmr.bf16.gmra.8.mxu3 }
 0x5fd   : > { %8324 = vmatmul.lmr.bf16.gmra.8.mxu3 }
 0x605   : > { %8325 = vmatmul.lmr.bf16.gmra.8.mxu3 }
 0x60d   : > { %8326 = vmatmul.lmr.bf16.gmra.8.mxu3 }
 0x615   : > { %8327 = vmatmul.lmr.bf16.gmra.8.mxu3 }
 0x61d   : > { %8328 = vmatmul.lmr.bf16.gmra.8.mxu3 }
 0x668   : > { %v6164_v59 = vpop.f32.mrf.mxu3 }
 0x669   : > { %6189 = vst.msk [vmem:[%s224_s6] sm:$0xff] %vm6188_vm8, %v6164_v59 }
 0x670   : > { %v6167_v34 = vpop.f32.mrf.mxu3 }
 0x671   : > { %6190 = vst.msk [vmem:[%s224_s6 + $0x8] sm:$0xff] %vm6188_vm8, %v6167_v34 }
 0x678   : > { %v6170_v2 = vpop.f32.mrf.mxu3 }
 0x679   : > { %6191 = vst.msk [vmem:[%s224_s6 + $0x10] sm:$0xff] %vm6188_vm8, %v6170_v2 }
 0x680   : > { %v6173_v14 = vpop.f32.mrf.mxu3 }
 0x681   : > { %6192 = vst.msk [vmem:[%s224_s6 + $0x18] sm:$0xff] %vm6188_vm8, %v6173_v14 }
 0x688   : > { %v6176_v24 = vpop.f32.mrf.mxu3 }
 0x689   : > { %6193 = vst.msk [vmem:[%s224_s6 + $0x20] sm:$0xff] %vm6188_vm8, %v6176_v24 }
 0x690   : > { %v6179_v19 = vpop.f32.mrf.mxu3 }
 0x691   : > { %6194 = vst.msk [vmem:[%s224_s6 + $0x28] sm:$0xff] %vm6188_vm8, %v6179_v19 }
 0x698   : > { %v6182_v42 = vpop.f32.mrf.mxu3 }
 0x699   : > { %6195 = vst.msk [vmem:[%s224_s6 + $0x30] sm:$0xff] %vm6188_vm8, %v6182_v42 }
 0x6a0   : > { %v6185_v20 = vpop.f32.mrf.mxu3 }
 0x6a1   : > { %6196 = vst.msk [vmem:[%s224_s6 + $0x38] sm:$0xff] %vm6188_vm8, %v6185_v20 }
 0x6a2 PF: > { %s15_s18 = sadd.s32 1, %s8347_s18  }
 0x6a3   : > { %p12_p4 = scmp.ge.s32.totalorder %s15_s18, 4  }
 0x6a5   :  { %14 = sbr.rel (!%p12_p4) target bundleno = 1 (0x1), region = 80 }

</bundles_post_ra>
